<compile_context>
chip_gen: v6e
topology: v6e:2x2x1
jax: 0.10.0
libtpu: 0.0.40
codegen_flags: <defaults>
</compile_context>

<pallas_src>
import jax
import jax.numpy as jnp
from jax import lax
from jax.experimental import pallas as pl
from jax.experimental.pallas import tpu as pltpu

HIDDEN = 512
N_HIDDEN_LAYERS = 4
EPS = 1e-5
NEG_SLOPE = 0.2


def dann_domain_classifier_kernel(
    h_ref,      # (B, 512)      f32   VMEM  input activations
    w_ref,      # (4, 512, 512) bf16  VMEM  hidden Linear weights, (in, out)
    gb_ref,     # (4, 2, 512)   f32   VMEM  BN gamma (row 0) / beta (row 1)
    w5_ref,     # (1, 512)      f32   VMEM  final Linear weight (as a row)
    b5_ref,     # (1,)          f32   SMEM  final Linear bias
    out_ref,    # (B, 1)        f32   VMEM
    x_scratch,  # (B, 512)      bf16  VMEM  activation carried across layers
):
    # Cast the input once; every hidden matmul operand is bf16 anyway.
    x_scratch[...] = h_ref[...].astype(jnp.bfloat16)

    # Fully-unrolled layer loop with static indices: each weight slab is a
    # static leading-axis slice of the resident VMEM block; the activation
    # carry through x_scratch bounds live ranges between iterations.
    for l in range(N_HIDDEN_LAYERS):
        # Linear (bias omitted: a per-feature constant cancels exactly under
        # training-mode BatchNorm's (y - mean(y))).
        y = jnp.dot(x_scratch[...], w_ref[l],
                    preferred_element_type=jnp.float32)

        # BatchNorm1d, training mode: batch mean, biased batch variance.
        mu = jnp.mean(y, axis=0, keepdims=True)
        var = jnp.mean((y - mu) * (y - mu), axis=0, keepdims=True)  # two-pass, stable
        gb = gb_ref[l]                                  # (2, 512) f32
        scale = gb[0:1, :] * lax.rsqrt(var + EPS)       # fold gamma into scale
        y = (y - mu) * scale + gb[1:2, :]

        # LeakyReLU(0.2), stored already cast to bf16 (next matmul operand).
        x_scratch[...] = jnp.where(y > 0, y, NEG_SLOPE * y).astype(jnp.bfloat16)

    # Final Linear(512 -> 1) as a lane reduction on the last hidden activation.
    xf = x_scratch[...].astype(jnp.float32)
    logits = jnp.sum(xf * w5_ref[...], axis=-1, keepdims=True) + b5_ref[0]
    out_ref[...] = logits.astype(out_ref.dtype)


def domain_classifier_forward(h, kernel_params):
    """h: (B, 512) f32. kernel_params: output of pack_kernel_params()."""
    w_stack, gb_stack, w5_row, b5 = kernel_params
    B = h.shape[0]
    return pl.pallas_call(
        dann_domain_classifier_kernel,
        out_shape=jax.ShapeDtypeStruct((B, 1), jnp.float32),
        # Gridless: every operand is DMA'd whole into VMEM (weights ~2 MiB bf16,
        # gamma/beta 16 KiB, h B*2 KiB) -- one DMA each, no per-layer steps.
        in_specs=[
            pl.BlockSpec(memory_space=pltpu.MemorySpace.VMEM),   # h
            pl.BlockSpec(memory_space=pltpu.MemorySpace.VMEM),   # W stack
            pl.BlockSpec(memory_space=pltpu.MemorySpace.VMEM),   # gamma/beta stack
            pl.BlockSpec(memory_space=pltpu.MemorySpace.VMEM),   # w5 row
            pl.BlockSpec(memory_space=pltpu.MemorySpace.SMEM),   # b5 scalar
        ],
        out_specs=pl.BlockSpec(memory_space=pltpu.MemorySpace.VMEM),
        scratch_shapes=[pltpu.VMEM((B, HIDDEN), jnp.bfloat16)],  # bf16 activation carry
    )(h, w_stack, gb_stack, w5_row, b5)


def init_params(key):
    """PyTorch-layout parameters.

    Linear i: weight (512, 512) stored as (in, out); bias (1, 512).
    BatchNorm i: gamma ones, beta zeros (PyTorch defaults), shape (1, 512).
    Final Linear: weight (512, 1), bias (1, 1).
    """
    params = []
    bound = 1.0 / jnp.sqrt(jnp.float32(HIDDEN))
    for _ in range(N_HIDDEN_LAYERS):
        key, kw, kb = jax.random.split(key, 3)
        w = jax.random.uniform(kw, (HIDDEN, HIDDEN), jnp.float32, -bound, bound)
        b = jax.random.uniform(kb, (1, HIDDEN), jnp.float32, -bound, bound)
        g = jnp.ones((1, HIDDEN), jnp.float32)
        be = jnp.zeros((1, HIDDEN), jnp.float32)
        params += [w, b, g, be]
    key, kw, kb = jax.random.split(key, 3)
    w5 = jax.random.uniform(kw, (HIDDEN, 1), jnp.float32, -bound, bound)
    b5 = jax.random.uniform(kb, (1, 1), jnp.float32, -bound, bound)
    params += [w5, b5]
    return tuple(params)


def pack_kernel_params(params):
    """Convert PyTorch-layout params into the fused kernel's operands."""
    ws, gbs = [], []
    for i in range(N_HIDDEN_LAYERS):
        w, _b, g, be = params[4 * i: 4 * i + 4]
        ws.append(w.astype(jnp.bfloat16))                 # bf16 weight storage
        gbs.append(jnp.stack([g.reshape(HIDDEN), be.reshape(HIDDEN)], axis=0))
        # _b (pre-BN Linear bias) intentionally dropped: it cancels exactly in
        # training-mode BatchNorm's (y - mean(y)).  NOTE: this is only valid
        # for training-mode (batch-statistics) BN; eval-mode running stats
        # would require keeping the bias.
    w5, b5 = params[16], params[17]
    return (
        jnp.stack(ws, axis=0),                            # (4, 512, 512) bf16
        jnp.stack(gbs, axis=0),                           # (4, 2, 512)   f32
        w5.reshape(1, HIDDEN).astype(jnp.float32),        # (1, 512)      f32
        b5.reshape(1).astype(jnp.float32),                # (1,)          f32 -> SMEM
    )


def reference_forward(h, params):
    """Pure-JAX f32 reference of the PyTorch forward (training-mode BN)."""
    x = h.astype(jnp.float32)
    for i in range(N_HIDDEN_LAYERS):
        w, b, g, be = params[4 * i: 4 * i + 4]
        y = x @ w + b
        mu = jnp.mean(y, axis=0, keepdims=True)
        var = jnp.mean((y - mu) ** 2, axis=0, keepdims=True)
        y = (y - mu) / jnp.sqrt(var + EPS)
        y = y * g + be
        x = jnp.where(y > 0, y, NEG_SLOPE * y)
    w5, b5 = params[16], params[17]
    return x @ w5 + b5


def reference_forward_bf16(h, params):
    """Reference mirroring the kernel's bf16 weight/activation quantization."""
    x = h.astype(jnp.bfloat16)
    for i in range(N_HIDDEN_LAYERS):
        w, _b, g, be = params[4 * i: 4 * i + 4]
        y = jnp.dot(x, w.astype(jnp.bfloat16), preferred_element_type=jnp.float32)
        mu = jnp.mean(y, axis=0, keepdims=True)
        var = jnp.mean((y - mu) ** 2, axis=0, keepdims=True)
        y = (y - mu) * (g * lax.rsqrt(var + EPS)) + be
        x = jnp.where(y > 0, y, NEG_SLOPE * y).astype(jnp.bfloat16)
    w5, b5 = params[16], params[17]
    return (jnp.sum(x.astype(jnp.float32) * w5.reshape(1, HIDDEN),
                    axis=-1, keepdims=True) + b5.reshape(1, 1))


if __name__ == "__main__":
    key = jax.random.PRNGKey(0)
    kp, kh = jax.random.split(key)
    params = init_params(kp)
    kernel_params = pack_kernel_params(params)

    B = 16  # BatchNorm1d (training mode) needs B > 1; 16 = one bf16 sublane tile.
    h = jax.random.normal(kh, (B, HIDDEN), jnp.float32)

    out = jax.block_until_ready(domain_classifier_forward(h, kernel_params))
    assert out.shape == (B, 1), out.shape

    # Tight check vs. a reference that mirrors the kernel's bf16 quantization.
    ref_bf16 = reference_forward_bf16(h, params)
    err_bf16 = float(jnp.max(jnp.abs(out - ref_bf16)))
    assert jnp.allclose(out, ref_bf16, atol=2e-2, rtol=2e-2), err_bf16

    # Loose check vs. the f32 PyTorch-faithful reference: the only deviation is
    # the deliberate bf16 weight/activation quantization (per perf review).
    ref_f32 = reference_forward(h, params)
    err_f32 = float(jnp.max(jnp.abs(out - ref_f32)))
    assert jnp.allclose(out, ref_f32, atol=2e-1, rtol=5e-2), err_f32

    print("KERNEL_OK")
</pallas_src>

<mosaic_0001>
module attributes {stable_mosaic.version = 11 : i64} {
  func.func @dann_domain_classifier_kernel(%arg0: memref<16x512xf32, #tpu.memory_space<vmem>>, %arg1: memref<4x512x512xbf16, #tpu.memory_space<vmem>>, %arg2: memref<4x2x512xf32, #tpu.memory_space<vmem>>, %arg3: memref<1x512xf32, #tpu.memory_space<vmem>>, %arg4: memref<1xf32, #tpu.memory_space<smem>>, %arg5: memref<16x1xf32, #tpu.memory_space<vmem>>, %arg6: memref<16x512xbf16, #tpu.memory_space<vmem>>) attributes {dimension_semantics = [], scalar_prefetch = 0 : i64, scratch_operands = 1 : i64, tpu.core_type = #tpu.core_type<tc>} {
    %c0 = arith.constant 0 : index
    %c0_0 = arith.constant 0 : index
    %0 = vector.load %arg0[%c0, %c0_0] : memref<16x512xf32, #tpu.memory_space<vmem>>, vector<16x512xf32>
    %1 = arith.truncf %0 : vector<16x512xf32> to vector<16x512xbf16>
    %c0_1 = arith.constant 0 : index
    %c0_2 = arith.constant 0 : index
    %2 = vector.load %arg6[%c0_1, %c0_2] : memref<16x512xbf16, #tpu.memory_space<vmem>>, vector<16x512xbf16>
    tpu.vector_store %arg6[%c0_1, %c0_2], %1 {strides = array<i32>} : memref<16x512xbf16, #tpu.memory_space<vmem>>, vector<16x512xbf16>,
    %c0_3 = arith.constant 0 : index
    %c0_4 = arith.constant 0 : index
    %3 = vector.load %arg6[%c0_3, %c0_4] : memref<16x512xbf16, #tpu.memory_space<vmem>>, vector<16x512xbf16>
    %c0_5 = arith.constant 0 : index
    %c0_6 = arith.constant 0 : index
    %c0_7 = arith.constant 0 : index
    %4 = vector.load %arg1[%c0_5, %c0_6, %c0_7] : memref<4x512x512xbf16, #tpu.memory_space<vmem>>, vector<1x512x512xbf16>
    %5 = vector.shape_cast %4 : vector<1x512x512xbf16> to vector<512x512xbf16>
    %cst = arith.constant dense<0.000000e+00> : vector<16x512xf32>
    %6 = tpu.matmul %3, %5, %cst {dimension_numbers = #tpu.dot_dimension_numbers<[1], [0], [0], [1], [0, 0, 1, 1], [], []>} : vector<16x512xbf16>, vector<512x512xbf16>, vector<16x512xf32> -> vector<16x512xf32>
    %cst_8 = arith.constant dense<0.000000e+00> : vector<512xf32>
    %7 = vector.multi_reduction <add>, %6, %cst_8 [0] : vector<16x512xf32> to vector<512xf32>
    %8 = vector.shape_cast %7 : vector<512xf32> to vector<1x512xf32>
    %cst_9 = arith.constant 1.600000e+01 : f32
    %9 = vector.broadcast %cst_9 : f32 to vector<1x512xf32>
    %10 = arith.divf %8, %9 : vector<1x512xf32>
    %11 = vector.broadcast %10 : vector<1x512xf32> to vector<16x512xf32>
    %12 = arith.subf %6, %11 : vector<16x512xf32>
    %13 = vector.broadcast %10 : vector<1x512xf32> to vector<16x512xf32>
    %14 = arith.subf %6, %13 : vector<16x512xf32>
    %15 = arith.mulf %12, %14 : vector<16x512xf32>
    %cst_10 = arith.constant dense<0.000000e+00> : vector<512xf32>
    %16 = vector.multi_reduction <add>, %15, %cst_10 [0] : vector<16x512xf32> to vector<512xf32>
    %17 = vector.shape_cast %16 : vector<512xf32> to vector<1x512xf32>
    %cst_11 = arith.constant 1.600000e+01 : f32
    %18 = vector.broadcast %cst_11 : f32 to vector<1x512xf32>
    %19 = arith.divf %17, %18 : vector<1x512xf32>
    %c0_12 = arith.constant 0 : index
    %c0_13 = arith.constant 0 : index
    %c0_14 = arith.constant 0 : index
    %20 = vector.load %arg2[%c0_12, %c0_13, %c0_14] : memref<4x2x512xf32, #tpu.memory_space<vmem>>, vector<1x2x512xf32>
    %21 = vector.shape_cast %20 : vector<1x2x512xf32> to vector<2x512xf32>
    %22 = vector.extract_strided_slice %21 {offsets = [0, 0], sizes = [1, 512], strides = [1, 1]} : vector<2x512xf32> to vector<1x512xf32>
    %cst_15 = arith.constant 9.99999974E-6 : f32
    %23 = vector.broadcast %cst_15 : f32 to vector<1x512xf32>
    %24 = arith.addf %19, %23 : vector<1x512xf32>
    %25 = math.rsqrt %24 : vector<1x512xf32>
    %26 = arith.mulf %22, %25 : vector<1x512xf32>
    %27 = vector.broadcast %10 : vector<1x512xf32> to vector<16x512xf32>
    %28 = arith.subf %6, %27 : vector<16x512xf32>
    %29 = vector.broadcast %26 : vector<1x512xf32> to vector<16x512xf32>
    %30 = arith.mulf %28, %29 : vector<16x512xf32>
    %31 = vector.extract_strided_slice %21 {offsets = [1, 0], sizes = [1, 512], strides = [1, 1]} : vector<2x512xf32> to vector<1x512xf32>
    %32 = vector.broadcast %31 : vector<1x512xf32> to vector<16x512xf32>
    %33 = arith.addf %30, %32 : vector<16x512xf32>
    %cst_16 = arith.constant 0.000000e+00 : f32
    %34 = vector.broadcast %cst_16 : f32 to vector<16x512xf32>
    %35 = arith.cmpf ogt, %33, %34 : vector<16x512xf32>
    %cst_17 = arith.constant 2.000000e-01 : f32
    %36 = vector.broadcast %cst_17 : f32 to vector<16x512xf32>
    %37 = arith.mulf %36, %33 : vector<16x512xf32>
    %38 = arith.select %35, %33, %37 : vector<16x512xi1>, vector<16x512xf32>
    %39 = arith.truncf %38 : vector<16x512xf32> to vector<16x512xbf16>
    %c0_18 = arith.constant 0 : index
    %c0_19 = arith.constant 0 : index
    %40 = vector.load %arg6[%c0_18, %c0_19] : memref<16x512xbf16, #tpu.memory_space<vmem>>, vector<16x512xbf16>
    tpu.vector_store %arg6[%c0_18, %c0_19], %39 {strides = array<i32>} : memref<16x512xbf16, #tpu.memory_space<vmem>>, vector<16x512xbf16>,
    %c0_20 = arith.constant 0 : index
    %c0_21 = arith.constant 0 : index
    %41 = vector.load %arg6[%c0_20, %c0_21] : memref<16x512xbf16, #tpu.memory_space<vmem>>, vector<16x512xbf16>
    %c1 = arith.constant 1 : index
    %c0_22 = arith.constant 0 : index
    %c0_23 = arith.constant 0 : index
    %42 = vector.load %arg1[%c1, %c0_22, %c0_23] : memref<4x512x512xbf16, #tpu.memory_space<vmem>>, vector<1x512x512xbf16>
    %43 = vector.shape_cast %42 : vector<1x512x512xbf16> to vector<512x512xbf16>
    %cst_24 = arith.constant dense<0.000000e+00> : vector<16x512xf32>
    %44 = tpu.matmul %41, %43, %cst_24 {dimension_numbers = #tpu.dot_dimension_numbers<[1], [0], [0], [1], [0, 0, 1, 1], [], []>} : vector<16x512xbf16>, vector<512x512xbf16>, vector<16x512xf32> -> vector<16x512xf32>
    %cst_25 = arith.constant dense<0.000000e+00> : vector<512xf32>
    %45 = vector.multi_reduction <add>, %44, %cst_25 [0] : vector<16x512xf32> to vector<512xf32>
    %46 = vector.shape_cast %45 : vector<512xf32> to vector<1x512xf32>
    %cst_26 = arith.constant 1.600000e+01 : f32
    %47 = vector.broadcast %cst_26 : f32 to vector<1x512xf32>
    %48 = arith.divf %46, %47 : vector<1x512xf32>
    %49 = vector.broadcast %48 : vector<1x512xf32> to vector<16x512xf32>
    %50 = arith.subf %44, %49 : vector<16x512xf32>
    %51 = vector.broadcast %48 : vector<1x512xf32> to vector<16x512xf32>
    %52 = arith.subf %44, %51 : vector<16x512xf32>
    %53 = arith.mulf %50, %52 : vector<16x512xf32>
    %cst_27 = arith.constant dense<0.000000e+00> : vector<512xf32>
    %54 = vector.multi_reduction <add>, %53, %cst_27 [0] : vector<16x512xf32> to vector<512xf32>
    %55 = vector.shape_cast %54 : vector<512xf32> to vector<1x512xf32>
    %cst_28 = arith.constant 1.600000e+01 : f32
    %56 = vector.broadcast %cst_28 : f32 to vector<1x512xf32>
    %57 = arith.divf %55, %56 : vector<1x512xf32>
    %c1_29 = arith.constant 1 : index
    %c0_30 = arith.constant 0 : index
    %c0_31 = arith.constant 0 : index
    %58 = vector.load %arg2[%c1_29, %c0_30, %c0_31] : memref<4x2x512xf32, #tpu.memory_space<vmem>>, vector<1x2x512xf32>
    %59 = vector.shape_cast %58 : vector<1x2x512xf32> to vector<2x512xf32>
    %60 = vector.extract_strided_slice %59 {offsets = [0, 0], sizes = [1, 512], strides = [1, 1]} : vector<2x512xf32> to vector<1x512xf32>
    %cst_32 = arith.constant 9.99999974E-6 : f32
    %61 = vector.broadcast %cst_32 : f32 to vector<1x512xf32>
    %62 = arith.addf %57, %61 : vector<1x512xf32>
    %63 = math.rsqrt %62 : vector<1x512xf32>
    %64 = arith.mulf %60, %63 : vector<1x512xf32>
    %65 = vector.broadcast %48 : vector<1x512xf32> to vector<16x512xf32>
    %66 = arith.subf %44, %65 : vector<16x512xf32>
    %67 = vector.broadcast %64 : vector<1x512xf32> to vector<16x512xf32>
    %68 = arith.mulf %66, %67 : vector<16x512xf32>
    %69 = vector.extract_strided_slice %59 {offsets = [1, 0], sizes = [1, 512], strides = [1, 1]} : vector<2x512xf32> to vector<1x512xf32>
    %70 = vector.broadcast %69 : vector<1x512xf32> to vector<16x512xf32>
    %71 = arith.addf %68, %70 : vector<16x512xf32>
    %cst_33 = arith.constant 0.000000e+00 : f32
    %72 = vector.broadcast %cst_33 : f32 to vector<16x512xf32>
    %73 = arith.cmpf ogt, %71, %72 : vector<16x512xf32>
    %cst_34 = arith.constant 2.000000e-01 : f32
    %74 = vector.broadcast %cst_34 : f32 to vector<16x512xf32>
    %75 = arith.mulf %74, %71 : vector<16x512xf32>
    %76 = arith.select %73, %71, %75 : vector<16x512xi1>, vector<16x512xf32>
    %77 = arith.truncf %76 : vector<16x512xf32> to vector<16x512xbf16>
    %c0_35 = arith.constant 0 : index
    %c0_36 = arith.constant 0 : index
    %78 = vector.load %arg6[%c0_35, %c0_36] : memref<16x512xbf16, #tpu.memory_space<vmem>>, vector<16x512xbf16>
    tpu.vector_store %arg6[%c0_35, %c0_36], %77 {strides = array<i32>} : memref<16x512xbf16, #tpu.memory_space<vmem>>, vector<16x512xbf16>,
    %c0_37 = arith.constant 0 : index
    %c0_38 = arith.constant 0 : index
    %79 = vector.load %arg6[%c0_37, %c0_38] : memref<16x512xbf16, #tpu.memory_space<vmem>>, vector<16x512xbf16>
    %c2 = arith.constant 2 : index
    %c0_39 = arith.constant 0 : index
    %c0_40 = arith.constant 0 : index
    %80 = vector.load %arg1[%c2, %c0_39, %c0_40] : memref<4x512x512xbf16, #tpu.memory_space<vmem>>, vector<1x512x512xbf16>
    %81 = vector.shape_cast %80 : vector<1x512x512xbf16> to vector<512x512xbf16>
    %cst_41 = arith.constant dense<0.000000e+00> : vector<16x512xf32>
    %82 = tpu.matmul %79, %81, %cst_41 {dimension_numbers = #tpu.dot_dimension_numbers<[1], [0], [0], [1], [0, 0, 1, 1], [], []>} : vector<16x512xbf16>, vector<512x512xbf16>, vector<16x512xf32> -> vector<16x512xf32>
    %cst_42 = arith.constant dense<0.000000e+00> : vector<512xf32>
    %83 = vector.multi_reduction <add>, %82, %cst_42 [0] : vector<16x512xf32> to vector<512xf32>
    %84 = vector.shape_cast %83 : vector<512xf32> to vector<1x512xf32>
    %cst_43 = arith.constant 1.600000e+01 : f32
    %85 = vector.broadcast %cst_43 : f32 to vector<1x512xf32>
    %86 = arith.divf %84, %85 : vector<1x512xf32>
    %87 = vector.broadcast %86 : vector<1x512xf32> to vector<16x512xf32>
    %88 = arith.subf %82, %87 : vector<16x512xf32>
    %89 = vector.broadcast %86 : vector<1x512xf32> to vector<16x512xf32>
    %90 = arith.subf %82, %89 : vector<16x512xf32>
    %91 = arith.mulf %88, %90 : vector<16x512xf32>
    %cst_44 = arith.constant dense<0.000000e+00> : vector<512xf32>
    %92 = vector.multi_reduction <add>, %91, %cst_44 [0] : vector<16x512xf32> to vector<512xf32>
    %93 = vector.shape_cast %92 : vector<512xf32> to vector<1x512xf32>
    %cst_45 = arith.constant 1.600000e+01 : f32
    %94 = vector.broadcast %cst_45 : f32 to vector<1x512xf32>
    %95 = arith.divf %93, %94 : vector<1x512xf32>
    %c2_46 = arith.constant 2 : index
    %c0_47 = arith.constant 0 : index
    %c0_48 = arith.constant 0 : index
    %96 = vector.load %arg2[%c2_46, %c0_47, %c0_48] : memref<4x2x512xf32, #tpu.memory_space<vmem>>, vector<1x2x512xf32>
    %97 = vector.shape_cast %96 : vector<1x2x512xf32> to vector<2x512xf32>
    %98 = vector.extract_strided_slice %97 {offsets = [0, 0], sizes = [1, 512], strides = [1, 1]} : vector<2x512xf32> to vector<1x512xf32>
    %cst_49 = arith.constant 9.99999974E-6 : f32
    %99 = vector.broadcast %cst_49 : f32 to vector<1x512xf32>
    %100 = arith.addf %95, %99 : vector<1x512xf32>
    %101 = math.rsqrt %100 : vector<1x512xf32>
    %102 = arith.mulf %98, %101 : vector<1x512xf32>
    %103 = vector.broadcast %86 : vector<1x512xf32> to vector<16x512xf32>
    %104 = arith.subf %82, %103 : vector<16x512xf32>
    %105 = vector.broadcast %102 : vector<1x512xf32> to vector<16x512xf32>
    %106 = arith.mulf %104, %105 : vector<16x512xf32>
    %107 = vector.extract_strided_slice %97 {offsets = [1, 0], sizes = [1, 512], strides = [1, 1]} : vector<2x512xf32> to vector<1x512xf32>
    %108 = vector.broadcast %107 : vector<1x512xf32> to vector<16x512xf32>
    %109 = arith.addf %106, %108 : vector<16x512xf32>
    %cst_50 = arith.constant 0.000000e+00 : f32
    %110 = vector.broadcast %cst_50 : f32 to vector<16x512xf32>
    %111 = arith.cmpf ogt, %109, %110 : vector<16x512xf32>
    %cst_51 = arith.constant 2.000000e-01 : f32
    %112 = vector.broadcast %cst_51 : f32 to vector<16x512xf32>
    %113 = arith.mulf %112, %109 : vector<16x512xf32>
    %114 = arith.select %111, %109, %113 : vector<16x512xi1>, vector<16x512xf32>
    %115 = arith.truncf %114 : vector<16x512xf32> to vector<16x512xbf16>
    %c0_52 = arith.constant 0 : index
    %c0_53 = arith.constant 0 : index
    %116 = vector.load %arg6[%c0_52, %c0_53] : memref<16x512xbf16, #tpu.memory_space<vmem>>, vector<16x512xbf16>
    tpu.vector_store %arg6[%c0_52, %c0_53], %115 {strides = array<i32>} : memref<16x512xbf16, #tpu.memory_space<vmem>>, vector<16x512xbf16>,
    %c0_54 = arith.constant 0 : index
    %c0_55 = arith.constant 0 : index
    %117 = vector.load %arg6[%c0_54, %c0_55] : memref<16x512xbf16, #tpu.memory_space<vmem>>, vector<16x512xbf16>
    %c3 = arith.constant 3 : index
    %c0_56 = arith.constant 0 : index
    %c0_57 = arith.constant 0 : index
    %118 = vector.load %arg1[%c3, %c0_56, %c0_57] : memref<4x512x512xbf16, #tpu.memory_space<vmem>>, vector<1x512x512xbf16>
    %119 = vector.shape_cast %118 : vector<1x512x512xbf16> to vector<512x512xbf16>
    %cst_58 = arith.constant dense<0.000000e+00> : vector<16x512xf32>
    %120 = tpu.matmul %117, %119, %cst_58 {dimension_numbers = #tpu.dot_dimension_numbers<[1], [0], [0], [1], [0, 0, 1, 1], [], []>} : vector<16x512xbf16>, vector<512x512xbf16>, vector<16x512xf32> -> vector<16x512xf32>
    %cst_59 = arith.constant dense<0.000000e+00> : vector<512xf32>
    %121 = vector.multi_reduction <add>, %120, %cst_59 [0] : vector<16x512xf32> to vector<512xf32>
    %122 = vector.shape_cast %121 : vector<512xf32> to vector<1x512xf32>
    %cst_60 = arith.constant 1.600000e+01 : f32
    %123 = vector.broadcast %cst_60 : f32 to vector<1x512xf32>
    %124 = arith.divf %122, %123 : vector<1x512xf32>
    %125 = vector.broadcast %124 : vector<1x512xf32> to vector<16x512xf32>
    %126 = arith.subf %120, %125 : vector<16x512xf32>
    %127 = vector.broadcast %124 : vector<1x512xf32> to vector<16x512xf32>
    %128 = arith.subf %120, %127 : vector<16x512xf32>
    %129 = arith.mulf %126, %128 : vector<16x512xf32>
    %cst_61 = arith.constant dense<0.000000e+00> : vector<512xf32>
    %130 = vector.multi_reduction <add>, %129, %cst_61 [0] : vector<16x512xf32> to vector<512xf32>
    %131 = vector.shape_cast %130 : vector<512xf32> to vector<1x512xf32>
    %cst_62 = arith.constant 1.600000e+01 : f32
    %132 = vector.broadcast %cst_62 : f32 to vector<1x512xf32>
    %133 = arith.divf %131, %132 : vector<1x512xf32>
    %c3_63 = arith.constant 3 : index
    %c0_64 = arith.constant 0 : index
    %c0_65 = arith.constant 0 : index
    %134 = vector.load %arg2[%c3_63, %c0_64, %c0_65] : memref<4x2x512xf32, #tpu.memory_space<vmem>>, vector<1x2x512xf32>
    %135 = vector.shape_cast %134 : vector<1x2x512xf32> to vector<2x512xf32>
    %136 = vector.extract_strided_slice %135 {offsets = [0, 0], sizes = [1, 512], strides = [1, 1]} : vector<2x512xf32> to vector<1x512xf32>
    %cst_66 = arith.constant 9.99999974E-6 : f32
    %137 = vector.broadcast %cst_66 : f32 to vector<1x512xf32>
    %138 = arith.addf %133, %137 : vector<1x512xf32>
    %139 = math.rsqrt %138 : vector<1x512xf32>
    %140 = arith.mulf %136, %139 : vector<1x512xf32>
    %141 = vector.broadcast %124 : vector<1x512xf32> to vector<16x512xf32>
    %142 = arith.subf %120, %141 : vector<16x512xf32>
    %143 = vector.broadcast %140 : vector<1x512xf32> to vector<16x512xf32>
    %144 = arith.mulf %142, %143 : vector<16x512xf32>
    %145 = vector.extract_strided_slice %135 {offsets = [1, 0], sizes = [1, 512], strides = [1, 1]} : vector<2x512xf32> to vector<1x512xf32>
    %146 = vector.broadcast %145 : vector<1x512xf32> to vector<16x512xf32>
    %147 = arith.addf %144, %146 : vector<16x512xf32>
    %cst_67 = arith.constant 0.000000e+00 : f32
    %148 = vector.broadcast %cst_67 : f32 to vector<16x512xf32>
    %149 = arith.cmpf ogt, %147, %148 : vector<16x512xf32>
    %cst_68 = arith.constant 2.000000e-01 : f32
    %150 = vector.broadcast %cst_68 : f32 to vector<16x512xf32>
    %151 = arith.mulf %150, %147 : vector<16x512xf32>
    %152 = arith.select %149, %147, %151 : vector<16x512xi1>, vector<16x512xf32>
    %153 = arith.truncf %152 : vector<16x512xf32> to vector<16x512xbf16>
    %c0_69 = arith.constant 0 : index
    %c0_70 = arith.constant 0 : index
    %154 = vector.load %arg6[%c0_69, %c0_70] : memref<16x512xbf16, #tpu.memory_space<vmem>>, vector<16x512xbf16>
    tpu.vector_store %arg6[%c0_69, %c0_70], %153 {strides = array<i32>} : memref<16x512xbf16, #tpu.memory_space<vmem>>, vector<16x512xbf16>,
    %c0_71 = arith.constant 0 : index
    %c0_72 = arith.constant 0 : index
    %155 = vector.load %arg6[%c0_71, %c0_72] : memref<16x512xbf16, #tpu.memory_space<vmem>>, vector<16x512xbf16>
    %156 = arith.extf %155 : vector<16x512xbf16> to vector<16x512xf32>
    %c0_73 = arith.constant 0 : index
    %c0_74 = arith.constant 0 : index
    %157 = vector.load %arg3[%c0_73, %c0_74] : memref<1x512xf32, #tpu.memory_space<vmem>>, vector<1x512xf32>
    %158 = vector.broadcast %157 : vector<1x512xf32> to vector<16x512xf32>
    %159 = arith.mulf %156, %158 : vector<16x512xf32>
    %cst_75 = arith.constant dense<0.000000e+00> : vector<16xf32>
    %160 = vector.multi_reduction <add>, %159, %cst_75 [1] : vector<16x512xf32> to vector<16xf32>
    %161 = vector.shape_cast %160 : vector<16xf32> to vector<16x1xf32>
    %c0_76 = arith.constant 0 : index
    %162 = memref.load %arg4[%c0_76] : memref<1xf32, #tpu.memory_space<smem>>
    %163 = vector.broadcast %162 : f32 to vector<16x1xf32>
    %164 = arith.addf %161, %163 : vector<16x1xf32>
    %c0_77 = arith.constant 0 : index
    %c0_78 = arith.constant 0 : index
    %165 = vector.load %arg5[%c0_77, %c0_78] : memref<16x1xf32, #tpu.memory_space<vmem>>, vector<16x1xf32>
    tpu.vector_store %arg5[%c0_77, %c0_78], %164 {strides = array<i32>} : memref<16x1xf32, #tpu.memory_space<vmem>>, vector<16x1xf32>,
    return
  }
}

</mosaic_0001>

<bundles_post_ra>
// kernel: tpu_custom_call.1
= control target key start
LH: loop header
LB: loop body
LE: loop exit
PB: predicated region body
PF: predicated region fallthrough
CT: control target
= control target key end

     0   :  { %11 = vsyncpa [#allocation5], 0  ;;  %s6866_s0 = inlined_call_operand.hbm [shape: f32[16,512], index: 0, kind: input, shape index: {}]   ;;  %s6867_s1 = inlined_call_operand.hbm [shape: bf16[4,512,512], index: 1, kind: input, shape index: {}]   ;;  %s6868_s2 = inlined_call_operand.hbm [shape: f32[4,2,512], index: 2, kind: input, shape index: {}]   ;;  %s6869_s3 = inlined_call_operand.hbm [shape: f32[1,512], index: 3, kind: input, shape index: {}]   ;;  %s6870_s4 = inlined_call_operand.<no memory space> [shape: f32[1], index: 4, kind: input, shape index: {}]   ;;  %s6871_s5 = inlined_call_operand.vmem [shape: f32[16,1], index: 5, kind: output, shape index: {}]  }
   0x1   :  { %12 = vsyncpa [#allocation7], 0 }
   0x2   :  { %13 = vsyncpa [#allocation10], 0  ;;  %s6536_s18 = smov [#allocation6]  }
   0x3   :  { %s31_s19 = sshll.u32 %s6536_s18, 4  ;;  %s32_s19 = int_to_ptr.vmem [resolvable:$true] %s31_s19 }
   0x4   :  { %s6458_s20 = scalar_lea.vmem %s32_s19, 65536  ;;  %p6463_p1 = scmp.lt.s32.totalorder %s32_s19, %s32_s19 }
   0x5   :  { %p6459_p0 = scmp.ne.s32.totalorder %s32_s19, %s6458_s20  ;;  %p6464_p2 = scmp.lt.s32.totalorder %s6458_s20, %s6458_s20 }
   0x7   :  { %p6465_p3 = por %p6464_p2, %p6463_p1 }
   0x9   :  { %p6466_p4 = pnand %p6465_p3, %p6459_p0 }
   0xb   :  { %6469 = shalt.err (!%p6466_p4)
}
   0xc   :  { %s6537_s21 = smov 256   ;;  %s6538_s22 = smov 16  }
   0xd   :  { %37 = dma.hbm_to_vmem [thread:$0]  %s6867_s1, 65536, %s32_s19, [#allocation7], %s6537_s21, %s6537_s21, %s6538_s22  }
   0xe   :  { %s6539_s25 = smov [#allocation4]  }
   0xf   :  { %s19_s26 = sshll.u32 %s6539_s25, 4  ;;  %s20_s26 = int_to_ptr.vmem [resolvable:$true] %s19_s26 }
  0x10   :  { %s6478_s27 = scalar_lea.vmem %s20_s26, 1024  ;;  %p6483_p6 = scmp.lt.s32.totalorder %s20_s26, %s20_s26 }
  0x11   :  { %p6479_p5 = scmp.ne.s32.totalorder %s20_s26, %s6478_s27  ;;  %p6484_p7 = scmp.lt.s32.totalorder %s6478_s27, %s6478_s27 }
  0x13   :  { %p6485_p8 = por %p6484_p7, %p6483_p6 }
  0x15   :  { %p6486_p9 = pnand %p6485_p8, %p6479_p5 }
  0x17   :  { %6489 = shalt.err (!%p6486_p9)
}
  0x18   :  { %s6540_s28 = smov 512   ;;  %s6541_s29 = smov 32  }
  0x19   :  { %25 = dma.hbm_to_vmem [thread:$0]  %s6866_s0, 1024, %s20_s26, [#allocation5], %s6540_s28, %s6540_s28, %s6541_s29  }
  0x1a   :  { %s6542_s7 = smov [#allocation8]  }
  0x1b   :  { %s43_s8 = sshll.u32 %s6542_s7, 4  ;;  %s44_s8 = int_to_ptr.vmem [resolvable:$true] %s43_s8 }
  0x1c   :  { %s6498_s1 = scalar_lea.vmem %s44_s8, 512  ;;  %p6503_p11 = scmp.lt.s32.totalorder %s44_s8, %s44_s8 }
  0x1d   :  { %p6499_p10 = scmp.ne.s32.totalorder %s44_s8, %s6498_s1  ;;  %p6504_p12 = scmp.lt.s32.totalorder %s6498_s1, %s6498_s1 }
  0x1f   :  { %p6505_p13 = por %p6504_p12, %p6503_p11 }
  0x21   :  { %p6506_p0 = pnand %p6505_p13, %p6499_p10 }
  0x23   :  { %6509 = shalt.err (!%p6506_p0)
}
  0x24   :  { %s6543_s9 = smov 128   ;;  %s6544_s10 = smov 8  }
  0x25   :  { %49 = dma.hbm_to_vmem [thread:$0]  %s6868_s2, 512, %s44_s8, [#allocation7], %s6543_s9, %s6543_s9, %s6544_s10  }
  0x26   :  { %s6545_s13 = smov [#allocation9]  }
  0x27   :  { %s56_s14 = sshll.u32 %s6545_s13, 4  ;;  %s57_s14 = int_to_ptr.vmem [resolvable:$true] %s56_s14 }
  0x28   :  { %s6518_s0 = scalar_lea.vmem %s57_s14, 64  ;;  %p6523_p2 = scmp.lt.s32.totalorder %s57_s14, %s57_s14 }
  0x29   :  { %p6519_p1 = scmp.ne.s32.totalorder %s57_s14, %s6518_s0  ;;  %p6524_p3 = scmp.lt.s32.totalorder %s6518_s0, %s6518_s0 }
  0x2b   :  { %p6525_p4 = por %p6524_p3, %p6523_p2 }
  0x2d   :  { %p6526_p5 = pnand %p6525_p4, %p6519_p1 }
  0x2f   :  { %6529 = shalt.err (!%p6526_p5)
}
  0x30   :  { %59 = dma.hbm_to_vmem [thread:$0]  %s6869_s3, 64, %s57_s14, [#allocation10]  }
  0x31   :  { %6530 = dma.done.wait [#allocation5], 1024  }
  0x32   :  { %6531 = vsyncadd [#allocation5], 4294966272 }
  0x33   :  { %6532 = dma.done.wait [#allocation7], 66048  }
  0x34   :  { %6533 = vsyncadd [#allocation7], 4294901248 }
  0x35   :  { %6534 = dma.done.wait [#allocation10], 64  }
  0x36   :  { %6535 = vsyncadd [#allocation10], 4294967232  ;;  %v5650_v0 = vld [vmem:[#allocation6 + $0xe4] ss:$16 sps:$4 sm:$0xff]   ;;  %v5654_v2 = vld [vmem:[#allocation6 + $0xe0] ss:$16 sps:$4 sm:$0xff]  }
  0x37   :  { %v5652_v1 = vld [vmem:[#allocation6 + $0x2e4] ss:$16 sps:$4 sm:$0xff]   ;;  %902 = vmatprep.subr.bf16.mxu0 %v5650_v0  ;;  %v5655_v3 = vld [vmem:[#allocation6 + $0x2e0] ss:$16 sps:$4 sm:$0xff]   ;;  %v75_v46 = vld [vmem:[#allocation4 + $0x8] sm:$0xff] }
  0x38   :  { %945 = vmatprep.subr.bf16.mxu1 %v5652_v1  ;;  %v5656_v4 = vld [vmem:[#allocation6 + $0xc4] ss:$16 sps:$4 sm:$0xff]   ;;  %903 = vmatpush1.bf16.msra.mxu0 %v5654_v2  ;;  %v5660_v6 = vld [vmem:[#allocation6 + $0xc0] ss:$16 sps:$4 sm:$0xff]   ;;  %v79_v47 = vld [vmem:[#allocation4 + $0x28] sm:$0xff] }
  0x39   :  { %946 = vmatpush1.bf16.msra.mxu1 %v5655_v3  ;;  %v5658_v5 = vld [vmem:[#allocation6 + $0x2c4] ss:$16 sps:$4 sm:$0xff]   ;;  %904 = vmatprep.subr.bf16.mxu0 %v5656_v4  ;;  %v5661_v7 = vld [vmem:[#allocation6 + $0x2c0] ss:$16 sps:$4 sm:$0xff]   ;;  %v77_v48 = vld [vmem:[#allocation4 + $0x18] sm:$0xff]  ;;  %v5624_v53 = vpack.c.bf16 %v79_v47, %v75_v46 }
  0x3a   :  { %947 = vmatprep.subr.bf16.mxu1 %v5658_v5  ;;  %v5662_v8 = vld [vmem:[#allocation6 + $0xa4] ss:$16 sps:$4 sm:$0xff]   ;;  %v5666_v10 = vld [vmem:[#allocation6 + $0xa0] ss:$16 sps:$4 sm:$0xff]   ;;  %v81_v49 = vld [vmem:[#allocation4 + $0x38] sm:$0xff] }
  0x3b   :  { %v5664_v9 = vld [vmem:[#allocation6 + $0x2a4] ss:$16 sps:$4 sm:$0xff]   ;;  %v5667_v11 = vld [vmem:[#allocation6 + $0x2a0] ss:$16 sps:$4 sm:$0xff]   ;;  %v5626_v54 = vpack.c.bf16 %v81_v49, %v77_v48  ;;  %934 = vmatprep.mubr.bf16.mxu0 %v5624_v53  ;;  %v5794_v46 = vld [vmem:[#allocation6 + $0x1e8] ss:$16 sps:$4 sm:$0xff]  }
  0x3c   :  { %905 = vmatpush1.bf16.msra.mxu0 %v5660_v6  ;;  %v5668_v12 = vld [vmem:[#allocation6 + $0x84] ss:$16 sps:$4 sm:$0xff]   ;;  %v5672_v14 = vld [vmem:[#allocation6 + $0x80] ss:$16 sps:$4 sm:$0xff]   ;;  %v5797_v47 = vld [vmem:[#allocation6 + $0x3e8] ss:$16 sps:$4 sm:$0xff]  }
  0x3d   :  { %948 = vmatpush1.bf16.msra.mxu1 %v5661_v7  ;;  %906 = vmatprep.subr.bf16.mxu0 %v5662_v8  ;;  %v5670_v13 = vld [vmem:[#allocation6 + $0x284] ss:$16 sps:$4 sm:$0xff]   ;;  %v5673_v15 = vld [vmem:[#allocation6 + $0x280] ss:$16 sps:$4 sm:$0xff]   ;;  %v5802_v48 = vld [vmem:[#allocation6 + $0x1cc] ss:$16 sps:$4 sm:$0xff]  }
  0x3e   :  { %949 = vmatprep.subr.bf16.mxu1 %v5664_v9  ;;  %v5674_v16 = vld [vmem:[#allocation6 + $0x64] ss:$16 sps:$4 sm:$0xff]   ;;  %v5678_v18 = vld [vmem:[#allocation6 + $0x60] ss:$16 sps:$4 sm:$0xff]   ;;  %977 = vmatprep.mubr.bf16.mxu1 %v5626_v54  ;;  %v5805_v49 = vld [vmem:[#allocation6 + $0x3cc] ss:$16 sps:$4 sm:$0xff]  }
  0x3f   :  { %v5676_v17 = vld [vmem:[#allocation6 + $0x264] ss:$16 sps:$4 sm:$0xff]   ;;  %v5679_v19 = vld [vmem:[#allocation6 + $0x260] ss:$16 sps:$4 sm:$0xff]  }
  0x40   :  { %907 = vmatpush1.bf16.msra.mxu0 %v5666_v10  ;;  %v5680_v20 = vld [vmem:[#allocation6 + $0x44] ss:$16 sps:$4 sm:$0xff]   ;;  %v5684_v22 = vld [vmem:[#allocation6 + $0x40] ss:$16 sps:$4 sm:$0xff]   ;;  %v5748_v10 = vld [vmem:[#allocation6 + $0xec] ss:$16 sps:$4 sm:$0xff]  }
  0x41   :  { %950 = vmatpush1.bf16.msra.mxu1 %v5667_v11  ;;  %908 = vmatprep.subr.bf16.mxu0 %v5668_v12  ;;  %v5682_v21 = vld [vmem:[#allocation6 + $0x244] ss:$16 sps:$4 sm:$0xff]   ;;  %v5685_v23 = vld [vmem:[#allocation6 + $0x240] ss:$16 sps:$4 sm:$0xff]   ;;  %v5751_v11 = vld [vmem:[#allocation6 + $0x2ec] ss:$16 sps:$4 sm:$0xff]  }
  0x42   :  { %951 = vmatprep.subr.bf16.mxu1 %v5670_v13  ;;  %v5686_v24 = vld [vmem:[#allocation6 + $0x24] ss:$16 sps:$4 sm:$0xff]   ;;  %v5690_v26 = vld [vmem:[#allocation6 + $0x20] ss:$16 sps:$4 sm:$0xff]  }
  0x43   :  { %v5688_v25 = vld [vmem:[#allocation6 + $0x224] ss:$16 sps:$4 sm:$0xff]   ;;  %v5691_v27 = vld [vmem:[#allocation6 + $0x220] ss:$16 sps:$4 sm:$0xff]  }
  0x44   :  { %909 = vmatpush1.bf16.msra.mxu0 %v5672_v14  ;;  %v5692_v28 = vld [vmem:[#allocation6 + $0x4] ss:$16 sps:$4 sm:$0xff]   ;;  %v5696_v30 = vld [vmem:[#allocation6] ss:$16 sps:$4 sm:$0xff]   ;;  %v5746_v14 = vld [vmem:[#allocation6 + $0xe8] ss:$16 sps:$4 sm:$0xff]  }
  0x45   :  { %952 = vmatpush1.bf16.msra.mxu1 %v5673_v15  ;;  %910 = vmatprep.subr.bf16.mxu0 %v5674_v16  ;;  %v5694_v29 = vld [vmem:[#allocation6 + $0x204] ss:$16 sps:$4 sm:$0xff]   ;;  %v5697_v31 = vld [vmem:[#allocation6 + $0x200] ss:$16 sps:$4 sm:$0xff]   ;;  %v5749_v15 = vld [vmem:[#allocation6 + $0x2e8] ss:$16 sps:$4 sm:$0xff]  }
  0x46   :  { %953 = vmatprep.subr.bf16.mxu1 %v5676_v17  ;;  %v5698_v32 = vld [vmem:[#allocation6 + $0x1e4] ss:$16 sps:$4 sm:$0xff]   ;;  %v5702_v34 = vld [vmem:[#allocation6 + $0x1e0] ss:$16 sps:$4 sm:$0xff]   ;;  %v5754_v16 = vld [vmem:[#allocation6 + $0xcc] ss:$16 sps:$4 sm:$0xff]  }
  0x47   :  { %v5700_v33 = vld [vmem:[#allocation6 + $0x3e4] ss:$16 sps:$4 sm:$0xff]   ;;  %v5703_v35 = vld [vmem:[#allocation6 + $0x3e0] ss:$16 sps:$4 sm:$0xff]   ;;  %v5757_v17 = vld [vmem:[#allocation6 + $0x2cc] ss:$16 sps:$4 sm:$0xff]  }
  0x48   :  { %911 = vmatpush1.bf16.msra.mxu0 %v5678_v18  ;;  %v5704_v36 = vld [vmem:[#allocation6 + $0x1c4] ss:$16 sps:$4 sm:$0xff]   ;;  %v5708_v38 = vld [vmem:[#allocation6 + $0x1c0] ss:$16 sps:$4 sm:$0xff]   ;;  %v5752_v18 = vld [vmem:[#allocation6 + $0xc8] ss:$16 sps:$4 sm:$0xff]  }
  0x49   :  { %954 = vmatpush1.bf16.msra.mxu1 %v5679_v19  ;;  %912 = vmatprep.subr.bf16.mxu0 %v5680_v20  ;;  %v5706_v37 = vld [vmem:[#allocation6 + $0x3c4] ss:$16 sps:$4 sm:$0xff]   ;;  %v5709_v39 = vld [vmem:[#allocation6 + $0x3c0] ss:$16 sps:$4 sm:$0xff]   ;;  %v5755_v19 = vld [vmem:[#allocation6 + $0x2c8] ss:$16 sps:$4 sm:$0xff]  }
  0x4a   :  { %955 = vmatprep.subr.bf16.mxu1 %v5682_v21  ;;  %v5710_v40 = vld [vmem:[#allocation6 + $0x1a4] ss:$16 sps:$4 sm:$0xff]   ;;  %v5714_v42 = vld [vmem:[#allocation6 + $0x1a0] ss:$16 sps:$4 sm:$0xff]   ;;  %v5760_v20 = vld [vmem:[#allocation6 + $0xac] ss:$16 sps:$4 sm:$0xff]  }
  0x4b   :  { %v5712_v41 = vld [vmem:[#allocation6 + $0x3a4] ss:$16 sps:$4 sm:$0xff]   ;;  %v5715_v43 = vld [vmem:[#allocation6 + $0x3a0] ss:$16 sps:$4 sm:$0xff]   ;;  %v5763_v21 = vld [vmem:[#allocation6 + $0x2ac] ss:$16 sps:$4 sm:$0xff]  }
  0x4c   :  { %913 = vmatpush1.bf16.msra.mxu0 %v5684_v22  ;;  %v5716_v44 = vld [vmem:[#allocation6 + $0x184] ss:$16 sps:$4 sm:$0xff]   ;;  %v5720_v50 = vld [vmem:[#allocation6 + $0x180] ss:$16 sps:$4 sm:$0xff]   ;;  %v5758_v22 = vld [vmem:[#allocation6 + $0xa8] ss:$16 sps:$4 sm:$0xff]  }
  0x4d   :  { %956 = vmatpush1.bf16.msra.mxu1 %v5685_v23  ;;  %914 = vmatprep.subr.bf16.mxu0 %v5686_v24  ;;  %v5718_v45 = vld [vmem:[#allocation6 + $0x384] ss:$16 sps:$4 sm:$0xff]   ;;  %v5721_v51 = vld [vmem:[#allocation6 + $0x380] ss:$16 sps:$4 sm:$0xff]   ;;  %v5761_v23 = vld [vmem:[#allocation6 + $0x2a8] ss:$16 sps:$4 sm:$0xff]  }
  0x4e   :  { %957 = vmatprep.subr.bf16.mxu1 %v5688_v25  ;;  %v5722_v52 = vld [vmem:[#allocation6 + $0x164] ss:$16 sps:$4 sm:$0xff]   ;;  %v5726_v56 = vld [vmem:[#allocation6 + $0x160] ss:$16 sps:$4 sm:$0xff]   ;;  %v5766_v24 = vld [vmem:[#allocation6 + $0x8c] ss:$16 sps:$4 sm:$0xff]  }
  0x4f   :  { %v5724_v55 = vld [vmem:[#allocation6 + $0x364] ss:$16 sps:$4 sm:$0xff]   ;;  %v5727_v57 = vld [vmem:[#allocation6 + $0x360] ss:$16 sps:$4 sm:$0xff]   ;;  %v5769_v25 = vld [vmem:[#allocation6 + $0x28c] ss:$16 sps:$4 sm:$0xff]  }
  0x50   :  { %915 = vmatpush1.bf16.msra.mxu0 %v5690_v26  ;;  %v5728_v58 = vld [vmem:[#allocation6 + $0x144] ss:$16 sps:$4 sm:$0xff]   ;;  %v5732_v60 = vld [vmem:[#allocation6 + $0x140] ss:$16 sps:$4 sm:$0xff]   ;;  %v5764_v26 = vld [vmem:[#allocation6 + $0x88] ss:$16 sps:$4 sm:$0xff]  }
  0x51   :  { %958 = vmatpush1.bf16.msra.mxu1 %v5691_v27  ;;  %916 = vmatprep.subr.bf16.mxu0 %v5692_v28  ;;  %v5730_v59 = vld [vmem:[#allocation6 + $0x344] ss:$16 sps:$4 sm:$0xff]   ;;  %v5733_v61 = vld [vmem:[#allocation6 + $0x340] ss:$16 sps:$4 sm:$0xff]   ;;  %v5767_v27 = vld [vmem:[#allocation6 + $0x288] ss:$16 sps:$4 sm:$0xff]  }
  0x52   :  { %959 = vmatprep.subr.bf16.mxu1 %v5694_v29  ;;  %v5734_v62 = vld [vmem:[#allocation6 + $0x124] ss:$16 sps:$4 sm:$0xff]   ;;  %v5738_v0 = vld [vmem:[#allocation6 + $0x120] ss:$16 sps:$4 sm:$0xff]   ;;  %v5772_v28 = vld [vmem:[#allocation6 + $0x6c] ss:$16 sps:$4 sm:$0xff]  }
  0x53   :  { %v5736_v63 = vld [vmem:[#allocation6 + $0x324] ss:$16 sps:$4 sm:$0xff]   ;;  %v5739_v1 = vld [vmem:[#allocation6 + $0x320] ss:$16 sps:$4 sm:$0xff]   ;;  %v5775_v29 = vld [vmem:[#allocation6 + $0x26c] ss:$16 sps:$4 sm:$0xff]  }
  0x54   :  { %917 = vmatpush1.bf16.msra.mxu0 %v5696_v30  ;;  %v5740_v2 = vld [vmem:[#allocation6 + $0x104] ss:$16 sps:$4 sm:$0xff]   ;;  %v5744_v4 = vld [vmem:[#allocation6 + $0x100] ss:$16 sps:$4 sm:$0xff]   ;;  %v5770_v30 = vld [vmem:[#allocation6 + $0x68] ss:$16 sps:$4 sm:$0xff]  }
  0x55   :  { %960 = vmatpush1.bf16.msra.mxu1 %v5697_v31  ;;  %918 = vmatprep.subr.bf16.mxu0 %v5698_v32  ;;  %v5742_v3 = vld [vmem:[#allocation6 + $0x304] ss:$16 sps:$4 sm:$0xff]   ;;  %v5745_v5 = vld [vmem:[#allocation6 + $0x300] ss:$16 sps:$4 sm:$0xff]   ;;  %v5773_v31 = vld [vmem:[#allocation6 + $0x268] ss:$16 sps:$4 sm:$0xff]  }
  0x56   :  { %961 = vmatprep.subr.bf16.mxu1 %v5700_v33  ;;  %v74_v6 = vld [vmem:[#allocation4] sm:$0xff]  ;;  %v76_v8 = vld [vmem:[#allocation4 + $0x10] sm:$0xff]  ;;  %v5778_v32 = vld [vmem:[#allocation6 + $0x4c] ss:$16 sps:$4 sm:$0xff]  }
  0x57   :  { %v78_v7 = vld [vmem:[#allocation4 + $0x20] sm:$0xff]  ;;  %v80_v9 = vld [vmem:[#allocation4 + $0x30] sm:$0xff]  ;;  %v5781_v33 = vld [vmem:[#allocation6 + $0x24c] ss:$16 sps:$4 sm:$0xff]  }
  0x58   :  { %919 = vmatpush2.bf16.msra.mxu0 %v5702_v34  ;;  %v6589_v12 = vpack.c.bf16 %v78_v7, %v74_v6  ;;  %v6591_v13 = vpack.c.bf16 %v80_v9, %v76_v8  ;;  %v5776_v34 = vld [vmem:[#allocation6 + $0x48] ss:$16 sps:$4 sm:$0xff]   ;;  %v5838_v8 = vld [vmem:[#allocation6 + $0x10c] ss:$16 sps:$4 sm:$0xff]  }
  0x59   :  { %962 = vmatpush2.bf16.msra.mxu1 %v5703_v35  ;;  %920 = vmatprep.subr.bf16.mxu0 %v5704_v36  ;;  %v5779_v35 = vld [vmem:[#allocation6 + $0x248] ss:$16 sps:$4 sm:$0xff]   ;;  %v5784_v36 = vld [vmem:[#allocation6 + $0x2c] ss:$16 sps:$4 sm:$0xff]  }
  0x5a   :  { %963 = vmatprep.subr.bf16.mxu1 %v5706_v37  ;;  %v5787_v37 = vld [vmem:[#allocation6 + $0x22c] ss:$16 sps:$4 sm:$0xff]   ;;  %v5830_v6 = vld [vmem:[#allocation6 + $0x128] ss:$16 sps:$4 sm:$0xff]  }
  0x5b   :  { %v5833_v7 = vld [vmem:[#allocation6 + $0x328] ss:$16 sps:$4 sm:$0xff]   ;;  %v5841_v9 = vld [vmem:[#allocation6 + $0x30c] ss:$16 sps:$4 sm:$0xff]  }
  0x5c   :  { %921 = vmatpush2.bf16.msra.mxu0 %v5708_v38  ;;  %v5782_v38 = vld [vmem:[#allocation6 + $0x28] ss:$16 sps:$4 sm:$0xff]  }
  0x5d   :  { %964 = vmatpush2.bf16.msra.mxu1 %v5709_v39  ;;  %922 = vmatprep.subr.bf16.mxu0 %v5710_v40  ;;  %v5785_v39 = vld [vmem:[#allocation6 + $0x228] ss:$16 sps:$4 sm:$0xff]   ;;  %v5790_v40 = vld [vmem:[#allocation6 + $0xc] ss:$16 sps:$4 sm:$0xff]  }
  0x5e   :  { %965 = vmatprep.subr.bf16.mxu1 %v5712_v41  ;;  %v5793_v41 = vld [vmem:[#allocation6 + $0x20c] ss:$16 sps:$4 sm:$0xff]  }
  0x60   :  { %923 = vmatpush2.bf16.msra.mxu0 %v5714_v42  ;;  %v5788_v42 = vld [vmem:[#allocation6 + $0x8] ss:$16 sps:$4 sm:$0xff]  }
  0x61   :  { %966 = vmatpush2.bf16.msra.mxu1 %v5715_v43  ;;  %924 = vmatprep.subr.bf16.mxu0 %v5716_v44  ;;  %v5791_v43 = vld [vmem:[#allocation6 + $0x208] ss:$16 sps:$4 sm:$0xff]   ;;  %v5796_v44 = vld [vmem:[#allocation6 + $0x1ec] ss:$16 sps:$4 sm:$0xff]  }
  0x62   :  { %967 = vmatprep.subr.bf16.mxu1 %v5718_v45  ;;  %v5799_v45 = vld [vmem:[#allocation6 + $0x3ec] ss:$16 sps:$4 sm:$0xff]  }
  0x64   :  { %925 = vmatpush2.bf16.msra.mxu0 %v5720_v50  ;;  %v5800_v50 = vld [vmem:[#allocation6 + $0x1c8] ss:$16 sps:$4 sm:$0xff]  }
  0x65   :  { %968 = vmatpush2.bf16.msra.mxu1 %v5721_v51  ;;  %926 = vmatprep.subr.bf16.mxu0 %v5722_v52  ;;  %v5803_v51 = vld [vmem:[#allocation6 + $0x3c8] ss:$16 sps:$4 sm:$0xff]   ;;  %v5808_v52 = vld [vmem:[#allocation6 + $0x1ac] ss:$16 sps:$4 sm:$0xff]  }
  0x66   :  { %969 = vmatprep.subr.bf16.mxu1 %v5724_v55  ;;  %v5809_v55 = vld [vmem:[#allocation6 + $0x3a8] ss:$16 sps:$4 sm:$0xff]  }
  0x68   :  { %927 = vmatpush2.bf16.msra.mxu0 %v5726_v56  ;;  %v5814_v56 = vld [vmem:[#allocation6 + $0x18c] ss:$16 sps:$4 sm:$0xff]  }
  0x69   :  { %970 = vmatpush2.bf16.msra.mxu1 %v5727_v57  ;;  %928 = vmatprep.subr.bf16.mxu0 %v5728_v58  ;;  %v5817_v57 = vld [vmem:[#allocation6 + $0x38c] ss:$16 sps:$4 sm:$0xff]   ;;  %v5812_v58 = vld [vmem:[#allocation6 + $0x188] ss:$16 sps:$4 sm:$0xff]  }
  0x6a   :  { %971 = vmatprep.subr.bf16.mxu1 %v5730_v59  ;;  %v5815_v59 = vld [vmem:[#allocation6 + $0x388] ss:$16 sps:$4 sm:$0xff]  }
  0x6c   :  { %929 = vmatpush2.bf16.msra.mxu0 %v5732_v60  ;;  %v5820_v60 = vld [vmem:[#allocation6 + $0x16c] ss:$16 sps:$4 sm:$0xff]  }
  0x6d   :  { %972 = vmatpush2.bf16.msra.mxu1 %v5733_v61  ;;  %930 = vmatprep.subr.bf16.mxu0 %v5734_v62  ;;  %v5823_v61 = vld [vmem:[#allocation6 + $0x36c] ss:$16 sps:$4 sm:$0xff]   ;;  %v5818_v62 = vld [vmem:[#allocation6 + $0x168] ss:$16 sps:$4 sm:$0xff]  }
  0x6e   :  { %973 = vmatprep.subr.bf16.mxu1 %v5736_v63  ;;  %v5821_v63 = vld [vmem:[#allocation6 + $0x368] ss:$16 sps:$4 sm:$0xff]  }
  0x70   :  { %931 = vmatpush2.bf16.msra.mxu0 %v5738_v0  ;;  %v5826_v0 = vld [vmem:[#allocation6 + $0x14c] ss:$16 sps:$4 sm:$0xff]  }
  0x71   :  { %974 = vmatpush2.bf16.msra.mxu1 %v5739_v1  ;;  %932 = vmatprep.subr.bf16.mxu0 %v5740_v2  ;;  %v5829_v1 = vld [vmem:[#allocation6 + $0x34c] ss:$16 sps:$4 sm:$0xff]   ;;  %v5824_v2 = vld [vmem:[#allocation6 + $0x148] ss:$16 sps:$4 sm:$0xff]  }
  0x72   :  { %975 = vmatprep.subr.bf16.mxu1 %v5742_v3  ;;  %v5827_v3 = vld [vmem:[#allocation6 + $0x348] ss:$16 sps:$4 sm:$0xff]  }
  0x74   :  { %933 = vmatpush2.bf16.msra.mxu0 %v5744_v4  ;;  %v5832_v4 = vld [vmem:[#allocation6 + $0x12c] ss:$16 sps:$4 sm:$0xff]  }
  0x75   :  { %976 = vmatpush2.bf16.msra.mxu1 %v5745_v5  ;;  %988 = vmatprep.subr.bf16.mxu0 %v5748_v10  ;;  %v5835_v5 = vld [vmem:[#allocation6 + $0x32c] ss:$16 sps:$4 sm:$0xff]   ;;  %v5836_v10 = vld [vmem:[#allocation6 + $0x108] ss:$16 sps:$4 sm:$0xff]  }
  0x76   :  { %1031 = vmatprep.subr.bf16.mxu1 %v5751_v11  ;;  %v5839_v11 = vld [vmem:[#allocation6 + $0x308] ss:$16 sps:$4 sm:$0xff]  }
  0x77   :  { %935 = vmatmul.mubr.bf16.vlgmr.msra.gmra.mxu0 %v6589_v12 }
  0x78   :  { %978 = vmatmul.mubr.bf16.vlgmr.msra.gmra.mxu1 %v6591_v13  ;;  %989 = vmatpush1.bf16.msra.mxu0 %v5746_v14  ;;  %v5844_v14 = vld [vmem:[#allocation6 + $0x4e4] ss:$16 sps:$4 sm:$0xff]  }
  0x79   :  { %1032 = vmatpush1.bf16.msra.mxu1 %v5749_v15  ;;  %990 = vmatprep.subr.bf16.mxu0 %v5754_v16  ;;  %v5847_v15 = vld [vmem:[#allocation6 + $0x6e4] ss:$16 sps:$4 sm:$0xff]   ;;  %v5842_v16 = vld [vmem:[#allocation6 + $0x4e0] ss:$16 sps:$4 sm:$0xff]  }
  0x7a   :  { %1033 = vmatprep.subr.bf16.mxu1 %v5757_v17  ;;  %1020 = vmatprep.mubr.bf16.mxu0 %v5624_v53  ;;  %v5811_v53 = vld [vmem:[#allocation6 + $0x3ac] ss:$16 sps:$4 sm:$0xff]   ;;  %v5845_v17 = vld [vmem:[#allocation6 + $0x6e0] ss:$16 sps:$4 sm:$0xff]  }
  0x7b   :  { %1063 = vmatprep.mubr.bf16.mxu1 %v5626_v54  ;;  %v5806_v54 = vld [vmem:[#allocation6 + $0x1a8] ss:$16 sps:$4 sm:$0xff]  }
  0x7c   :  { %991 = vmatpush1.bf16.msra.mxu0 %v5752_v18  ;;  %v5850_v18 = vld [vmem:[#allocation6 + $0x4c4] ss:$16 sps:$4 sm:$0xff]  }
  0x7d   :  { %1034 = vmatpush1.bf16.msra.mxu1 %v5755_v19  ;;  %992 = vmatprep.subr.bf16.mxu0 %v5760_v20  ;;  %v5853_v19 = vld [vmem:[#allocation6 + $0x6c4] ss:$16 sps:$4 sm:$0xff]   ;;  %v5848_v20 = vld [vmem:[#allocation6 + $0x4c0] ss:$16 sps:$4 sm:$0xff]  }
  0x7e   :  { %1035 = vmatprep.subr.bf16.mxu1 %v5763_v21  ;;  %v5851_v21 = vld [vmem:[#allocation6 + $0x6c0] ss:$16 sps:$4 sm:$0xff]  }
  0x80   :  { %993 = vmatpush1.bf16.msra.mxu0 %v5758_v22  ;;  %v5856_v22 = vld [vmem:[#allocation6 + $0x4a4] ss:$16 sps:$4 sm:$0xff]  }
  0x81   :  { %1036 = vmatpush1.bf16.msra.mxu1 %v5761_v23  ;;  %994 = vmatprep.subr.bf16.mxu0 %v5766_v24  ;;  %v5854_v23 = vld [vmem:[#allocation6 + $0x4a0] ss:$16 sps:$4 sm:$0xff]   ;;  %v5862_v24 = vld [vmem:[#allocation6 + $0x484] ss:$16 sps:$4 sm:$0xff]  }
  0x82   :  { %1037 = vmatprep.subr.bf16.mxu1 %v5769_v25  ;;  %v5865_v25 = vld [vmem:[#allocation6 + $0x684] ss:$16 sps:$4 sm:$0xff]  }
  0x84   :  { %995 = vmatpush1.bf16.msra.mxu0 %v5764_v26  ;;  %v5860_v26 = vld [vmem:[#allocation6 + $0x480] ss:$16 sps:$4 sm:$0xff]  }
  0x85   :  { %1038 = vmatpush1.bf16.msra.mxu1 %v5767_v27  ;;  %996 = vmatprep.subr.bf16.mxu0 %v5772_v28  ;;  %v5863_v27 = vld [vmem:[#allocation6 + $0x680] ss:$16 sps:$4 sm:$0xff]   ;;  %v5868_v28 = vld [vmem:[#allocation6 + $0x464] ss:$16 sps:$4 sm:$0xff]  }
  0x86   :  { %1039 = vmatprep.subr.bf16.mxu1 %v5775_v29  ;;  %v5871_v29 = vld [vmem:[#allocation6 + $0x664] ss:$16 sps:$4 sm:$0xff]  }
  0x88   :  { %997 = vmatpush1.bf16.msra.mxu0 %v5770_v30  ;;  %v5866_v30 = vld [vmem:[#allocation6 + $0x460] ss:$16 sps:$4 sm:$0xff]  }
  0x89   :  { %1040 = vmatpush1.bf16.msra.mxu1 %v5773_v31  ;;  %998 = vmatprep.subr.bf16.mxu0 %v5778_v32  ;;  %v5869_v31 = vld [vmem:[#allocation6 + $0x660] ss:$16 sps:$4 sm:$0xff]   ;;  %v5874_v32 = vld [vmem:[#allocation6 + $0x444] ss:$16 sps:$4 sm:$0xff]  }
  0x8a   :  { %1041 = vmatprep.subr.bf16.mxu1 %v5781_v33  ;;  %v5877_v33 = vld [vmem:[#allocation6 + $0x644] ss:$16 sps:$4 sm:$0xff]  }
  0x8c   :  { %999 = vmatpush1.bf16.msra.mxu0 %v5776_v34  ;;  %v5872_v34 = vld [vmem:[#allocation6 + $0x440] ss:$16 sps:$4 sm:$0xff]  }
  0x8d   :  { %1042 = vmatpush1.bf16.msra.mxu1 %v5779_v35  ;;  %1000 = vmatprep.subr.bf16.mxu0 %v5784_v36  ;;  %v5875_v35 = vld [vmem:[#allocation6 + $0x640] ss:$16 sps:$4 sm:$0xff]   ;;  %v5880_v36 = vld [vmem:[#allocation6 + $0x424] ss:$16 sps:$4 sm:$0xff]  }
  0x8e   :  { %1043 = vmatprep.subr.bf16.mxu1 %v5787_v37  ;;  %v5883_v37 = vld [vmem:[#allocation6 + $0x624] ss:$16 sps:$4 sm:$0xff]  }
  0x90   :  { %1001 = vmatpush1.bf16.msra.mxu0 %v5782_v38  ;;  %v5878_v38 = vld [vmem:[#allocation6 + $0x420] ss:$16 sps:$4 sm:$0xff]  }
  0x91   :  { %1044 = vmatpush1.bf16.msra.mxu1 %v5785_v39  ;;  %1002 = vmatprep.subr.bf16.mxu0 %v5790_v40  ;;  %v5881_v39 = vld [vmem:[#allocation6 + $0x620] ss:$16 sps:$4 sm:$0xff]   ;;  %v5886_v40 = vld [vmem:[#allocation6 + $0x404] ss:$16 sps:$4 sm:$0xff]  }
  0x92   :  { %1045 = vmatprep.subr.bf16.mxu1 %v5793_v41  ;;  %v5889_v41 = vld [vmem:[#allocation6 + $0x604] ss:$16 sps:$4 sm:$0xff]  }
  0x94   :  { %1003 = vmatpush1.bf16.msra.mxu0 %v5788_v42  ;;  %v5884_v42 = vld [vmem:[#allocation6 + $0x400] ss:$16 sps:$4 sm:$0xff]  }
  0x95   :  { %1046 = vmatpush1.bf16.msra.mxu1 %v5791_v43  ;;  %1004 = vmatprep.subr.bf16.mxu0 %v5796_v44  ;;  %v5887_v43 = vld [vmem:[#allocation6 + $0x600] ss:$16 sps:$4 sm:$0xff]   ;;  %v5892_v44 = vld [vmem:[#allocation6 + $0x5e4] ss:$16 sps:$4 sm:$0xff]  }
  0x96   :  { %1047 = vmatprep.subr.bf16.mxu1 %v5799_v45  ;;  %v5895_v45 = vld [vmem:[#allocation6 + $0x7e4] ss:$16 sps:$4 sm:$0xff]  }
  0x98   :  { %1005 = vmatpush2.bf16.msra.mxu0 %v5794_v46  ;;  %v5890_v46 = vld [vmem:[#allocation6 + $0x5e0] ss:$16 sps:$4 sm:$0xff]  }
  0x99   :  { %1048 = vmatpush2.bf16.msra.mxu1 %v5797_v47  ;;  %1006 = vmatprep.subr.bf16.mxu0 %v5802_v48  ;;  %v5893_v47 = vld [vmem:[#allocation6 + $0x7e0] ss:$16 sps:$4 sm:$0xff]   ;;  %v5898_v48 = vld [vmem:[#allocation6 + $0x5c4] ss:$16 sps:$4 sm:$0xff]  }
  0x9a   :  { %1049 = vmatprep.subr.bf16.mxu1 %v5805_v49  ;;  %v5901_v49 = vld [vmem:[#allocation6 + $0x7c4] ss:$16 sps:$4 sm:$0xff]  }
  0x9c   :  { %1007 = vmatpush2.bf16.msra.mxu0 %v5800_v50  ;;  %v5896_v50 = vld [vmem:[#allocation6 + $0x5c0] ss:$16 sps:$4 sm:$0xff]  }
  0x9d   :  { %1050 = vmatpush2.bf16.msra.mxu1 %v5803_v51  ;;  %1008 = vmatprep.subr.bf16.mxu0 %v5808_v52  ;;  %v5899_v51 = vld [vmem:[#allocation6 + $0x7c0] ss:$16 sps:$4 sm:$0xff]   ;;  %v5904_v52 = vld [vmem:[#allocation6 + $0x5a4] ss:$16 sps:$4 sm:$0xff]  }
  0x9e   :  { %1051 = vmatprep.subr.bf16.mxu1 %v5811_v53  ;;  %v5907_v53 = vld [vmem:[#allocation6 + $0x7a4] ss:$16 sps:$4 sm:$0xff]  }
  0xa0   :  { %1009 = vmatpush2.bf16.msra.mxu0 %v5806_v54  ;;  %v5902_v54 = vld [vmem:[#allocation6 + $0x5a0] ss:$16 sps:$4 sm:$0xff]  }
  0xa1   :  { %1052 = vmatpush2.bf16.msra.mxu1 %v5809_v55  ;;  %1010 = vmatprep.subr.bf16.mxu0 %v5814_v56  ;;  %v5905_v55 = vld [vmem:[#allocation6 + $0x7a0] ss:$16 sps:$4 sm:$0xff]   ;;  %v5910_v56 = vld [vmem:[#allocation6 + $0x584] ss:$16 sps:$4 sm:$0xff]  }
  0xa2   :  { %1053 = vmatprep.subr.bf16.mxu1 %v5817_v57  ;;  %v5913_v57 = vld [vmem:[#allocation6 + $0x784] ss:$16 sps:$4 sm:$0xff]  }
  0xa4   :  { %1011 = vmatpush2.bf16.msra.mxu0 %v5812_v58  ;;  %v5908_v58 = vld [vmem:[#allocation6 + $0x580] ss:$16 sps:$4 sm:$0xff]  }
  0xa5   :  { %1054 = vmatpush2.bf16.msra.mxu1 %v5815_v59  ;;  %1012 = vmatprep.subr.bf16.mxu0 %v5820_v60  ;;  %v5911_v59 = vld [vmem:[#allocation6 + $0x780] ss:$16 sps:$4 sm:$0xff]   ;;  %v5916_v60 = vld [vmem:[#allocation6 + $0x564] ss:$16 sps:$4 sm:$0xff]  }
  0xa6   :  { %1055 = vmatprep.subr.bf16.mxu1 %v5823_v61  ;;  %v5919_v61 = vld [vmem:[#allocation6 + $0x764] ss:$16 sps:$4 sm:$0xff]  }
  0xa8   :  { %1013 = vmatpush2.bf16.msra.mxu0 %v5818_v62  ;;  %v5914_v62 = vld [vmem:[#allocation6 + $0x560] ss:$16 sps:$4 sm:$0xff]  }
  0xa9   :  { %1056 = vmatpush2.bf16.msra.mxu1 %v5821_v63  ;;  %1014 = vmatprep.subr.bf16.mxu0 %v5826_v0  ;;  %v5917_v63 = vld [vmem:[#allocation6 + $0x760] ss:$16 sps:$4 sm:$0xff]   ;;  %v5922_v0 = vld [vmem:[#allocation6 + $0x544] ss:$16 sps:$4 sm:$0xff]  }
  0xaa   :  { %1057 = vmatprep.subr.bf16.mxu1 %v5829_v1  ;;  %v5925_v1 = vld [vmem:[#allocation6 + $0x744] ss:$16 sps:$4 sm:$0xff]  }
  0xac   :  { %1015 = vmatpush2.bf16.msra.mxu0 %v5824_v2  ;;  %v5920_v2 = vld [vmem:[#allocation6 + $0x540] ss:$16 sps:$4 sm:$0xff]  }
  0xad   :  { %1058 = vmatpush2.bf16.msra.mxu1 %v5827_v3  ;;  %1016 = vmatprep.subr.bf16.mxu0 %v5832_v4  ;;  %v5923_v3 = vld [vmem:[#allocation6 + $0x740] ss:$16 sps:$4 sm:$0xff]   ;;  %v5928_v4 = vld [vmem:[#allocation6 + $0x524] ss:$16 sps:$4 sm:$0xff]  }
  0xae   :  { %1059 = vmatprep.subr.bf16.mxu1 %v5835_v5  ;;  %v5931_v5 = vld [vmem:[#allocation6 + $0x724] ss:$16 sps:$4 sm:$0xff]  }
  0xb0   :  { %1017 = vmatpush2.bf16.msra.mxu0 %v5830_v6  ;;  %v5926_v6 = vld [vmem:[#allocation6 + $0x520] ss:$16 sps:$4 sm:$0xff]  }
  0xb1   :  { %1060 = vmatpush2.bf16.msra.mxu1 %v5833_v7  ;;  %1018 = vmatprep.subr.bf16.mxu0 %v5838_v8  ;;  %v5929_v7 = vld [vmem:[#allocation6 + $0x720] ss:$16 sps:$4 sm:$0xff]  }
  0xb2   :  { %1061 = vmatprep.subr.bf16.mxu1 %v5841_v9  ;;  %v5932_v8 = vld [vmem:[#allocation6 + $0x500] ss:$16 sps:$4 sm:$0xff]   ;;  %v5934_v9 = vld [vmem:[#allocation6 + $0x504] ss:$16 sps:$4 sm:$0xff]  }
  0xb4   :  { %1019 = vmatpush2.bf16.msra.mxu0 %v5836_v10 }
  0xb5   :  { %1062 = vmatpush2.bf16.msra.mxu1 %v5839_v11  ;;  %2122 = vmatprep.subr.bf16.mxu0 %v5844_v14  ;;  %v5935_v14 = vld [vmem:[#allocation6 + $0x700] ss:$16 sps:$4 sm:$0xff]  }
  0xb6   :  { %2165 = vmatprep.subr.bf16.mxu1 %v5847_v15  ;;  %v5937_v15 = vld [vmem:[#allocation6 + $0x704] ss:$16 sps:$4 sm:$0xff]  }
  0xb7   :  { %1021 = vmatmul.mubr.bf16.vlgmr.msra.gmra.mxu0 %v6589_v12  ;;  %v5859_v12 = vld [vmem:[#allocation6 + $0x6a4] ss:$16 sps:$4 sm:$0xff]  }
  0xb8   :  { %1064 = vmatmul.mubr.bf16.vlgmr.msra.gmra.mxu1 %v6591_v13  ;;  %2123 = vmatpush1.bf16.msra.mxu0 %v5842_v16  ;;  %v5857_v13 = vld [vmem:[#allocation6 + $0x6a0] ss:$16 sps:$4 sm:$0xff]  }
  0xb9   :  { %2166 = vmatpush1.bf16.msra.mxu1 %v5845_v17  ;;  %2124 = vmatprep.subr.bf16.mxu0 %v5850_v18  ;;  %v5940_v18 = vld [vmem:[#allocation6 + $0x4ec] ss:$16 sps:$4 sm:$0xff]  }
  0xba   :  { %2167 = vmatprep.subr.bf16.mxu1 %v5853_v19  ;;  %v5943_v19 = vld [vmem:[#allocation6 + $0x6ec] ss:$16 sps:$4 sm:$0xff]  }
  0xbc   :  { %2125 = vmatpush1.bf16.msra.mxu0 %v5848_v20 }
  0xbd   :  { %2168 = vmatpush1.bf16.msra.mxu1 %v5851_v21  ;;  %2126 = vmatprep.subr.bf16.mxu0 %v5856_v22 }
  0xbe   :  { %2169 = vmatprep.subr.bf16.mxu1 %v5859_v12 }
  0xc0   :  { %2127 = vmatpush1.bf16.msra.mxu0 %v5854_v23 }
  0xc1   :  { %2170 = vmatpush1.bf16.msra.mxu1 %v5857_v13  ;;  %2128 = vmatprep.subr.bf16.mxu0 %v5862_v24 }
  0xc2   :  { %2171 = vmatprep.subr.bf16.mxu1 %v5865_v25 }
  0xc4   :  { %2129 = vmatpush1.bf16.msra.mxu0 %v5860_v26 }
  0xc5   :  { %2172 = vmatpush1.bf16.msra.mxu1 %v5863_v27  ;;  %2130 = vmatprep.subr.bf16.mxu0 %v5868_v28 }
  0xc6   :  { %2173 = vmatprep.subr.bf16.mxu1 %v5871_v29 }
  0xc8   :  { %2131 = vmatpush1.bf16.msra.mxu0 %v5866_v30 }
  0xc9   :  { %2174 = vmatpush1.bf16.msra.mxu1 %v5869_v31  ;;  %2132 = vmatprep.subr.bf16.mxu0 %v5874_v32 }
  0xca   :  { %2175 = vmatprep.subr.bf16.mxu1 %v5877_v33 }
  0xcc   :  { %2133 = vmatpush1.bf16.msra.mxu0 %v5872_v34 }
  0xcd   :  { %2176 = vmatpush1.bf16.msra.mxu1 %v5875_v35  ;;  %2134 = vmatprep.subr.bf16.mxu0 %v5880_v36 }
  0xce   :  { %2177 = vmatprep.subr.bf16.mxu1 %v5883_v37 }
  0xd0   :  { %2135 = vmatpush1.bf16.msra.mxu0 %v5878_v38 }
  0xd1   :  { %2178 = vmatpush1.bf16.msra.mxu1 %v5881_v39  ;;  %2136 = vmatprep.subr.bf16.mxu0 %v5886_v40 }
  0xd2   :  { %2179 = vmatprep.subr.bf16.mxu1 %v5889_v41 }
  0xd4   :  { %2137 = vmatpush1.bf16.msra.mxu0 %v5884_v42 }
  0xd5   :  { %2180 = vmatpush1.bf16.msra.mxu1 %v5887_v43  ;;  %2138 = vmatprep.subr.bf16.mxu0 %v5892_v44 }
  0xd6   :  { %2181 = vmatprep.subr.bf16.mxu1 %v5895_v45 }
  0xd8   :  { %2139 = vmatpush2.bf16.msra.mxu0 %v5890_v46 }
  0xd9   :  { %2182 = vmatpush2.bf16.msra.mxu1 %v5893_v47  ;;  %2140 = vmatprep.subr.bf16.mxu0 %v5898_v48 }
  0xda   :  { %2183 = vmatprep.subr.bf16.mxu1 %v5901_v49 }
  0xdc   :  { %2141 = vmatpush2.bf16.msra.mxu0 %v5896_v50 }
  0xdd   :  { %2184 = vmatpush2.bf16.msra.mxu1 %v5899_v51  ;;  %2142 = vmatprep.subr.bf16.mxu0 %v5904_v52 }
  0xde   :  { %2185 = vmatprep.subr.bf16.mxu1 %v5907_v53 }
  0xe0   :  { %2143 = vmatpush2.bf16.msra.mxu0 %v5902_v54 }
  0xe1   :  { %2186 = vmatpush2.bf16.msra.mxu1 %v5905_v55  ;;  %2144 = vmatprep.subr.bf16.mxu0 %v5910_v56 }
  0xe2   :  { %2187 = vmatprep.subr.bf16.mxu1 %v5913_v57 }
  0xe4   :  { %2145 = vmatpush2.bf16.msra.mxu0 %v5908_v58 }
  0xe5   :  { %2188 = vmatpush2.bf16.msra.mxu1 %v5911_v59  ;;  %2146 = vmatprep.subr.bf16.mxu0 %v5916_v60 }
  0xe6   :  { %2189 = vmatprep.subr.bf16.mxu1 %v5919_v61 }
  0xe8   :  { %2147 = vmatpush2.bf16.msra.mxu0 %v5914_v62 }
  0xe9   :  { %2190 = vmatpush2.bf16.msra.mxu1 %v5917_v63  ;;  %2148 = vmatprep.subr.bf16.mxu0 %v5922_v0 }
  0xea   :  { %2191 = vmatprep.subr.bf16.mxu1 %v5925_v1 }
  0xec   :  { %2149 = vmatpush2.bf16.msra.mxu0 %v5920_v2 }
  0xed   :  { %2192 = vmatpush2.bf16.msra.mxu1 %v5923_v3  ;;  %2150 = vmatprep.subr.bf16.mxu0 %v5928_v4 }
  0xee   :  { %2193 = vmatprep.subr.bf16.mxu1 %v5931_v5 }
  0xf0   :  { %2151 = vmatpush2.bf16.msra.mxu0 %v5926_v6 }
  0xf1   :  { %2194 = vmatpush2.bf16.msra.mxu1 %v5929_v7  ;;  %2152 = vmatprep.subr.bf16.mxu0 %v5934_v9 }
  0xf2   :  { %2195 = vmatprep.subr.bf16.mxu1 %v5937_v15 }
  0xf4   :  { %2153 = vmatpush2.bf16.msra.mxu0 %v5932_v8 }
  0xf5   :  { %2196 = vmatpush2.bf16.msra.mxu1 %v5935_v14  ;;  %2208 = vmatprep.subr.bf16.mxu0 %v5940_v18 }
  0xf6   :  { %2251 = vmatprep.subr.bf16.mxu1 %v5943_v19 }
 0x137   :  { %v936_v10 = vpop.f32.mrf.mxu0 }
 0x138   :  { %v979_v11 = vpop.f32.mrf.mxu1 }
 0x139   :  { %v938_v16 = vpop.f32.mrf.mxu0  ;;  %v980_v25 = vadd.f32 %v979_v11, %v936_v10 }
 0x13a   :  { %v981_v17 = vpop.f32.mrf.mxu1 }
 0x13b   :  { %v940_v20 = vpop.f32.mrf.mxu0  ;;  %v982_v24 = vadd.f32 %v981_v17, %v938_v16 }
 0x13c   :  { %v983_v21 = vpop.f32.mrf.mxu1 }
 0x13d   :  { %v942_v22 = vpop.f32.mrf.mxu0  ;;  %v984_v13 = vadd.f32 %v983_v21, %v940_v20 }
 0x13e   :  { %v985_v12 = vpop.f32.mrf.mxu1 }
 0x13f   :  { %v986_v23 = vadd.f32 %v985_v12, %v942_v22  ;;  %v1074_v27 = vadd.f32 %v984_v13, %v980_v25 }
 0x141   :  { %v1081_v26 = vadd.f32 %v986_v23, %v982_v24  ;;  %v1075_v29 = vrot.slane %v1074_v27, 4 }
 0x143   :  { %v1082_v28 = vrot.slane %v1081_v26, 4  ;;  %v1076_v31 = vadd.f32 %v1075_v29, %v1074_v27 }
 0x145   :  { %v1083_v30 = vadd.f32 %v1082_v28, %v1081_v26  ;;  %v1077_v33 = vrot.slane %v1076_v31, 2 }
 0x147   :  { %v1084_v32 = vrot.slane %v1083_v30, 2  ;;  %v1078_v35 = vadd.f32 %v1077_v33, %v1076_v31 }
 0x149   :  { %v1085_v34 = vadd.f32 %v1084_v32, %v1083_v30  ;;  %v1079_v37 = vrot.slane %v1078_v35, 1 }
 0x14b   :  { %v1086_v36 = vrot.slane %v1085_v34, 1  ;;  %v1080_v39 = vadd.f32 %v1079_v37, %v1078_v35 }
 0x14d   :  { %v1087_v38 = vadd.f32 %v1086_v36, %v1085_v34  ;;  %v1103_v41 = vmul.f32 0.0625, %v1080_v39 }
 0x14f   :  { %v1104_v40 = vmul.f32 0.0625, %v1087_v38  ;;  %v6601_v44 = vsub.f32 %v980_v25, %v1103_v41  ;;  %v6603_v45 = vsub.f32 %v984_v13, %v1103_v41 }
 0x151   :  { %v6597_v42 = vsub.f32 %v982_v24, %v1104_v40  ;;  %v6599_v43 = vsub.f32 %v986_v23, %v1104_v40  ;;  %v1115_v52 = vmul.f32 %v6601_v44, %v6601_v44  ;;  %v1119_v53 = vmul.f32 %v6603_v45, %v6603_v45 }
 0x153   :  { %v1116_v50 = vmul.f32 %v6597_v42, %v6597_v42  ;;  %v1120_v51 = vmul.f32 %v6599_v43, %v6599_v43  ;;  %v1123_v0 = vadd.f32 %v1119_v53, %v1115_v52 }
 0x155   :  { %v1130_v60 = vadd.f32 %v1120_v51, %v1116_v50  ;;  %v1124_v6 = vrot.slane %v1123_v0, 4 }
 0x157   :  { %v1131_v3 = vrot.slane %v1130_v60, 4  ;;  %v1125_v14 = vadd.f32 %v1124_v6, %v1123_v0  ;;  %v1173_v0 = vlaneseq }
 0x159   :  { %v1132_v9 = vadd.f32 %v1131_v3, %v1130_v60  ;;  %v1126_v20 = vrot.slane %v1125_v14, 2 }
 0x15b   :  { %v1133_v17 = vrot.slane %v1132_v9, 2  ;;  %v1127_v25 = vadd.f32 %v1126_v20, %v1125_v14 }
 0x15d   :  { %v1134_v12 = vadd.f32 %v1133_v17, %v1132_v9  ;;  %v1128_v34 = vrot.slane %v1127_v25, 1 }
 0x15f   :  { %v1135_v30 = vrot.slane %v1134_v12, 1  ;;  %v1129_v40 = vadd.f32 %v1128_v34, %v1127_v25 }
 0x161   :  { %v1136_v37 = vadd.f32 %v1135_v30, %v1134_v12  ;;  %v1151_v50 = vmul.f32 0.0625, %v1129_v40 }
 0x177   :  { %v1022_v46 = vpop.f32.mrf.mxu0 }
 0x178   :  { %v1065_v47 = vpop.f32.mrf.mxu1 }
 0x179   :  { %v1024_v48 = vpop.f32.mrf.mxu0  ;;  %v1066_v56 = vadd.f32 %v1065_v47, %v1022_v46  ;;  %v1152_v47 = vmul.f32 0.0625, %v1136_v37 }
 0x17a   :  { %v1067_v49 = vpop.f32.mrf.mxu1 }
 0x17b   :  { %v1026_v54 = vpop.f32.mrf.mxu0  ;;  %v1068_v61 = vadd.f32 %v1067_v49, %v1024_v48  ;;  %v1157_v53 = vadd.f32 1e-05, %v1152_v47 }
 0x17c   :  { %v1069_v55 = vpop.f32.mrf.mxu1 }
 0x17d   :  { %v1070_v57 = vadd.f32 %v1069_v55, %v1026_v54  ;;  %v1028_v58 = vpop.f32.mrf.mxu0  ;;  %6418 = vrsqrt.f32 %v1157_v53 }
 0x17e   :  { %v1071_v59 = vpop.f32.mrf.mxu1 }
 0x17f   :  { %v1088_v62 = vadd.f32 %v1070_v57, %v1066_v56  ;;  %v1072_v63 = vadd.f32 %v1071_v59, %v1028_v58 }
 0x181   :  { %v1089_v1 = vrot.slane %v1088_v62, 4  ;;  %v1095_v2 = vadd.f32 %v1072_v63, %v1068_v61 }
 0x183   :  { %v1090_v4 = vadd.f32 %v1089_v1, %v1088_v62  ;;  %v1096_v5 = vrot.slane %v1095_v2, 4  ;;  %v6546_v62 = vmov 1983009808  }
 0x185   :  { %v1091_v7 = vrot.slane %v1090_v4, 2  ;;  %v1097_v8 = vadd.f32 %v1096_v5, %v1095_v2  ;;  %v1174_v2 = vshrl.u32 %v1173_v0, 7 }
 0x187   :  { %v1092_v10 = vadd.f32 %v1091_v7, %v1090_v4  ;;  %v1098_v11 = vrot.slane %v1097_v8, 2  ;;  %v6637_v17 = vsub.s32 0, %v1174_v2  ;;  %v6647_v12 = vsub.s32 4, %v1174_v2 }
 0x189   :  { %v1093_v15 = vrot.slane %v1092_v10, 1  ;;  %v1099_v16 = vadd.f32 %v1098_v11, %v1097_v8  ;;  %v6633_v11 = vsub.s32 3, %v1174_v2 }
 0x18a   :  { %v6419_v3 = vpop.eup %6418 }
 0x18b   :  { %v1094_v18 = vadd.f32 %v1093_v15, %v1092_v10  ;;  %v1100_v19 = vrot.slane %v1099_v16, 1  ;;  %v6631_v10 = vsub.s32 7, %v1174_v2 }
 0x18d   :  { %v1105_v21 = vmul.f32 0.0625, %v1094_v18  ;;  %v1101_v22 = vadd.f32 %v1100_v19, %v1099_v16  ;;  %v1155_v16 = vld [vmem:[#allocation8] sm:$0xff]  ;;  %v6639_v18 = vsub.s32 1, %v1174_v2  ;;  %v6641_v19 = vsub.s32 5, %v1174_v2 }
 0x18e   :  { %v1240_v25 = vrot.slane %v1155_v16, %v6633_v11 }
 0x18f   :  { %v6613_v23 = vsub.f32 %v1066_v56, %v1105_v21  ;;  %v6615_v13 = vsub.f32 %v1070_v57, %v1105_v21  ;;  %v1106_v24 = vmul.f32 0.0625, %v1101_v22  ;;  %v1156_v56 = vadd.f32 1e-05, %v1151_v50 }
 0x190   :  { %v6643_v21 = vsub.s32 6, %v1174_v2  ;;  %v6645_v22 = vsub.s32 2, %v1174_v2  ;;  %v1244_v30 = vrot.slane %v1155_v16, %v6641_v19 }
 0x191   :  { %v1117_v26 = vmul.f32 %v6613_v23, %v6613_v23  ;;  %v1121_v27 = vmul.f32 %v6615_v13, %v6615_v13  ;;  %v6621_v28 = vsub.f32 %v1068_v61, %v1106_v24  ;;  %v6623_v29 = vsub.f32 %v1072_v63, %v1106_v24 }
 0x192   :  { %6420 = vrsqrt.f32 %v1156_v56  ;;  %v1171_v63 = vunpack.c.l.s4 %v6546_v62  ;;  %v1248_v24 = vrot.slane %v1155_v16, %v6631_v10 }
 0x193   :  { %v1137_v31 = vadd.f32 %v1121_v27, %v1117_v26  ;;  %v1118_v32 = vmul.f32 %v6621_v28, %v6621_v28  ;;  %v1122_v33 = vmul.f32 %v6623_v29, %v6623_v29  ;;  %v1236_v27 = vrot.slane %v1155_v16, %v6639_v18 }
 0x194   :  { %v1172_v1 = vunpack.c.0.s8 %v1171_v63 }
 0x195   :  { %v1138_v35 = vrot.slane %v1137_v31, 4  ;;  %v1144_v36 = vadd.f32 %v1122_v33, %v1118_v32 }
 0x196   :  { %v6629_v7 = vsub.s32 %v1172_v1, %v1174_v2 }
 0x197   :  { %v1139_v38 = vadd.f32 %v1138_v35, %v1137_v31  ;;  %v1145_v39 = vrot.slane %v1144_v36, 4  ;;  %v1268_v35 = vrot.slane %v1248_v24, %v6639_v18  ;;  %v5946_v24 = vld [vmem:[#allocation6 + $0x4cc] ss:$16 sps:$4 sm:$0xff]  }
 0x199   :  { %v1140_v41 = vrot.slane %v1139_v38, 2  ;;  %v1146_v46 = vadd.f32 %v1145_v39, %v1144_v36  ;;  %v1260_v36 = vrot.slane %v1240_v25, %v6639_v18  ;;  %v5949_v25 = vld [vmem:[#allocation6 + $0x6cc] ss:$16 sps:$4 sm:$0xff]  }
 0x19b   :  { %v1141_v48 = vadd.f32 %v1140_v41, %v1139_v38  ;;  %v1147_v49 = vrot.slane %v1146_v46, 2  ;;  %v1256_v41 = vrot.slane %v1236_v27, %v6639_v18  ;;  %v5947_v27 = vld [vmem:[#allocation6 + $0x6c8] ss:$16 sps:$4 sm:$0xff]  }
 0x19d   :  { %v1142_v51 = vrot.slane %v1141_v48, 1  ;;  %v1148_v52 = vadd.f32 %v1147_v49, %v1146_v46  ;;  %v1264_v46 = vrot.slane %v1244_v30, %v6639_v18  ;;  %v5952_v30 = vld [vmem:[#allocation6 + $0x4ac] ss:$16 sps:$4 sm:$0xff]  }
 0x19f   :  { %v1143_v54 = vadd.f32 %v1142_v51, %v1141_v48  ;;  %v1149_v55 = vrot.slane %v1148_v52, 1  ;;  %v6421_v4 = vpop.eup %6420 }
 0x1a0   :  { %v1168_v6 = vcombine.low %v6421_v4, %v6419_v3 }
 0x1a1   :  { %v1153_v57 = vmul.f32 0.0625, %v1143_v54  ;;  %v1150_v58 = vadd.f32 %v1149_v55, %v1148_v52 }
 0x1a2   :  { %v1176_v14 = vrot.slane %v1168_v6, %v6629_v7  ;;  %v5938_v6 = vld [vmem:[#allocation6 + $0x4e8] ss:$16 sps:$4 sm:$0xff]  }
 0x1a3   :  { %v1158_v59 = vadd.f32 1e-05, %v1153_v57  ;;  %v1154_v60 = vmul.f32 0.0625, %v1150_v58 }
 0x1a5   :  { %v1159_v61 = vadd.f32 1e-05, %v1154_v60  ;;  %6422 = vrsqrt.f32 %v1158_v59 }
 0x1a7   :  { %6424 = vrsqrt.f32 %v1159_v61 }
 0x1b2   :  { %v6423_v5 = vpop.eup %6422 }
 0x1b4   :  { %v6425_v8 = vpop.eup %6424 }
 0x1b5   :  { %v1169_v9 = vcombine.low %v6423_v5, %v6425_v8 }
 0x1b7   :  { %v1183_v15 = vrot.slane %v1169_v9, %v6629_v7  ;;  %v5941_v9 = vld [vmem:[#allocation6 + $0x6e8] ss:$16 sps:$4 sm:$0xff]  }
 0x1b9   :  { %v1184_v20 = vcombine.low %v1176_v14, %v1183_v15 }
 0x1bb   :  { %v1186_v26 = vmul.f32 %v1184_v20, %v1155_v16 }
 0x1bd   :  { %v1203_v31 = vrot.slane %v1186_v26, %v6643_v21  ;;  %v1195_v32 = vrot.slane %v1186_v26, %v6645_v22  ;;  %v1191_v33 = vrot.slane %v1186_v26, %v6637_v17  ;;  %v1199_v34 = vrot.slane %v1186_v26, %v6647_v12  ;;  %v5944_v26 = vld [vmem:[#allocation6 + $0x4c8] ss:$16 sps:$4 sm:$0xff]  }
 0x1bf   :  { %v1223_v37 = vrot.slane %v1203_v31, %v6637_v17  ;;  %v1215_v38 = vrot.slane %v1195_v32, %v6637_v17  ;;  %v1211_v39 = vrot.slane %v1191_v33, %v6637_v17  ;;  %v1219_v40 = vrot.slane %v1199_v34, %v6637_v17  ;;  %v5955_v31 = vld [vmem:[#allocation6 + $0x6ac] ss:$16 sps:$4 sm:$0xff]   ;;  %v5950_v32 = vld [vmem:[#allocation6 + $0x4a8] ss:$16 sps:$4 sm:$0xff]  }
 0x1c0   :  { %v5953_v33 = vld [vmem:[#allocation6 + $0x6a8] ss:$16 sps:$4 sm:$0xff]   ;;  %v5958_v34 = vld [vmem:[#allocation6 + $0x48c] ss:$16 sps:$4 sm:$0xff]  }
 0x1c1   :  { %v1227_v47 = vmul.f32 %v1223_v37, %v6621_v28  ;;  %v1231_v48 = vmul.f32 %v1223_v37, %v6623_v29  ;;  %v1225_v49 = vmul.f32 %v1215_v38, %v6597_v42  ;;  %v1229_v50 = vmul.f32 %v1215_v38, %v6599_v43  ;;  %v5959_v37 = vld [vmem:[#allocation6 + $0x688] ss:$16 sps:$4 sm:$0xff]   ;;  %v5964_v38 = vld [vmem:[#allocation6 + $0x46c] ss:$16 sps:$4 sm:$0xff]  }
 0x1c2   :  { %v1224_v51 = vmul.f32 %v1211_v39, %v6601_v44  ;;  %v1228_v52 = vmul.f32 %v1211_v39, %v6603_v45  ;;  %v1226_v53 = vmul.f32 %v1219_v40, %v6613_v23  ;;  %v1230_v54 = vmul.f32 %v1219_v40, %v6615_v13  ;;  %v5967_v39 = vld [vmem:[#allocation6 + $0x66c] ss:$16 sps:$4 sm:$0xff]   ;;  %v5962_v40 = vld [vmem:[#allocation6 + $0x468] ss:$16 sps:$4 sm:$0xff]  }
 0x1c3   :  { %v1276_v55 = vadd.f32 %v1268_v35, %v1231_v48  ;;  %v1270_v56 = vadd.f32 %v1260_v36, %v1225_v49  ;;  %v1274_v57 = vadd.f32 %v1260_v36, %v1229_v50  ;;  %v1272_v58 = vadd.f32 %v1268_v35, %v1227_v47  ;;  %v5961_v35 = vld [vmem:[#allocation6 + $0x68c] ss:$16 sps:$4 sm:$0xff]   ;;  %v5956_v36 = vld [vmem:[#allocation6 + $0x488] ss:$16 sps:$4 sm:$0xff]  }
 0x1c4   :  { %v1269_v59 = vadd.f32 %v1256_v41, %v1224_v51  ;;  %v1273_v28 = vadd.f32 %v1256_v41, %v1228_v52  ;;  %v1271_v60 = vadd.f32 %v1264_v46, %v1226_v53  ;;  %v1275_v29 = vadd.f32 %v1264_v46, %v1230_v54  ;;  %v5965_v41 = vld [vmem:[#allocation6 + $0x668] ss:$16 sps:$4 sm:$0xff]   ;;  %v5970_v46 = vld [vmem:[#allocation6 + $0x44c] ss:$16 sps:$4 sm:$0xff]  }
 0x1c5   :  { %vm1278_vm0 = vcmp.gt.f32.partialorder %v1270_v56, 0.0  ;;  %vm1282_vm1 = vcmp.gt.f32.partialorder %v1274_v57, 0.0  ;;  %v1286_v42 = vmul.f32 0.2, %v1270_v56  ;;  %v1290_v43 = vmul.f32 0.2, %v1274_v57 }
 0x1c6   :  { %vm1280_vm2 = vcmp.gt.f32.partialorder %v1272_v58, 0.0  ;;  %vm1284_vm3 = vcmp.gt.f32.partialorder %v1276_v55, 0.0  ;;  %v1288_v44 = vmul.f32 0.2, %v1272_v58  ;;  %v1292_v45 = vmul.f32 0.2, %v1276_v55 }
 0x1c7   :  { %v1294_v61 = vsel %vm1278_vm0, %v1270_v56, %v1286_v42  ;;  %v1298_v23 = vsel %vm1282_vm1, %v1274_v57, %v1290_v43  ;;  %vm1277_vm4 = vcmp.gt.f32.partialorder %v1269_v59, 0.0  ;;  %vm1281_vm5 = vcmp.gt.f32.partialorder %v1273_v28, 0.0  ;;  %v5973_v47 = vld [vmem:[#allocation6 + $0x64c] ss:$16 sps:$4 sm:$0xff]   ;;  %v5968_v48 = vld [vmem:[#allocation6 + $0x448] ss:$16 sps:$4 sm:$0xff]  }
 0x1c8   :  { %v5628_v13 = vpack.c.bf16 %v1298_v23, %v1294_v61  ;;  %v1296_v62 = vsel %vm1280_vm2, %v1272_v58, %v1288_v44  ;;  %v1300_v63 = vsel %vm1284_vm3, %v1276_v55, %v1292_v45  ;;  %v1285_v0 = vmul.f32 0.2, %v1269_v59  ;;  %v5971_v49 = vld [vmem:[#allocation6 + $0x648] ss:$16 sps:$4 sm:$0xff]   ;;  %v5976_v50 = vld [vmem:[#allocation6 + $0x42c] ss:$16 sps:$4 sm:$0xff]  }
 0x1c9   :  { %v5630_v1 = vpack.c.bf16 %v1300_v63, %v1296_v62  ;;  %v1289_v2 = vmul.f32 0.2, %v1273_v28  ;;  %vm1279_vm6 = vcmp.gt.f32.partialorder %v1271_v60, 0.0  ;;  %vm1283_vm7 = vcmp.gt.f32.partialorder %v1275_v29, 0.0  ;;  %v5979_v51 = vld [vmem:[#allocation6 + $0x62c] ss:$16 sps:$4 sm:$0xff]  }
 0x1ca   :  { %2154 = vmatprep.mubr.bf16.mxu0 %v5628_v13  ;;  %v1293_v3 = vsel %vm1277_vm4, %v1269_v59, %v1285_v0  ;;  %v1287_v4 = vmul.f32 0.2, %v1271_v60  ;;  %v1291_v5 = vmul.f32 0.2, %v1275_v29  ;;  %v5974_v52 = vld [vmem:[#allocation6 + $0x428] ss:$16 sps:$4 sm:$0xff]  }
 0x1cb   :  { %2197 = vmatprep.mubr.bf16.mxu1 %v5630_v1  ;;  %v1297_v8 = vsel %vm1281_vm5, %v1273_v28, %v1289_v2  ;;  %v5977_v53 = vld [vmem:[#allocation6 + $0x628] ss:$16 sps:$4 sm:$0xff]   ;;  %v5982_v54 = vld [vmem:[#allocation6 + $0x40c] ss:$16 sps:$4 sm:$0xff]  }
 0x1cc   :  { %v6673_v14 = vpack.c.bf16 %v1297_v8, %v1293_v3  ;;  %v1295_v15 = vsel %vm1279_vm6, %v1271_v60, %v1287_v4  ;;  %v1299_v16 = vsel %vm1283_vm7, %v1275_v29, %v1291_v5  ;;  %v5985_v55 = vld [vmem:[#allocation6 + $0x60c] ss:$16 sps:$4 sm:$0xff]   ;;  %v5980_v56 = vld [vmem:[#allocation6 + $0x408] ss:$16 sps:$4 sm:$0xff]  }
 0x1cd   :  { %v6675_v20 = vpack.c.bf16 %v1299_v16, %v1295_v15  ;;  %v5983_v57 = vld [vmem:[#allocation6 + $0x608] ss:$16 sps:$4 sm:$0xff]   ;;  %v5988_v58 = vld [vmem:[#allocation6 + $0x5ec] ss:$16 sps:$4 sm:$0xff]  }
 0x1ce   :  { %2155 = vmatmul.mubr.bf16.vlgmr.msra.gmra.mxu0 %v6673_v14  ;;  %v5991_v59 = vld [vmem:[#allocation6 + $0x7ec] ss:$16 sps:$4 sm:$0xff]   ;;  %v5986_v28 = vld [vmem:[#allocation6 + $0x5e8] ss:$16 sps:$4 sm:$0xff]  }
 0x1cf   :  { %2198 = vmatmul.mubr.bf16.vlgmr.msra.gmra.mxu1 %v6675_v20  ;;  %2209 = vmatpush1.bf16.msra.mxu0 %v5938_v6  ;;  %v5989_v60 = vld [vmem:[#allocation6 + $0x7e8] ss:$16 sps:$4 sm:$0xff]   ;;  %v5994_v29 = vld [vmem:[#allocation6 + $0x5cc] ss:$16 sps:$4 sm:$0xff]  }
 0x1d0   :  { %2252 = vmatpush1.bf16.msra.mxu1 %v5941_v9  ;;  %2240 = vmatprep.mubr.bf16.mxu0 %v5628_v13  ;;  %v5997_v42 = vld [vmem:[#allocation6 + $0x7cc] ss:$16 sps:$4 sm:$0xff]   ;;  %v5992_v43 = vld [vmem:[#allocation6 + $0x5c8] ss:$16 sps:$4 sm:$0xff]  }
 0x1d1   :  { %2283 = vmatprep.mubr.bf16.mxu1 %v5630_v1  ;;  %2210 = vmatprep.subr.bf16.mxu0 %v5946_v24  ;;  %v5995_v44 = vld [vmem:[#allocation6 + $0x7c8] ss:$16 sps:$4 sm:$0xff]   ;;  %v6000_v45 = vld [vmem:[#allocation6 + $0x5ac] ss:$16 sps:$4 sm:$0xff]  }
 0x1d2   :  { %2253 = vmatprep.subr.bf16.mxu1 %v5949_v25  ;;  %v6003_v61 = vld [vmem:[#allocation6 + $0x7ac] ss:$16 sps:$4 sm:$0xff]   ;;  %v5998_v23 = vld [vmem:[#allocation6 + $0x5a8] ss:$16 sps:$4 sm:$0xff]  }
 0x1d3   :  { %2211 = vmatpush1.bf16.msra.mxu0 %v5944_v26  ;;  %v6001_v13 = vld [vmem:[#allocation6 + $0x7a8] ss:$16 sps:$4 sm:$0xff]   ;;  %v6006_v62 = vld [vmem:[#allocation6 + $0x58c] ss:$16 sps:$4 sm:$0xff]  }
 0x1d4   :  { %2254 = vmatpush1.bf16.msra.mxu1 %v5947_v27  ;;  %2212 = vmatprep.subr.bf16.mxu0 %v5952_v30  ;;  %v6009_v63 = vld [vmem:[#allocation6 + $0x78c] ss:$16 sps:$4 sm:$0xff]   ;;  %v6004_v0 = vld [vmem:[#allocation6 + $0x588] ss:$16 sps:$4 sm:$0xff]  }
 0x1d5   :  { %2255 = vmatprep.subr.bf16.mxu1 %v5955_v31  ;;  %v6007_v1 = vld [vmem:[#allocation6 + $0x788] ss:$16 sps:$4 sm:$0xff]   ;;  %v6012_v2 = vld [vmem:[#allocation6 + $0x56c] ss:$16 sps:$4 sm:$0xff]  }
 0x1d6   :  { %v6015_v3 = vld [vmem:[#allocation6 + $0x76c] ss:$16 sps:$4 sm:$0xff]   ;;  %v6010_v4 = vld [vmem:[#allocation6 + $0x568] ss:$16 sps:$4 sm:$0xff]  }
 0x1d7   :  { %2213 = vmatpush1.bf16.msra.mxu0 %v5950_v32  ;;  %v6013_v5 = vld [vmem:[#allocation6 + $0x768] ss:$16 sps:$4 sm:$0xff]   ;;  %v6018_v6 = vld [vmem:[#allocation6 + $0x54c] ss:$16 sps:$4 sm:$0xff]  }
 0x1d8   :  { %2256 = vmatpush1.bf16.msra.mxu1 %v5953_v33  ;;  %2214 = vmatprep.subr.bf16.mxu0 %v5958_v34  ;;  %v6021_v8 = vld [vmem:[#allocation6 + $0x74c] ss:$16 sps:$4 sm:$0xff]   ;;  %v6016_v9 = vld [vmem:[#allocation6 + $0x548] ss:$16 sps:$4 sm:$0xff]   ;;  %v6036_v33 = vld [vmem:[#allocation6 + $0x8e4] ss:$16 sps:$4 sm:$0xff]  }
 0x1d9   :  { %2257 = vmatprep.subr.bf16.mxu1 %v5961_v35  ;;  %v6019_v15 = vld [vmem:[#allocation6 + $0x748] ss:$16 sps:$4 sm:$0xff]   ;;  %v6024_v16 = vld [vmem:[#allocation6 + $0x52c] ss:$16 sps:$4 sm:$0xff]   ;;  %v6039_v34 = vld [vmem:[#allocation6 + $0xae4] ss:$16 sps:$4 sm:$0xff]  }
 0x1da   :  { %v6027_v24 = vld [vmem:[#allocation6 + $0x72c] ss:$16 sps:$4 sm:$0xff]   ;;  %v6022_v25 = vld [vmem:[#allocation6 + $0x528] ss:$16 sps:$4 sm:$0xff]   ;;  %v6034_v35 = vld [vmem:[#allocation6 + $0x8e0] ss:$16 sps:$4 sm:$0xff]  }
 0x1db   :  { %2215 = vmatpush1.bf16.msra.mxu0 %v5956_v36  ;;  %v6025_v26 = vld [vmem:[#allocation6 + $0x728] ss:$16 sps:$4 sm:$0xff]   ;;  %v6030_v27 = vld [vmem:[#allocation6 + $0x50c] ss:$16 sps:$4 sm:$0xff]   ;;  %v6037_v36 = vld [vmem:[#allocation6 + $0xae0] ss:$16 sps:$4 sm:$0xff]  }
 0x1dc   :  { %2258 = vmatpush1.bf16.msra.mxu1 %v5959_v37  ;;  %2216 = vmatprep.subr.bf16.mxu0 %v5964_v38  ;;  %v6033_v30 = vld [vmem:[#allocation6 + $0x70c] ss:$16 sps:$4 sm:$0xff]   ;;  %v6028_v31 = vld [vmem:[#allocation6 + $0x508] ss:$16 sps:$4 sm:$0xff]   ;;  %v6042_v37 = vld [vmem:[#allocation6 + $0x8c4] ss:$16 sps:$4 sm:$0xff]  }
 0x1dd   :  { %2259 = vmatprep.subr.bf16.mxu1 %v5967_v39  ;;  %v6031_v32 = vld [vmem:[#allocation6 + $0x708] ss:$16 sps:$4 sm:$0xff]   ;;  %v6045_v38 = vld [vmem:[#allocation6 + $0xac4] ss:$16 sps:$4 sm:$0xff]   ;;  %v6040_v39 = vld [vmem:[#allocation6 + $0x8c0] ss:$16 sps:$4 sm:$0xff]  }
 0x1df   :  { %2217 = vmatpush1.bf16.msra.mxu0 %v5962_v40  ;;  %v6043_v40 = vld [vmem:[#allocation6 + $0xac0] ss:$16 sps:$4 sm:$0xff]  }
 0x1e0   :  { %2260 = vmatpush1.bf16.msra.mxu1 %v5965_v41  ;;  %2218 = vmatprep.subr.bf16.mxu0 %v5970_v46  ;;  %v6048_v41 = vld [vmem:[#allocation6 + $0x8a4] ss:$16 sps:$4 sm:$0xff]   ;;  %v6046_v46 = vld [vmem:[#allocation6 + $0x8a0] ss:$16 sps:$4 sm:$0xff]  }
 0x1e1   :  { %2261 = vmatprep.subr.bf16.mxu1 %v5973_v47  ;;  %v6054_v47 = vld [vmem:[#allocation6 + $0x884] ss:$16 sps:$4 sm:$0xff]  }
 0x1e3   :  { %2219 = vmatpush1.bf16.msra.mxu0 %v5968_v48  ;;  %v6057_v48 = vld [vmem:[#allocation6 + $0xa84] ss:$16 sps:$4 sm:$0xff]  }
 0x1e4   :  { %2262 = vmatpush1.bf16.msra.mxu1 %v5971_v49  ;;  %2220 = vmatprep.subr.bf16.mxu0 %v5976_v50  ;;  %v6052_v49 = vld [vmem:[#allocation6 + $0x880] ss:$16 sps:$4 sm:$0xff]  }
 0x1e5   :  { %2263 = vmatprep.subr.bf16.mxu1 %v5979_v51  ;;  %v6055_v50 = vld [vmem:[#allocation6 + $0xa80] ss:$16 sps:$4 sm:$0xff]   ;;  %v6060_v51 = vld [vmem:[#allocation6 + $0x864] ss:$16 sps:$4 sm:$0xff]  }
 0x1e7   :  { %2221 = vmatpush1.bf16.msra.mxu0 %v5974_v52  ;;  %v6063_v52 = vld [vmem:[#allocation6 + $0xa64] ss:$16 sps:$4 sm:$0xff]  }
 0x1e8   :  { %2264 = vmatpush1.bf16.msra.mxu1 %v5977_v53  ;;  %2222 = vmatprep.subr.bf16.mxu0 %v5982_v54  ;;  %v6058_v53 = vld [vmem:[#allocation6 + $0x860] ss:$16 sps:$4 sm:$0xff]  }
 0x1e9   :  { %2265 = vmatprep.subr.bf16.mxu1 %v5985_v55  ;;  %v6061_v54 = vld [vmem:[#allocation6 + $0xa60] ss:$16 sps:$4 sm:$0xff]   ;;  %v6066_v55 = vld [vmem:[#allocation6 + $0x844] ss:$16 sps:$4 sm:$0xff]  }
 0x1eb   :  { %2223 = vmatpush1.bf16.msra.mxu0 %v5980_v56  ;;  %v6069_v56 = vld [vmem:[#allocation6 + $0xa44] ss:$16 sps:$4 sm:$0xff]  }
 0x1ec   :  { %2266 = vmatpush1.bf16.msra.mxu1 %v5983_v57  ;;  %2224 = vmatprep.subr.bf16.mxu0 %v5988_v58  ;;  %v6064_v57 = vld [vmem:[#allocation6 + $0x840] ss:$16 sps:$4 sm:$0xff]  }
 0x1ed   :  { %2267 = vmatprep.subr.bf16.mxu1 %v5991_v59  ;;  %v6067_v58 = vld [vmem:[#allocation6 + $0xa40] ss:$16 sps:$4 sm:$0xff]   ;;  %v6072_v59 = vld [vmem:[#allocation6 + $0x824] ss:$16 sps:$4 sm:$0xff]  }
 0x1ef   :  { %2225 = vmatpush2.bf16.msra.mxu0 %v5986_v28  ;;  %v6075_v28 = vld [vmem:[#allocation6 + $0xa24] ss:$16 sps:$4 sm:$0xff]  }
 0x1f0   :  { %2268 = vmatpush2.bf16.msra.mxu1 %v5989_v60  ;;  %2226 = vmatprep.subr.bf16.mxu0 %v5994_v29  ;;  %v6070_v60 = vld [vmem:[#allocation6 + $0x820] ss:$16 sps:$4 sm:$0xff]  }
 0x1f1   :  { %2269 = vmatprep.subr.bf16.mxu1 %v5997_v42  ;;  %v6073_v29 = vld [vmem:[#allocation6 + $0xa20] ss:$16 sps:$4 sm:$0xff]   ;;  %v6078_v42 = vld [vmem:[#allocation6 + $0x804] ss:$16 sps:$4 sm:$0xff]  }
 0x1f3   :  { %2227 = vmatpush2.bf16.msra.mxu0 %v5992_v43  ;;  %v6081_v43 = vld [vmem:[#allocation6 + $0xa04] ss:$16 sps:$4 sm:$0xff]  }
 0x1f4   :  { %2270 = vmatpush2.bf16.msra.mxu1 %v5995_v44  ;;  %2228 = vmatprep.subr.bf16.mxu0 %v6000_v45  ;;  %v6076_v44 = vld [vmem:[#allocation6 + $0x800] ss:$16 sps:$4 sm:$0xff]  }
 0x1f5   :  { %2271 = vmatprep.subr.bf16.mxu1 %v6003_v61  ;;  %v6079_v45 = vld [vmem:[#allocation6 + $0xa00] ss:$16 sps:$4 sm:$0xff]   ;;  %v6084_v61 = vld [vmem:[#allocation6 + $0x9e4] ss:$16 sps:$4 sm:$0xff]  }
 0x1f7   :  { %2229 = vmatpush2.bf16.msra.mxu0 %v5998_v23  ;;  %v6087_v23 = vld [vmem:[#allocation6 + $0xbe4] ss:$16 sps:$4 sm:$0xff]  }
 0x1f8   :  { %2272 = vmatpush2.bf16.msra.mxu1 %v6001_v13  ;;  %2230 = vmatprep.subr.bf16.mxu0 %v6006_v62  ;;  %v6082_v13 = vld [vmem:[#allocation6 + $0x9e0] ss:$16 sps:$4 sm:$0xff]  }
 0x1f9   :  { %2273 = vmatprep.subr.bf16.mxu1 %v6009_v63  ;;  %v6085_v62 = vld [vmem:[#allocation6 + $0xbe0] ss:$16 sps:$4 sm:$0xff]   ;;  %v6090_v63 = vld [vmem:[#allocation6 + $0x9c4] ss:$16 sps:$4 sm:$0xff]  }
 0x1fb   :  { %2231 = vmatpush2.bf16.msra.mxu0 %v6004_v0  ;;  %v6093_v0 = vld [vmem:[#allocation6 + $0xbc4] ss:$16 sps:$4 sm:$0xff]  }
 0x1fc   :  { %2274 = vmatpush2.bf16.msra.mxu1 %v6007_v1  ;;  %2232 = vmatprep.subr.bf16.mxu0 %v6012_v2  ;;  %v6088_v1 = vld [vmem:[#allocation6 + $0x9c0] ss:$16 sps:$4 sm:$0xff]  }
 0x1fd   :  { %2275 = vmatprep.subr.bf16.mxu1 %v6015_v3  ;;  %v6091_v2 = vld [vmem:[#allocation6 + $0xbc0] ss:$16 sps:$4 sm:$0xff]   ;;  %v6096_v3 = vld [vmem:[#allocation6 + $0x9a4] ss:$16 sps:$4 sm:$0xff]  }
 0x1ff   :  { %2233 = vmatpush2.bf16.msra.mxu0 %v6010_v4  ;;  %v6099_v4 = vld [vmem:[#allocation6 + $0xba4] ss:$16 sps:$4 sm:$0xff]  }
 0x200   :  { %2276 = vmatpush2.bf16.msra.mxu1 %v6013_v5  ;;  %2234 = vmatprep.subr.bf16.mxu0 %v6018_v6  ;;  %v6094_v5 = vld [vmem:[#allocation6 + $0x9a0] ss:$16 sps:$4 sm:$0xff]  }
 0x201   :  { %2277 = vmatprep.subr.bf16.mxu1 %v6021_v8  ;;  %v6097_v6 = vld [vmem:[#allocation6 + $0xba0] ss:$16 sps:$4 sm:$0xff]   ;;  %v6102_v8 = vld [vmem:[#allocation6 + $0x984] ss:$16 sps:$4 sm:$0xff]  }
 0x203   :  { %2235 = vmatpush2.bf16.msra.mxu0 %v6016_v9  ;;  %v6105_v9 = vld [vmem:[#allocation6 + $0xb84] ss:$16 sps:$4 sm:$0xff]  }
 0x204   :  { %2278 = vmatpush2.bf16.msra.mxu1 %v6019_v15  ;;  %2236 = vmatprep.subr.bf16.mxu0 %v6024_v16  ;;  %v6100_v15 = vld [vmem:[#allocation6 + $0x980] ss:$16 sps:$4 sm:$0xff]  }
 0x205   :  { %2279 = vmatprep.subr.bf16.mxu1 %v6027_v24  ;;  %v6103_v16 = vld [vmem:[#allocation6 + $0xb80] ss:$16 sps:$4 sm:$0xff]   ;;  %v6108_v24 = vld [vmem:[#allocation6 + $0x964] ss:$16 sps:$4 sm:$0xff]  }
 0x207   :  { %2237 = vmatpush2.bf16.msra.mxu0 %v6022_v25  ;;  %v6111_v25 = vld [vmem:[#allocation6 + $0xb64] ss:$16 sps:$4 sm:$0xff]  }
 0x208   :  { %2280 = vmatpush2.bf16.msra.mxu1 %v6025_v26  ;;  %2238 = vmatprep.subr.bf16.mxu0 %v6030_v27  ;;  %v6106_v26 = vld [vmem:[#allocation6 + $0x960] ss:$16 sps:$4 sm:$0xff]  }
 0x209   :  { %2281 = vmatprep.subr.bf16.mxu1 %v6033_v30  ;;  %v6109_v27 = vld [vmem:[#allocation6 + $0xb60] ss:$16 sps:$4 sm:$0xff]   ;;  %v6114_v30 = vld [vmem:[#allocation6 + $0x944] ss:$16 sps:$4 sm:$0xff]  }
 0x20b   :  { %2239 = vmatpush2.bf16.msra.mxu0 %v6028_v31  ;;  %v6117_v31 = vld [vmem:[#allocation6 + $0xb44] ss:$16 sps:$4 sm:$0xff]  }
 0x20c   :  { %2282 = vmatpush2.bf16.msra.mxu1 %v6031_v32  ;;  %3342 = vmatprep.subr.bf16.mxu0 %v6036_v33  ;;  %v6112_v32 = vld [vmem:[#allocation6 + $0x940] ss:$16 sps:$4 sm:$0xff]  }
 0x20d   :  { %3385 = vmatprep.subr.bf16.mxu1 %v6039_v34  ;;  %v6115_v33 = vld [vmem:[#allocation6 + $0xb40] ss:$16 sps:$4 sm:$0xff]   ;;  %v6120_v34 = vld [vmem:[#allocation6 + $0x924] ss:$16 sps:$4 sm:$0xff]  }
 0x20e   :  { %2241 = vmatmul.mubr.bf16.vlgmr.msra.gmra.mxu0 %v6673_v14  ;;  %v6051_v14 = vld [vmem:[#allocation6 + $0xaa4] ss:$16 sps:$4 sm:$0xff]  }
 0x20f   :  { %2284 = vmatmul.mubr.bf16.vlgmr.msra.gmra.mxu1 %v6675_v20  ;;  %3343 = vmatpush1.bf16.msra.mxu0 %v6034_v35  ;;  %v6049_v20 = vld [vmem:[#allocation6 + $0xaa0] ss:$16 sps:$4 sm:$0xff]   ;;  %v6123_v35 = vld [vmem:[#allocation6 + $0xb24] ss:$16 sps:$4 sm:$0xff]  }
 0x210   :  { %3386 = vmatpush1.bf16.msra.mxu1 %v6037_v36  ;;  %3344 = vmatprep.subr.bf16.mxu0 %v6042_v37  ;;  %v6118_v36 = vld [vmem:[#allocation6 + $0x920] ss:$16 sps:$4 sm:$0xff]  }
 0x211   :  { %3387 = vmatprep.subr.bf16.mxu1 %v6045_v38  ;;  %v6121_v37 = vld [vmem:[#allocation6 + $0xb20] ss:$16 sps:$4 sm:$0xff]  }
 0x212   :  { %v6124_v38 = vld [vmem:[#allocation6 + $0x900] ss:$16 sps:$4 sm:$0xff]  }
 0x213   :  { %3345 = vmatpush1.bf16.msra.mxu0 %v6040_v39  ;;  %v6126_v39 = vld [vmem:[#allocation6 + $0x904] ss:$16 sps:$4 sm:$0xff]  }
 0x214   :  { %3388 = vmatpush1.bf16.msra.mxu1 %v6043_v40  ;;  %3346 = vmatprep.subr.bf16.mxu0 %v6048_v41 }
 0x215   :  { %3389 = vmatprep.subr.bf16.mxu1 %v6051_v14  ;;  %v6127_v14 = vld [vmem:[#allocation6 + $0xb00] ss:$16 sps:$4 sm:$0xff]  }
 0x217   :  { %3347 = vmatpush1.bf16.msra.mxu0 %v6046_v46  ;;  %v6129_v46 = vld [vmem:[#allocation6 + $0xb04] ss:$16 sps:$4 sm:$0xff]  }
 0x218   :  { %3390 = vmatpush1.bf16.msra.mxu1 %v6049_v20  ;;  %3348 = vmatprep.subr.bf16.mxu0 %v6054_v47 }
 0x219   :  { %3391 = vmatprep.subr.bf16.mxu1 %v6057_v48  ;;  %v6132_v48 = vld [vmem:[#allocation6 + $0x8ec] ss:$16 sps:$4 sm:$0xff]  }
 0x21b   :  { %3349 = vmatpush1.bf16.msra.mxu0 %v6052_v49  ;;  %v6135_v49 = vld [vmem:[#allocation6 + $0xaec] ss:$16 sps:$4 sm:$0xff]  }
 0x21c   :  { %3392 = vmatpush1.bf16.msra.mxu1 %v6055_v50  ;;  %3350 = vmatprep.subr.bf16.mxu0 %v6060_v51 }
 0x21d   :  { %3393 = vmatprep.subr.bf16.mxu1 %v6063_v52 }
 0x21f   :  { %3351 = vmatpush1.bf16.msra.mxu0 %v6058_v53 }
 0x220   :  { %3394 = vmatpush1.bf16.msra.mxu1 %v6061_v54  ;;  %3352 = vmatprep.subr.bf16.mxu0 %v6066_v55 }
 0x221   :  { %3395 = vmatprep.subr.bf16.mxu1 %v6069_v56 }
 0x223   :  { %3353 = vmatpush1.bf16.msra.mxu0 %v6064_v57 }
 0x224   :  { %3396 = vmatpush1.bf16.msra.mxu1 %v6067_v58  ;;  %3354 = vmatprep.subr.bf16.mxu0 %v6072_v59 }
 0x225   :  { %3397 = vmatprep.subr.bf16.mxu1 %v6075_v28 }
 0x227   :  { %3355 = vmatpush1.bf16.msra.mxu0 %v6070_v60 }
 0x228   :  { %3398 = vmatpush1.bf16.msra.mxu1 %v6073_v29  ;;  %3356 = vmatprep.subr.bf16.mxu0 %v6078_v42 }
 0x229   :  { %3399 = vmatprep.subr.bf16.mxu1 %v6081_v43 }
 0x22b   :  { %3357 = vmatpush1.bf16.msra.mxu0 %v6076_v44 }
 0x22c   :  { %3400 = vmatpush1.bf16.msra.mxu1 %v6079_v45  ;;  %3358 = vmatprep.subr.bf16.mxu0 %v6084_v61 }
 0x22d   :  { %3401 = vmatprep.subr.bf16.mxu1 %v6087_v23 }
 0x22f   :  { %3359 = vmatpush2.bf16.msra.mxu0 %v6082_v13 }
 0x230   :  { %3402 = vmatpush2.bf16.msra.mxu1 %v6085_v62  ;;  %3360 = vmatprep.subr.bf16.mxu0 %v6090_v63 }
 0x231   :  { %3403 = vmatprep.subr.bf16.mxu1 %v6093_v0 }
 0x233   :  { %3361 = vmatpush2.bf16.msra.mxu0 %v6088_v1 }
 0x234   :  { %3404 = vmatpush2.bf16.msra.mxu1 %v6091_v2  ;;  %3362 = vmatprep.subr.bf16.mxu0 %v6096_v3 }
 0x235   :  { %3405 = vmatprep.subr.bf16.mxu1 %v6099_v4 }
 0x237   :  { %3363 = vmatpush2.bf16.msra.mxu0 %v6094_v5 }
 0x238   :  { %3406 = vmatpush2.bf16.msra.mxu1 %v6097_v6  ;;  %3364 = vmatprep.subr.bf16.mxu0 %v6102_v8 }
 0x239   :  { %3407 = vmatprep.subr.bf16.mxu1 %v6105_v9 }
 0x23b   :  { %3365 = vmatpush2.bf16.msra.mxu0 %v6100_v15 }
 0x23c   :  { %3408 = vmatpush2.bf16.msra.mxu1 %v6103_v16  ;;  %3366 = vmatprep.subr.bf16.mxu0 %v6108_v24 }
 0x23d   :  { %3409 = vmatprep.subr.bf16.mxu1 %v6111_v25 }
 0x23f   :  { %3367 = vmatpush2.bf16.msra.mxu0 %v6106_v26 }
 0x240   :  { %3410 = vmatpush2.bf16.msra.mxu1 %v6109_v27  ;;  %3368 = vmatprep.subr.bf16.mxu0 %v6114_v30 }
 0x241   :  { %3411 = vmatprep.subr.bf16.mxu1 %v6117_v31 }
 0x243   :  { %3369 = vmatpush2.bf16.msra.mxu0 %v6112_v32 }
 0x244   :  { %3412 = vmatpush2.bf16.msra.mxu1 %v6115_v33  ;;  %3370 = vmatprep.subr.bf16.mxu0 %v6120_v34 }
 0x245   :  { %3413 = vmatprep.subr.bf16.mxu1 %v6123_v35 }
 0x247   :  { %3371 = vmatpush2.bf16.msra.mxu0 %v6118_v36 }
 0x248   :  { %3414 = vmatpush2.bf16.msra.mxu1 %v6121_v37  ;;  %3372 = vmatprep.subr.bf16.mxu0 %v6126_v39 }
 0x249   :  { %3415 = vmatprep.subr.bf16.mxu1 %v6129_v46 }
 0x24b   :  { %3373 = vmatpush2.bf16.msra.mxu0 %v6124_v38 }
 0x24c   :  { %3416 = vmatpush2.bf16.msra.mxu1 %v6127_v14  ;;  %3428 = vmatprep.subr.bf16.mxu0 %v6132_v48 }
 0x24d   :  { %3471 = vmatprep.subr.bf16.mxu1 %v6135_v49 }
 0x28e   :  { %v2156_v40 = vpop.f32.mrf.mxu0 }
 0x28f   :  { %v2199_v41 = vpop.f32.mrf.mxu1 }
 0x290   :  { %v2158_v20 = vpop.f32.mrf.mxu0  ;;  %v2200_v57 = vadd.f32 %v2199_v41, %v2156_v40 }
 0x291   :  { %v2201_v47 = vpop.f32.mrf.mxu1 }
 0x292   :  { %v2160_v50 = vpop.f32.mrf.mxu0  ;;  %v2202_v56 = vadd.f32 %v2201_v47, %v2158_v20 }
 0x293   :  { %v2203_v51 = vpop.f32.mrf.mxu1 }
 0x294   :  { %v2162_v52 = vpop.f32.mrf.mxu0  ;;  %v2204_v55 = vadd.f32 %v2203_v51, %v2160_v50 }
 0x295   :  { %v2205_v53 = vpop.f32.mrf.mxu1 }
 0x296   :  { %v2206_v54 = vadd.f32 %v2205_v53, %v2162_v52  ;;  %v2294_v59 = vadd.f32 %v2204_v55, %v2200_v57 }
 0x298   :  { %v2301_v58 = vadd.f32 %v2206_v54, %v2202_v56  ;;  %v2295_v60 = vrot.slane %v2294_v59, 4 }
 0x29a   :  { %v2302_v28 = vrot.slane %v2301_v58, 4  ;;  %v2296_v42 = vadd.f32 %v2295_v60, %v2294_v59 }
 0x29c   :  { %v2303_v29 = vadd.f32 %v2302_v28, %v2301_v58  ;;  %v2297_v44 = vrot.slane %v2296_v42, 2 }
 0x29e   :  { %v2304_v43 = vrot.slane %v2303_v29, 2  ;;  %v2298_v61 = vadd.f32 %v2297_v44, %v2296_v42 }
 0x2a0   :  { %v2305_v45 = vadd.f32 %v2304_v43, %v2303_v29  ;;  %v2299_v13 = vrot.slane %v2298_v61, 1 }
 0x2a2   :  { %v2306_v23 = vrot.slane %v2305_v45, 1  ;;  %v2300_v63 = vadd.f32 %v2299_v13, %v2298_v61 }
 0x2a4   :  { %v2307_v62 = vadd.f32 %v2306_v23, %v2305_v45  ;;  %v2322_v1 = vmul.f32 0.0625, %v2300_v63 }
 0x2a6   :  { %v2323_v0 = vmul.f32 0.0625, %v2307_v62  ;;  %v6685_v5 = vsub.f32 %v2200_v57, %v2322_v1  ;;  %v6687_v6 = vsub.f32 %v2204_v55, %v2322_v1 }
 0x2a8   :  { %v6681_v2 = vsub.f32 %v2202_v56, %v2323_v0  ;;  %v6683_v3 = vsub.f32 %v2206_v54, %v2323_v0  ;;  %v2334_v26 = vmul.f32 %v6685_v5, %v6685_v5  ;;  %v2338_v27 = vmul.f32 %v6687_v6, %v6687_v6 }
 0x2aa   :  { %v2335_v16 = vmul.f32 %v6681_v2, %v6681_v2  ;;  %v2339_v24 = vmul.f32 %v6683_v3, %v6683_v3  ;;  %v2342_v39 = vadd.f32 %v2338_v27, %v2334_v26 }
 0x2ac   :  { %v2349_v35 = vadd.f32 %v2339_v24, %v2335_v16  ;;  %v2343_v47 = vrot.slane %v2342_v39, 4 }
 0x2ae   :  { %v2350_v14 = vrot.slane %v2349_v35, 4  ;;  %v2344_v53 = vadd.f32 %v2343_v47, %v2342_v39 }
 0x2b0   :  { %v2351_v50 = vadd.f32 %v2350_v14, %v2349_v35  ;;  %v2345_v59 = vrot.slane %v2344_v53, 2 }
 0x2b2   :  { %v2352_v56 = vrot.slane %v2351_v50, 2  ;;  %v2346_v45 = vadd.f32 %v2345_v59, %v2344_v53 }
 0x2b4   :  { %v2353_v29 = vadd.f32 %v2352_v56, %v2351_v50  ;;  %v2375_v56 = vld [vmem:[#allocation8 + $0x8] sm:$0xff] }
 0x2b5   :  { %v2460_v59 = vrot.slane %v2375_v56, %v6633_v11 }
 0x2b6   :  { %v2354_v63 = vrot.slane %v2353_v29, 1 }
 0x2b8   :  { %v2355_v16 = vadd.f32 %v2354_v63, %v2353_v29  ;;  %v2464_v29 = vrot.slane %v2375_v56, %v6641_v19 }
 0x2ce   :  { %v2242_v4 = vpop.f32.mrf.mxu0 }
 0x2cf   :  { %v2285_v8 = vpop.f32.mrf.mxu1 }
 0x2d0   :  { %v2244_v9 = vpop.f32.mrf.mxu0  ;;  %v2286_v31 = vadd.f32 %v2285_v8, %v2242_v4  ;;  %v2347_v8 = vrot.slane %v2346_v45, 1 }
 0x2d1   :  { %v2287_v15 = vpop.f32.mrf.mxu1 }
 0x2d2   :  { %v2246_v25 = vpop.f32.mrf.mxu0  ;;  %v2288_v36 = vadd.f32 %v2287_v15, %v2244_v9  ;;  %v2348_v26 = vadd.f32 %v2347_v8, %v2346_v45 }
 0x2d3   :  { %v2289_v30 = vpop.f32.mrf.mxu1 }
 0x2d4   :  { %v2290_v32 = vadd.f32 %v2289_v30, %v2246_v25  ;;  %v2248_v33 = vpop.f32.mrf.mxu0 }
 0x2d5   :  { %v2291_v34 = vpop.f32.mrf.mxu1 }
 0x2d6   :  { %v2308_v37 = vadd.f32 %v2290_v32, %v2286_v31  ;;  %v2292_v38 = vadd.f32 %v2291_v34, %v2248_v33  ;;  %v2370_v34 = vmul.f32 0.0625, %v2348_v26 }
 0x2d8   :  { %v2309_v40 = vrot.slane %v2308_v37, 4  ;;  %v2315_v41 = vadd.f32 %v2292_v38, %v2288_v36 }
 0x2da   :  { %v2310_v46 = vadd.f32 %v2309_v40, %v2308_v37  ;;  %v2316_v20 = vrot.slane %v2315_v41, 4  ;;  %v2376_v40 = vadd.f32 1e-05, %v2370_v34 }
 0x2dc   :  { %v2311_v48 = vrot.slane %v2310_v46, 2  ;;  %v2317_v49 = vadd.f32 %v2316_v20, %v2315_v41 }
 0x2de   :  { %v2312_v51 = vadd.f32 %v2311_v48, %v2310_v46  ;;  %v2318_v52 = vrot.slane %v2317_v49, 2 }
 0x2e0   :  { %v2313_v54 = vrot.slane %v2312_v51, 1  ;;  %v2319_v55 = vadd.f32 %v2318_v52, %v2317_v49 }
 0x2e2   :  { %v2314_v57 = vadd.f32 %v2313_v54, %v2312_v51  ;;  %v2320_v58 = vrot.slane %v2319_v55, 1 }
 0x2e4   :  { %v2324_v28 = vmul.f32 0.0625, %v2314_v57  ;;  %v2321_v60 = vadd.f32 %v2320_v58, %v2319_v55  ;;  %v2468_v58 = vrot.slane %v2375_v56, %v6631_v10 }
 0x2e6   :  { %v6697_v42 = vsub.f32 %v2286_v31, %v2324_v28  ;;  %v6699_v43 = vsub.f32 %v2290_v32, %v2324_v28  ;;  %v2325_v44 = vmul.f32 0.0625, %v2321_v60  ;;  %v2371_v31 = vmul.f32 0.0625, %v2355_v16 }
 0x2e7   :  { %v2456_v60 = vrot.slane %v2375_v56, %v6639_v18  ;;  %v2488_v63 = vrot.slane %v2468_v58, %v6639_v18  ;;  %v2484_v16 = vrot.slane %v2464_v29, %v6639_v18  ;;  %v6138_v58 = vld [vmem:[#allocation6 + $0x8cc] ss:$16 sps:$4 sm:$0xff]  }
 0x2e8   :  { %v2336_v61 = vmul.f32 %v6697_v42, %v6697_v42  ;;  %v2340_v23 = vmul.f32 %v6699_v43, %v6699_v43  ;;  %v2329_v13 = vsub.f32 %v2288_v36, %v2325_v44  ;;  %v2333_v62 = vsub.f32 %v2292_v38, %v2325_v44  ;;  %v6144_v29 = vld [vmem:[#allocation6 + $0x8ac] ss:$16 sps:$4 sm:$0xff]  }
 0x2e9   :  { %v2377_v37 = vadd.f32 1e-05, %v2371_v31 }
 0x2ea   :  { %v2356_v0 = vadd.f32 %v2340_v23, %v2336_v61  ;;  %v2337_v1 = vmul.f32 %v2329_v13, %v2329_v13  ;;  %v2341_v4 = vmul.f32 %v2333_v62, %v2333_v62 }
 0x2eb   :  { %6426 = vrsqrt.f32 %v2377_v37 }
 0x2ec   :  { %v2357_v9 = vrot.slane %v2356_v0, 4  ;;  %v2363_v15 = vadd.f32 %v2341_v4, %v2337_v1  ;;  %6428 = vrsqrt.f32 %v2376_v40 }
 0x2ee   :  { %v2358_v24 = vadd.f32 %v2357_v9, %v2356_v0  ;;  %v2364_v25 = vrot.slane %v2363_v15, 4  ;;  %v2480_v0 = vrot.slane %v2460_v59, %v6639_v18  ;;  %v6141_v59 = vld [vmem:[#allocation6 + $0xacc] ss:$16 sps:$4 sm:$0xff]  }
 0x2f0   :  { %v2359_v27 = vrot.slane %v2358_v24, 2  ;;  %v2365_v30 = vadd.f32 %v2364_v25, %v2363_v15  ;;  %v2476_v15 = vrot.slane %v2456_v60, %v6639_v18  ;;  %v6139_v60 = vld [vmem:[#allocation6 + $0xac8] ss:$16 sps:$4 sm:$0xff]  }
 0x2f2   :  { %v2360_v32 = vadd.f32 %v2359_v27, %v2358_v24  ;;  %v2366_v33 = vrot.slane %v2365_v30, 2 }
 0x2f4   :  { %v2361_v35 = vrot.slane %v2360_v32, 1  ;;  %v2367_v36 = vadd.f32 %v2366_v33, %v2365_v30 }
 0x2f6   :  { %v2362_v38 = vadd.f32 %v2361_v35, %v2360_v32  ;;  %v2368_v39 = vrot.slane %v2367_v36, 1 }
 0x2f8   :  { %v2372_v41 = vmul.f32 0.0625, %v2362_v38  ;;  %v2369_v14 = vadd.f32 %v2368_v39, %v2367_v36  ;;  %v6427_v48 = vpop.eup %6426 }
 0x2f9   :  { %v6429_v49 = vpop.eup %6428 }
 0x2fa   :  { %v2378_v46 = vadd.f32 1e-05, %v2372_v41  ;;  %v2373_v20 = vmul.f32 0.0625, %v2369_v14  ;;  %v2388_v51 = vcombine.low %v6429_v49, %v6427_v48 }
 0x2fc   :  { %v2379_v47 = vadd.f32 1e-05, %v2373_v20  ;;  %6430 = vrsqrt.f32 %v2378_v46  ;;  %v2396_v54 = vrot.slane %v2388_v51, %v6629_v7  ;;  %v6130_v51 = vld [vmem:[#allocation6 + $0x8e8] ss:$16 sps:$4 sm:$0xff]  }
 0x2fe   :  { %6432 = vrsqrt.f32 %v2379_v47 }
 0x309   :  { %v6431_v50 = vpop.eup %6430 }
 0x30b   :  { %v6433_v52 = vpop.eup %6432 }
 0x30c   :  { %v2389_v53 = vcombine.low %v6431_v50, %v6433_v52 }
 0x30e   :  { %v2403_v55 = vrot.slane %v2389_v53, %v6629_v7  ;;  %v6133_v53 = vld [vmem:[#allocation6 + $0xae8] ss:$16 sps:$4 sm:$0xff]  }
 0x310   :  { %v2404_v57 = vcombine.low %v2396_v54, %v2403_v55 }
 0x312   :  { %v2406_v28 = vmul.f32 %v2404_v57, %v2375_v56 }
 0x314   :  { %v2423_v44 = vrot.slane %v2406_v28, %v6643_v21  ;;  %v2415_v45 = vrot.slane %v2406_v28, %v6645_v22  ;;  %v2411_v61 = vrot.slane %v2406_v28, %v6637_v17  ;;  %v2419_v23 = vrot.slane %v2406_v28, %v6647_v12  ;;  %v6136_v28 = vld [vmem:[#allocation6 + $0x8c8] ss:$16 sps:$4 sm:$0xff]  }
 0x316   :  { %v2443_v1 = vrot.slane %v2423_v44, %v6637_v17  ;;  %v2435_v4 = vrot.slane %v2415_v45, %v6637_v17  ;;  %v2431_v8 = vrot.slane %v2411_v61, %v6637_v17  ;;  %v2439_v9 = vrot.slane %v2419_v23, %v6637_v17  ;;  %v6147_v44 = vld [vmem:[#allocation6 + $0xaac] ss:$16 sps:$4 sm:$0xff]   ;;  %v6142_v45 = vld [vmem:[#allocation6 + $0x8a8] ss:$16 sps:$4 sm:$0xff]  }
 0x317   :  { %v6145_v61 = vld [vmem:[#allocation6 + $0xaa8] ss:$16 sps:$4 sm:$0xff]   ;;  %v6150_v23 = vld [vmem:[#allocation6 + $0x88c] ss:$16 sps:$4 sm:$0xff]  }
 0x318   :  { %v2447_v24 = vmul.f32 %v2443_v1, %v2329_v13  ;;  %v2451_v25 = vmul.f32 %v2443_v1, %v2333_v62  ;;  %v2445_v26 = vmul.f32 %v2435_v4, %v6681_v2  ;;  %v2449_v27 = vmul.f32 %v2435_v4, %v6683_v3  ;;  %v6151_v1 = vld [vmem:[#allocation6 + $0xa88] ss:$16 sps:$4 sm:$0xff]   ;;  %v6156_v4 = vld [vmem:[#allocation6 + $0x86c] ss:$16 sps:$4 sm:$0xff]  }
 0x319   :  { %v2444_v30 = vmul.f32 %v2431_v8, %v6685_v5  ;;  %v2448_v31 = vmul.f32 %v2431_v8, %v6687_v6  ;;  %v2446_v32 = vmul.f32 %v2439_v9, %v6697_v42  ;;  %v2450_v33 = vmul.f32 %v2439_v9, %v6699_v43  ;;  %v6159_v8 = vld [vmem:[#allocation6 + $0xa6c] ss:$16 sps:$4 sm:$0xff]   ;;  %v6154_v9 = vld [vmem:[#allocation6 + $0x868] ss:$16 sps:$4 sm:$0xff]  }
 0x31a   :  { %v2496_v34 = vadd.f32 %v2488_v63, %v2451_v25  ;;  %v2490_v35 = vadd.f32 %v2480_v0, %v2445_v26  ;;  %v2494_v36 = vadd.f32 %v2480_v0, %v2449_v27  ;;  %v2492_v37 = vadd.f32 %v2488_v63, %v2447_v24  ;;  %v6153_v63 = vld [vmem:[#allocation6 + $0xa8c] ss:$16 sps:$4 sm:$0xff]   ;;  %v6148_v0 = vld [vmem:[#allocation6 + $0x888] ss:$16 sps:$4 sm:$0xff]  }
 0x31b   :  { %v2489_v38 = vadd.f32 %v2476_v15, %v2444_v30  ;;  %v2493_v39 = vadd.f32 %v2476_v15, %v2448_v31  ;;  %v2491_v13 = vadd.f32 %v2484_v16, %v2446_v32  ;;  %v2495_v62 = vadd.f32 %v2484_v16, %v2450_v33  ;;  %v6157_v15 = vld [vmem:[#allocation6 + $0xa68] ss:$16 sps:$4 sm:$0xff]   ;;  %v6162_v16 = vld [vmem:[#allocation6 + $0x84c] ss:$16 sps:$4 sm:$0xff]  }
 0x31c   :  { %vm2498_vm8 = vcmp.gt.f32.partialorder %v2490_v35, 0.0  ;;  %vm2502_vm9 = vcmp.gt.f32.partialorder %v2494_v36, 0.0  ;;  %v2506_v2 = vmul.f32 0.2, %v2490_v35  ;;  %v2510_v3 = vmul.f32 0.2, %v2494_v36 }
 0x31d   :  { %vm2500_vm10 = vcmp.gt.f32.partialorder %v2492_v37, 0.0  ;;  %vm2504_vm11 = vcmp.gt.f32.partialorder %v2496_v34, 0.0  ;;  %v2508_v5 = vmul.f32 0.2, %v2492_v37  ;;  %v2512_v6 = vmul.f32 0.2, %v2496_v34 }
 0x31e   :  { %v2514_v40 = vsel %vm2498_vm8, %v2490_v35, %v2506_v2  ;;  %v2518_v42 = vsel %vm2502_vm9, %v2494_v36, %v2510_v3  ;;  %vm2497_vm12 = vcmp.gt.f32.partialorder %v2489_v38, 0.0  ;;  %vm2501_vm13 = vcmp.gt.f32.partialorder %v2493_v39, 0.0  ;;  %v6165_v24 = vld [vmem:[#allocation6 + $0xa4c] ss:$16 sps:$4 sm:$0xff]   ;;  %v6160_v25 = vld [vmem:[#allocation6 + $0x848] ss:$16 sps:$4 sm:$0xff]  }
 0x31f   :  { %v5632_v43 = vpack.c.bf16 %v2518_v42, %v2514_v40  ;;  %v2516_v41 = vsel %vm2500_vm10, %v2492_v37, %v2508_v5  ;;  %v2520_v14 = vsel %vm2504_vm11, %v2496_v34, %v2512_v6  ;;  %v2505_v46 = vmul.f32 0.2, %v2489_v38  ;;  %v6163_v26 = vld [vmem:[#allocation6 + $0xa48] ss:$16 sps:$4 sm:$0xff]   ;;  %v6168_v27 = vld [vmem:[#allocation6 + $0x82c] ss:$16 sps:$4 sm:$0xff]  }
 0x320   :  { %v5634_v20 = vpack.c.bf16 %v2520_v14, %v2516_v41  ;;  %v2509_v47 = vmul.f32 0.2, %v2493_v39  ;;  %vm2499_vm14 = vcmp.gt.f32.partialorder %v2491_v13, 0.0  ;;  %vm2503_vm15 = vcmp.gt.f32.partialorder %v2495_v62, 0.0  ;;  %v6171_v30 = vld [vmem:[#allocation6 + $0xa2c] ss:$16 sps:$4 sm:$0xff]  }
 0x321   :  { %3374 = vmatprep.mubr.bf16.mxu0 %v5632_v43  ;;  %v2513_v48 = vsel %vm2497_vm12, %v2489_v38, %v2505_v46  ;;  %v2507_v49 = vmul.f32 0.2, %v2491_v13  ;;  %v2511_v50 = vmul.f32 0.2, %v2495_v62  ;;  %v6166_v31 = vld [vmem:[#allocation6 + $0x828] ss:$16 sps:$4 sm:$0xff]  }
 0x322   :  { %3417 = vmatprep.mubr.bf16.mxu1 %v5634_v20  ;;  %v2517_v52 = vsel %vm2501_vm13, %v2493_v39, %v2509_v47  ;;  %v6169_v32 = vld [vmem:[#allocation6 + $0xa28] ss:$16 sps:$4 sm:$0xff]   ;;  %v6174_v33 = vld [vmem:[#allocation6 + $0x80c] ss:$16 sps:$4 sm:$0xff]  }
 0x323   :  { %v6729_v54 = vpack.c.bf16 %v2517_v52, %v2513_v48  ;;  %v2515_v55 = vsel %vm2499_vm14, %v2491_v13, %v2507_v49  ;;  %v2519_v56 = vsel %vm2503_vm15, %v2495_v62, %v2511_v50  ;;  %v6177_v34 = vld [vmem:[#allocation6 + $0xa0c] ss:$16 sps:$4 sm:$0xff]   ;;  %v6172_v35 = vld [vmem:[#allocation6 + $0x808] ss:$16 sps:$4 sm:$0xff]  }
 0x324   :  { %v6731_v57 = vpack.c.bf16 %v2519_v56, %v2515_v55  ;;  %v6175_v36 = vld [vmem:[#allocation6 + $0xa08] ss:$16 sps:$4 sm:$0xff]   ;;  %v6180_v37 = vld [vmem:[#allocation6 + $0x9ec] ss:$16 sps:$4 sm:$0xff]  }
 0x325   :  { %3375 = vmatmul.mubr.bf16.vlgmr.msra.gmra.mxu0 %v6729_v54  ;;  %v6183_v38 = vld [vmem:[#allocation6 + $0xbec] ss:$16 sps:$4 sm:$0xff]   ;;  %v6178_v39 = vld [vmem:[#allocation6 + $0x9e8] ss:$16 sps:$4 sm:$0xff]  }
 0x326   :  { %3418 = vmatmul.mubr.bf16.vlgmr.msra.gmra.mxu1 %v6731_v57  ;;  %3429 = vmatpush1.bf16.msra.mxu0 %v6130_v51  ;;  %v6181_v13 = vld [vmem:[#allocation6 + $0xbe8] ss:$16 sps:$4 sm:$0xff]   ;;  %v6186_v62 = vld [vmem:[#allocation6 + $0x9cc] ss:$16 sps:$4 sm:$0xff]  }
 0x327   :  { %3472 = vmatpush1.bf16.msra.mxu1 %v6133_v53  ;;  %3460 = vmatprep.mubr.bf16.mxu0 %v5632_v43  ;;  %v6189_v2 = vld [vmem:[#allocation6 + $0xbcc] ss:$16 sps:$4 sm:$0xff]   ;;  %v6184_v3 = vld [vmem:[#allocation6 + $0x9c8] ss:$16 sps:$4 sm:$0xff]  }
 0x328   :  { %3503 = vmatprep.mubr.bf16.mxu1 %v5634_v20  ;;  %3430 = vmatprep.subr.bf16.mxu0 %v6138_v58  ;;  %v6187_v5 = vld [vmem:[#allocation6 + $0xbc8] ss:$16 sps:$4 sm:$0xff]   ;;  %v6192_v6 = vld [vmem:[#allocation6 + $0x9ac] ss:$16 sps:$4 sm:$0xff]  }
 0x329   :  { %3473 = vmatprep.subr.bf16.mxu1 %v6141_v59  ;;  %v6195_v40 = vld [vmem:[#allocation6 + $0xbac] ss:$16 sps:$4 sm:$0xff]   ;;  %v6190_v42 = vld [vmem:[#allocation6 + $0x9a8] ss:$16 sps:$4 sm:$0xff]  }
 0x32a   :  { %3431 = vmatpush1.bf16.msra.mxu0 %v6136_v28  ;;  %v6193_v43 = vld [vmem:[#allocation6 + $0xba8] ss:$16 sps:$4 sm:$0xff]   ;;  %v6198_v41 = vld [vmem:[#allocation6 + $0x98c] ss:$16 sps:$4 sm:$0xff]  }
 0x32b   :  { %3474 = vmatpush1.bf16.msra.mxu1 %v6139_v60  ;;  %3432 = vmatprep.subr.bf16.mxu0 %v6144_v29  ;;  %v6201_v14 = vld [vmem:[#allocation6 + $0xb8c] ss:$16 sps:$4 sm:$0xff]   ;;  %v6196_v46 = vld [vmem:[#allocation6 + $0x988] ss:$16 sps:$4 sm:$0xff]  }
 0x32c   :  { %3475 = vmatprep.subr.bf16.mxu1 %v6147_v44  ;;  %v6199_v20 = vld [vmem:[#allocation6 + $0xb88] ss:$16 sps:$4 sm:$0xff]   ;;  %v6204_v47 = vld [vmem:[#allocation6 + $0x96c] ss:$16 sps:$4 sm:$0xff]  }
 0x32d   :  { %v6207_v48 = vld [vmem:[#allocation6 + $0xb6c] ss:$16 sps:$4 sm:$0xff]   ;;  %v6202_v49 = vld [vmem:[#allocation6 + $0x968] ss:$16 sps:$4 sm:$0xff]  }
 0x32e   :  { %3433 = vmatpush1.bf16.msra.mxu0 %v6142_v45  ;;  %v6205_v50 = vld [vmem:[#allocation6 + $0xb68] ss:$16 sps:$4 sm:$0xff]   ;;  %v6210_v51 = vld [vmem:[#allocation6 + $0x94c] ss:$16 sps:$4 sm:$0xff]  }
 0x32f   :  { %3476 = vmatpush1.bf16.msra.mxu1 %v6145_v61  ;;  %3434 = vmatprep.subr.bf16.mxu0 %v6150_v23  ;;  %v6213_v52 = vld [vmem:[#allocation6 + $0xb4c] ss:$16 sps:$4 sm:$0xff]   ;;  %v6208_v53 = vld [vmem:[#allocation6 + $0x948] ss:$16 sps:$4 sm:$0xff]   ;;  %v6228_v61 = vld [vmem:[#allocation6 + $0xce4] ss:$16 sps:$4 sm:$0xff]  }
 0x330   :  { %3477 = vmatprep.subr.bf16.mxu1 %v6153_v63  ;;  %v6211_v55 = vld [vmem:[#allocation6 + $0xb48] ss:$16 sps:$4 sm:$0xff]   ;;  %v6216_v56 = vld [vmem:[#allocation6 + $0x92c] ss:$16 sps:$4 sm:$0xff]   ;;  %v6231_v23 = vld [vmem:[#allocation6 + $0xee4] ss:$16 sps:$4 sm:$0xff]  }
 0x331   :  { %v6219_v58 = vld [vmem:[#allocation6 + $0xb2c] ss:$16 sps:$4 sm:$0xff]   ;;  %v6214_v59 = vld [vmem:[#allocation6 + $0x928] ss:$16 sps:$4 sm:$0xff]   ;;  %v6226_v63 = vld [vmem:[#allocation6 + $0xce0] ss:$16 sps:$4 sm:$0xff]  }
 0x332   :  { %3435 = vmatpush1.bf16.msra.mxu0 %v6148_v0  ;;  %v6217_v28 = vld [vmem:[#allocation6 + $0xb28] ss:$16 sps:$4 sm:$0xff]   ;;  %v6222_v60 = vld [vmem:[#allocation6 + $0x90c] ss:$16 sps:$4 sm:$0xff]   ;;  %v6229_v0 = vld [vmem:[#allocation6 + $0xee0] ss:$16 sps:$4 sm:$0xff]  }
 0x333   :  { %3478 = vmatpush1.bf16.msra.mxu1 %v6151_v1  ;;  %3436 = vmatprep.subr.bf16.mxu0 %v6156_v4  ;;  %v6225_v29 = vld [vmem:[#allocation6 + $0xb0c] ss:$16 sps:$4 sm:$0xff]   ;;  %v6220_v44 = vld [vmem:[#allocation6 + $0x908] ss:$16 sps:$4 sm:$0xff]   ;;  %v6234_v1 = vld [vmem:[#allocation6 + $0xcc4] ss:$16 sps:$4 sm:$0xff]  }
 0x334   :  { %3479 = vmatprep.subr.bf16.mxu1 %v6159_v8  ;;  %v6223_v45 = vld [vmem:[#allocation6 + $0xb08] ss:$16 sps:$4 sm:$0xff]   ;;  %v6237_v4 = vld [vmem:[#allocation6 + $0xec4] ss:$16 sps:$4 sm:$0xff]   ;;  %v6232_v8 = vld [vmem:[#allocation6 + $0xcc0] ss:$16 sps:$4 sm:$0xff]  }
 0x336   :  { %3437 = vmatpush1.bf16.msra.mxu0 %v6154_v9  ;;  %v6235_v9 = vld [vmem:[#allocation6 + $0xec0] ss:$16 sps:$4 sm:$0xff]  }
 0x337   :  { %3480 = vmatpush1.bf16.msra.mxu1 %v6157_v15  ;;  %3438 = vmatprep.subr.bf16.mxu0 %v6162_v16  ;;  %v6240_v15 = vld [vmem:[#allocation6 + $0xca4] ss:$16 sps:$4 sm:$0xff]   ;;  %v6238_v16 = vld [vmem:[#allocation6 + $0xca0] ss:$16 sps:$4 sm:$0xff]  }
 0x338   :  { %3481 = vmatprep.subr.bf16.mxu1 %v6165_v24  ;;  %v6246_v24 = vld [vmem:[#allocation6 + $0xc84] ss:$16 sps:$4 sm:$0xff]  }
 0x33a   :  { %3439 = vmatpush1.bf16.msra.mxu0 %v6160_v25  ;;  %v6249_v25 = vld [vmem:[#allocation6 + $0xe84] ss:$16 sps:$4 sm:$0xff]  }
 0x33b   :  { %3482 = vmatpush1.bf16.msra.mxu1 %v6163_v26  ;;  %3440 = vmatprep.subr.bf16.mxu0 %v6168_v27  ;;  %v6244_v26 = vld [vmem:[#allocation6 + $0xc80] ss:$16 sps:$4 sm:$0xff]  }
 0x33c   :  { %3483 = vmatprep.subr.bf16.mxu1 %v6171_v30  ;;  %v6247_v27 = vld [vmem:[#allocation6 + $0xe80] ss:$16 sps:$4 sm:$0xff]   ;;  %v6252_v30 = vld [vmem:[#allocation6 + $0xc64] ss:$16 sps:$4 sm:$0xff]  }
 0x33e   :  { %3441 = vmatpush1.bf16.msra.mxu0 %v6166_v31  ;;  %v6255_v31 = vld [vmem:[#allocation6 + $0xe64] ss:$16 sps:$4 sm:$0xff]  }
 0x33f   :  { %3484 = vmatpush1.bf16.msra.mxu1 %v6169_v32  ;;  %3442 = vmatprep.subr.bf16.mxu0 %v6174_v33  ;;  %v6250_v32 = vld [vmem:[#allocation6 + $0xc60] ss:$16 sps:$4 sm:$0xff]  }
 0x340   :  { %3485 = vmatprep.subr.bf16.mxu1 %v6177_v34  ;;  %v6253_v33 = vld [vmem:[#allocation6 + $0xe60] ss:$16 sps:$4 sm:$0xff]   ;;  %v6258_v34 = vld [vmem:[#allocation6 + $0xc44] ss:$16 sps:$4 sm:$0xff]  }
 0x342   :  { %3443 = vmatpush1.bf16.msra.mxu0 %v6172_v35  ;;  %v6261_v35 = vld [vmem:[#allocation6 + $0xe44] ss:$16 sps:$4 sm:$0xff]  }
 0x343   :  { %3486 = vmatpush1.bf16.msra.mxu1 %v6175_v36  ;;  %3444 = vmatprep.subr.bf16.mxu0 %v6180_v37  ;;  %v6256_v36 = vld [vmem:[#allocation6 + $0xc40] ss:$16 sps:$4 sm:$0xff]  }
 0x344   :  { %3487 = vmatprep.subr.bf16.mxu1 %v6183_v38  ;;  %v6259_v37 = vld [vmem:[#allocation6 + $0xe40] ss:$16 sps:$4 sm:$0xff]   ;;  %v6264_v38 = vld [vmem:[#allocation6 + $0xc24] ss:$16 sps:$4 sm:$0xff]  }
 0x346   :  { %3445 = vmatpush2.bf16.msra.mxu0 %v6178_v39  ;;  %v6267_v39 = vld [vmem:[#allocation6 + $0xe24] ss:$16 sps:$4 sm:$0xff]  }
 0x347   :  { %3488 = vmatpush2.bf16.msra.mxu1 %v6181_v13  ;;  %3446 = vmatprep.subr.bf16.mxu0 %v6186_v62  ;;  %v6262_v13 = vld [vmem:[#allocation6 + $0xc20] ss:$16 sps:$4 sm:$0xff]  }
 0x348   :  { %3489 = vmatprep.subr.bf16.mxu1 %v6189_v2  ;;  %v6265_v62 = vld [vmem:[#allocation6 + $0xe20] ss:$16 sps:$4 sm:$0xff]   ;;  %v6270_v2 = vld [vmem:[#allocation6 + $0xc04] ss:$16 sps:$4 sm:$0xff]  }
 0x34a   :  { %3447 = vmatpush2.bf16.msra.mxu0 %v6184_v3  ;;  %v6273_v3 = vld [vmem:[#allocation6 + $0xe04] ss:$16 sps:$4 sm:$0xff]  }
 0x34b   :  { %3490 = vmatpush2.bf16.msra.mxu1 %v6187_v5  ;;  %3448 = vmatprep.subr.bf16.mxu0 %v6192_v6  ;;  %v6268_v5 = vld [vmem:[#allocation6 + $0xc00] ss:$16 sps:$4 sm:$0xff]  }
 0x34c   :  { %3491 = vmatprep.subr.bf16.mxu1 %v6195_v40  ;;  %v6271_v6 = vld [vmem:[#allocation6 + $0xe00] ss:$16 sps:$4 sm:$0xff]   ;;  %v6276_v40 = vld [vmem:[#allocation6 + $0xde4] ss:$16 sps:$4 sm:$0xff]  }
 0x34e   :  { %3449 = vmatpush2.bf16.msra.mxu0 %v6190_v42  ;;  %v6279_v42 = vld [vmem:[#allocation6 + $0xfe4] ss:$16 sps:$4 sm:$0xff]  }
 0x34f   :  { %3492 = vmatpush2.bf16.msra.mxu1 %v6193_v43  ;;  %3450 = vmatprep.subr.bf16.mxu0 %v6198_v41  ;;  %v6274_v43 = vld [vmem:[#allocation6 + $0xde0] ss:$16 sps:$4 sm:$0xff]  }
 0x350   :  { %3493 = vmatprep.subr.bf16.mxu1 %v6201_v14  ;;  %v6277_v41 = vld [vmem:[#allocation6 + $0xfe0] ss:$16 sps:$4 sm:$0xff]   ;;  %v6282_v14 = vld [vmem:[#allocation6 + $0xdc4] ss:$16 sps:$4 sm:$0xff]  }
 0x352   :  { %3451 = vmatpush2.bf16.msra.mxu0 %v6196_v46  ;;  %v6285_v46 = vld [vmem:[#allocation6 + $0xfc4] ss:$16 sps:$4 sm:$0xff]  }
 0x353   :  { %3494 = vmatpush2.bf16.msra.mxu1 %v6199_v20  ;;  %3452 = vmatprep.subr.bf16.mxu0 %v6204_v47  ;;  %v6280_v20 = vld [vmem:[#allocation6 + $0xdc0] ss:$16 sps:$4 sm:$0xff]  }
 0x354   :  { %3495 = vmatprep.subr.bf16.mxu1 %v6207_v48  ;;  %v6283_v47 = vld [vmem:[#allocation6 + $0xfc0] ss:$16 sps:$4 sm:$0xff]   ;;  %v6288_v48 = vld [vmem:[#allocation6 + $0xda4] ss:$16 sps:$4 sm:$0xff]  }
 0x356   :  { %3453 = vmatpush2.bf16.msra.mxu0 %v6202_v49  ;;  %v6291_v49 = vld [vmem:[#allocation6 + $0xfa4] ss:$16 sps:$4 sm:$0xff]  }
 0x357   :  { %3496 = vmatpush2.bf16.msra.mxu1 %v6205_v50  ;;  %3454 = vmatprep.subr.bf16.mxu0 %v6210_v51  ;;  %v6286_v50 = vld [vmem:[#allocation6 + $0xda0] ss:$16 sps:$4 sm:$0xff]  }
 0x358   :  { %3497 = vmatprep.subr.bf16.mxu1 %v6213_v52  ;;  %v6289_v51 = vld [vmem:[#allocation6 + $0xfa0] ss:$16 sps:$4 sm:$0xff]   ;;  %v6294_v52 = vld [vmem:[#allocation6 + $0xd84] ss:$16 sps:$4 sm:$0xff]  }
 0x35a   :  { %3455 = vmatpush2.bf16.msra.mxu0 %v6208_v53  ;;  %v6297_v53 = vld [vmem:[#allocation6 + $0xf84] ss:$16 sps:$4 sm:$0xff]  }
 0x35b   :  { %3498 = vmatpush2.bf16.msra.mxu1 %v6211_v55  ;;  %3456 = vmatprep.subr.bf16.mxu0 %v6216_v56  ;;  %v6292_v55 = vld [vmem:[#allocation6 + $0xd80] ss:$16 sps:$4 sm:$0xff]  }
 0x35c   :  { %3499 = vmatprep.subr.bf16.mxu1 %v6219_v58  ;;  %v6295_v56 = vld [vmem:[#allocation6 + $0xf80] ss:$16 sps:$4 sm:$0xff]   ;;  %v6300_v58 = vld [vmem:[#allocation6 + $0xd64] ss:$16 sps:$4 sm:$0xff]  }
 0x35e   :  { %3457 = vmatpush2.bf16.msra.mxu0 %v6214_v59  ;;  %v6303_v59 = vld [vmem:[#allocation6 + $0xf64] ss:$16 sps:$4 sm:$0xff]  }
 0x35f   :  { %3500 = vmatpush2.bf16.msra.mxu1 %v6217_v28  ;;  %3458 = vmatprep.subr.bf16.mxu0 %v6222_v60  ;;  %v6298_v28 = vld [vmem:[#allocation6 + $0xd60] ss:$16 sps:$4 sm:$0xff]  }
 0x360   :  { %3501 = vmatprep.subr.bf16.mxu1 %v6225_v29  ;;  %v6301_v60 = vld [vmem:[#allocation6 + $0xf60] ss:$16 sps:$4 sm:$0xff]   ;;  %v6306_v29 = vld [vmem:[#allocation6 + $0xd44] ss:$16 sps:$4 sm:$0xff]  }
 0x362   :  { %3459 = vmatpush2.bf16.msra.mxu0 %v6220_v44  ;;  %v6309_v44 = vld [vmem:[#allocation6 + $0xf44] ss:$16 sps:$4 sm:$0xff]  }
 0x363   :  { %3502 = vmatpush2.bf16.msra.mxu1 %v6223_v45  ;;  %4562 = vmatprep.subr.bf16.mxu0 %v6228_v61  ;;  %v6304_v45 = vld [vmem:[#allocation6 + $0xd40] ss:$16 sps:$4 sm:$0xff]  }
 0x364   :  { %4605 = vmatprep.subr.bf16.mxu1 %v6231_v23  ;;  %v6307_v61 = vld [vmem:[#allocation6 + $0xf40] ss:$16 sps:$4 sm:$0xff]   ;;  %v6312_v23 = vld [vmem:[#allocation6 + $0xd24] ss:$16 sps:$4 sm:$0xff]  }
 0x365   :  { %3461 = vmatmul.mubr.bf16.vlgmr.msra.gmra.mxu0 %v6729_v54  ;;  %v6243_v54 = vld [vmem:[#allocation6 + $0xea4] ss:$16 sps:$4 sm:$0xff]  }
 0x366   :  { %3504 = vmatmul.mubr.bf16.vlgmr.msra.gmra.mxu1 %v6731_v57  ;;  %4563 = vmatpush1.bf16.msra.mxu0 %v6226_v63  ;;  %v6241_v57 = vld [vmem:[#allocation6 + $0xea0] ss:$16 sps:$4 sm:$0xff]   ;;  %v6315_v63 = vld [vmem:[#allocation6 + $0xf24] ss:$16 sps:$4 sm:$0xff]  }
 0x367   :  { %4606 = vmatpush1.bf16.msra.mxu1 %v6229_v0  ;;  %4564 = vmatprep.subr.bf16.mxu0 %v6234_v1  ;;  %v6310_v0 = vld [vmem:[#allocation6 + $0xd20] ss:$16 sps:$4 sm:$0xff]  }
 0x368   :  { %4607 = vmatprep.subr.bf16.mxu1 %v6237_v4  ;;  %v6313_v1 = vld [vmem:[#allocation6 + $0xf20] ss:$16 sps:$4 sm:$0xff]  }
 0x369   :  { %v6316_v4 = vld [vmem:[#allocation6 + $0xd00] ss:$16 sps:$4 sm:$0xff]  }
 0x36a   :  { %4565 = vmatpush1.bf16.msra.mxu0 %v6232_v8  ;;  %v6318_v8 = vld [vmem:[#allocation6 + $0xd04] ss:$16 sps:$4 sm:$0xff]  }
 0x36b   :  { %4608 = vmatpush1.bf16.msra.mxu1 %v6235_v9  ;;  %4566 = vmatprep.subr.bf16.mxu0 %v6240_v15 }
 0x36c   :  { %4609 = vmatprep.subr.bf16.mxu1 %v6243_v54  ;;  %v6319_v54 = vld [vmem:[#allocation6 + $0xf00] ss:$16 sps:$4 sm:$0xff]  }
 0x36e   :  { %4567 = vmatpush1.bf16.msra.mxu0 %v6238_v16  ;;  %v6321_v16 = vld [vmem:[#allocation6 + $0xf04] ss:$16 sps:$4 sm:$0xff]  }
 0x36f   :  { %4610 = vmatpush1.bf16.msra.mxu1 %v6241_v57  ;;  %4568 = vmatprep.subr.bf16.mxu0 %v6246_v24 }
 0x370   :  { %4611 = vmatprep.subr.bf16.mxu1 %v6249_v25  ;;  %v6324_v25 = vld [vmem:[#allocation6 + $0xcec] ss:$16 sps:$4 sm:$0xff]  }
 0x372   :  { %4569 = vmatpush1.bf16.msra.mxu0 %v6244_v26  ;;  %v6327_v26 = vld [vmem:[#allocation6 + $0xeec] ss:$16 sps:$4 sm:$0xff]  }
 0x373   :  { %4612 = vmatpush1.bf16.msra.mxu1 %v6247_v27  ;;  %4570 = vmatprep.subr.bf16.mxu0 %v6252_v30 }
 0x374   :  { %4613 = vmatprep.subr.bf16.mxu1 %v6255_v31 }
 0x376   :  { %4571 = vmatpush1.bf16.msra.mxu0 %v6250_v32 }
 0x377   :  { %4614 = vmatpush1.bf16.msra.mxu1 %v6253_v33  ;;  %4572 = vmatprep.subr.bf16.mxu0 %v6258_v34 }
 0x378   :  { %4615 = vmatprep.subr.bf16.mxu1 %v6261_v35 }
 0x37a   :  { %4573 = vmatpush1.bf16.msra.mxu0 %v6256_v36 }
 0x37b   :  { %4616 = vmatpush1.bf16.msra.mxu1 %v6259_v37  ;;  %4574 = vmatprep.subr.bf16.mxu0 %v6264_v38 }
 0x37c   :  { %4617 = vmatprep.subr.bf16.mxu1 %v6267_v39 }
 0x37e   :  { %4575 = vmatpush1.bf16.msra.mxu0 %v6262_v13 }
 0x37f   :  { %4618 = vmatpush1.bf16.msra.mxu1 %v6265_v62  ;;  %4576 = vmatprep.subr.bf16.mxu0 %v6270_v2 }
 0x380   :  { %4619 = vmatprep.subr.bf16.mxu1 %v6273_v3 }
 0x382   :  { %4577 = vmatpush1.bf16.msra.mxu0 %v6268_v5 }
 0x383   :  { %4620 = vmatpush1.bf16.msra.mxu1 %v6271_v6  ;;  %4578 = vmatprep.subr.bf16.mxu0 %v6276_v40 }
 0x384   :  { %4621 = vmatprep.subr.bf16.mxu1 %v6279_v42 }
 0x386   :  { %4579 = vmatpush2.bf16.msra.mxu0 %v6274_v43 }
 0x387   :  { %4622 = vmatpush2.bf16.msra.mxu1 %v6277_v41  ;;  %4580 = vmatprep.subr.bf16.mxu0 %v6282_v14 }
 0x388   :  { %4623 = vmatprep.subr.bf16.mxu1 %v6285_v46 }
 0x38a   :  { %4581 = vmatpush2.bf16.msra.mxu0 %v6280_v20 }
 0x38b   :  { %4624 = vmatpush2.bf16.msra.mxu1 %v6283_v47  ;;  %4582 = vmatprep.subr.bf16.mxu0 %v6288_v48 }
 0x38c   :  { %4625 = vmatprep.subr.bf16.mxu1 %v6291_v49 }
 0x38e   :  { %4583 = vmatpush2.bf16.msra.mxu0 %v6286_v50 }
 0x38f   :  { %4626 = vmatpush2.bf16.msra.mxu1 %v6289_v51  ;;  %4584 = vmatprep.subr.bf16.mxu0 %v6294_v52 }
 0x390   :  { %4627 = vmatprep.subr.bf16.mxu1 %v6297_v53 }
 0x392   :  { %4585 = vmatpush2.bf16.msra.mxu0 %v6292_v55 }
 0x393   :  { %4628 = vmatpush2.bf16.msra.mxu1 %v6295_v56  ;;  %4586 = vmatprep.subr.bf16.mxu0 %v6300_v58 }
 0x394   :  { %4629 = vmatprep.subr.bf16.mxu1 %v6303_v59 }
 0x396   :  { %4587 = vmatpush2.bf16.msra.mxu0 %v6298_v28 }
 0x397   :  { %4630 = vmatpush2.bf16.msra.mxu1 %v6301_v60  ;;  %4588 = vmatprep.subr.bf16.mxu0 %v6306_v29 }
 0x398   :  { %4631 = vmatprep.subr.bf16.mxu1 %v6309_v44 }
 0x39a   :  { %4589 = vmatpush2.bf16.msra.mxu0 %v6304_v45 }
 0x39b   :  { %4632 = vmatpush2.bf16.msra.mxu1 %v6307_v61  ;;  %4590 = vmatprep.subr.bf16.mxu0 %v6312_v23 }
 0x39c   :  { %4633 = vmatprep.subr.bf16.mxu1 %v6315_v63 }
 0x39e   :  { %4591 = vmatpush2.bf16.msra.mxu0 %v6310_v0 }
 0x39f   :  { %4634 = vmatpush2.bf16.msra.mxu1 %v6313_v1  ;;  %4592 = vmatprep.subr.bf16.mxu0 %v6318_v8 }
 0x3a0   :  { %4635 = vmatprep.subr.bf16.mxu1 %v6321_v16 }
 0x3a2   :  { %4593 = vmatpush2.bf16.msra.mxu0 %v6316_v4 }
 0x3a3   :  { %4636 = vmatpush2.bf16.msra.mxu1 %v6319_v54  ;;  %4648 = vmatprep.subr.bf16.mxu0 %v6324_v25 }
 0x3a4   :  { %4691 = vmatprep.subr.bf16.mxu1 %v6327_v26 }
 0x3e5   :  { %v3376_v9 = vpop.f32.mrf.mxu0 }
 0x3e6   :  { %v3419_v15 = vpop.f32.mrf.mxu1 }
 0x3e7   :  { %v3378_v57 = vpop.f32.mrf.mxu0  ;;  %v3420_v36 = vadd.f32 %v3419_v15, %v3376_v9 }
 0x3e8   :  { %v3421_v24 = vpop.f32.mrf.mxu1 }
 0x3e9   :  { %v3380_v27 = vpop.f32.mrf.mxu0  ;;  %v3422_v35 = vadd.f32 %v3421_v24, %v3378_v57 }
 0x3ea   :  { %v3423_v30 = vpop.f32.mrf.mxu1 }
 0x3eb   :  { %v3382_v31 = vpop.f32.mrf.mxu0  ;;  %v3424_v34 = vadd.f32 %v3423_v30, %v3380_v27 }
 0x3ec   :  { %v3425_v32 = vpop.f32.mrf.mxu1 }
 0x3ed   :  { %v3426_v33 = vadd.f32 %v3425_v32, %v3382_v31  ;;  %v3514_v38 = vadd.f32 %v3424_v34, %v3420_v36 }
 0x3ef   :  { %v3521_v37 = vadd.f32 %v3426_v33, %v3422_v35  ;;  %v3515_v13 = vrot.slane %v3514_v38, 4 }
 0x3f1   :  { %v3522_v39 = vrot.slane %v3521_v37, 4  ;;  %v3516_v2 = vadd.f32 %v3515_v13, %v3514_v38 }
 0x3f3   :  { %v3523_v62 = vadd.f32 %v3522_v39, %v3521_v37  ;;  %v3517_v5 = vrot.slane %v3516_v2, 2 }
 0x3f5   :  { %v3524_v3 = vrot.slane %v3523_v62, 2  ;;  %v3518_v40 = vadd.f32 %v3517_v5, %v3516_v2 }
 0x3f7   :  { %v3525_v6 = vadd.f32 %v3524_v3, %v3523_v62  ;;  %v3519_v43 = vrot.slane %v3518_v40, 1 }
 0x3f9   :  { %v3526_v42 = vrot.slane %v3525_v6, 1  ;;  %v3520_v14 = vadd.f32 %v3519_v43, %v3518_v40 }
 0x3fb   :  { %v3527_v41 = vadd.f32 %v3526_v42, %v3525_v6  ;;  %v3542_v20 = vmul.f32 0.0625, %v3520_v14 }
 0x3fd   :  { %v3543_v46 = vmul.f32 0.0625, %v3527_v41  ;;  %v6741_v50 = vsub.f32 %v3420_v36, %v3542_v20  ;;  %v6743_v51 = vsub.f32 %v3424_v34, %v3542_v20 }
 0x3ff   :  { %v6737_v47 = vsub.f32 %v3422_v35, %v3543_v46  ;;  %v6739_v48 = vsub.f32 %v3426_v33, %v3543_v46  ;;  %v3554_v28 = vmul.f32 %v6741_v50, %v6741_v50  ;;  %v3558_v60 = vmul.f32 %v6743_v51, %v6743_v51 }
 0x401   :  { %v3555_v56 = vmul.f32 %v6737_v47, %v6737_v47  ;;  %v3559_v58 = vmul.f32 %v6739_v48, %v6739_v48  ;;  %v3562_v8 = vadd.f32 %v3558_v60, %v3554_v28 }
 0x403   :  { %v3569_v63 = vadd.f32 %v3559_v58, %v3555_v56  ;;  %v3563_v24 = vrot.slane %v3562_v8, 4 }
 0x405   :  { %v3570_v54 = vrot.slane %v3569_v63, 4  ;;  %v3564_v32 = vadd.f32 %v3563_v24, %v3562_v8 }
 0x407   :  { %v3571_v27 = vadd.f32 %v3570_v54, %v3569_v63  ;;  %v3565_v38 = vrot.slane %v3564_v32, 2 }
 0x409   :  { %v3572_v35 = vrot.slane %v3571_v27, 2  ;;  %v3566_v6 = vadd.f32 %v3565_v38, %v3564_v32 }
 0x40b   :  { %v3573_v62 = vadd.f32 %v3572_v35, %v3571_v27  ;;  %v3595_v35 = vld [vmem:[#allocation8 + $0x10] sm:$0xff] }
 0x40c   :  { %v3680_v38 = vrot.slane %v3595_v35, %v6633_v11 }
 0x40d   :  { %v3574_v14 = vrot.slane %v3573_v62, 1 }
 0x40f   :  { %v3575_v56 = vadd.f32 %v3574_v14, %v3573_v62  ;;  %v3684_v62 = vrot.slane %v3595_v35, %v6641_v19 }
 0x425   :  { %v3462_v49 = vpop.f32.mrf.mxu0 }
 0x426   :  { %v3505_v52 = vpop.f32.mrf.mxu1 }
 0x427   :  { %v3464_v53 = vpop.f32.mrf.mxu0  ;;  %v3506_v44 = vadd.f32 %v3505_v52, %v3462_v49  ;;  %v3567_v52 = vrot.slane %v3566_v6, 1 }
 0x428   :  { %v3507_v55 = vpop.f32.mrf.mxu1 }
 0x429   :  { %v3466_v59 = vpop.f32.mrf.mxu0  ;;  %v3508_v0 = vadd.f32 %v3507_v55, %v3464_v53  ;;  %v3568_v28 = vadd.f32 %v3567_v52, %v3566_v6 }
 0x42a   :  { %v3509_v29 = vpop.f32.mrf.mxu1 }
 0x42b   :  { %v3510_v45 = vadd.f32 %v3509_v29, %v3466_v59  ;;  %v3468_v61 = vpop.f32.mrf.mxu0 }
 0x42c   :  { %v3511_v23 = vpop.f32.mrf.mxu1 }
 0x42d   :  { %v3528_v1 = vadd.f32 %v3510_v45, %v3506_v44  ;;  %v3512_v4 = vadd.f32 %v3511_v23, %v3468_v61  ;;  %v3590_v23 = vmul.f32 0.0625, %v3568_v28 }
 0x42f   :  { %v3529_v9 = vrot.slane %v3528_v1, 4  ;;  %v3535_v15 = vadd.f32 %v3512_v4, %v3508_v0 }
 0x431   :  { %v3530_v16 = vadd.f32 %v3529_v9, %v3528_v1  ;;  %v3536_v57 = vrot.slane %v3535_v15, 4  ;;  %v3596_v9 = vadd.f32 1e-05, %v3590_v23 }
 0x433   :  { %v3531_v25 = vrot.slane %v3530_v16, 2  ;;  %v3537_v26 = vadd.f32 %v3536_v57, %v3535_v15 }
 0x435   :  { %v3532_v30 = vadd.f32 %v3531_v25, %v3530_v16  ;;  %v3538_v31 = vrot.slane %v3537_v26, 2 }
 0x437   :  { %v3533_v33 = vrot.slane %v3532_v30, 1  ;;  %v3539_v34 = vadd.f32 %v3538_v31, %v3537_v26 }
 0x439   :  { %v3534_v36 = vadd.f32 %v3533_v33, %v3532_v30  ;;  %v3540_v37 = vrot.slane %v3539_v34, 1 }
 0x43b   :  { %v3544_v39 = vmul.f32 0.0625, %v3534_v36  ;;  %v3541_v13 = vadd.f32 %v3540_v37, %v3539_v34  ;;  %v3688_v37 = vrot.slane %v3595_v35, %v6631_v10 }
 0x43d   :  { %v6753_v2 = vsub.f32 %v3506_v44, %v3544_v39  ;;  %v6755_v3 = vsub.f32 %v3510_v45, %v3544_v39  ;;  %v3545_v5 = vmul.f32 0.0625, %v3541_v13  ;;  %v3591_v44 = vmul.f32 0.0625, %v3575_v56 }
 0x43e   :  { %v3676_v13 = vrot.slane %v3595_v35, %v6639_v18  ;;  %v3708_v14 = vrot.slane %v3688_v37, %v6639_v18  ;;  %v3704_v56 = vrot.slane %v3684_v62, %v6639_v18  ;;  %v6330_v37 = vld [vmem:[#allocation6 + $0xccc] ss:$16 sps:$4 sm:$0xff]  }
 0x43f   :  { %v3556_v40 = vmul.f32 %v6753_v2, %v6753_v2  ;;  %v3560_v42 = vmul.f32 %v6755_v3, %v6755_v3  ;;  %v3549_v43 = vsub.f32 %v3508_v0, %v3545_v5  ;;  %v3553_v41 = vsub.f32 %v3512_v4, %v3545_v5  ;;  %v6336_v62 = vld [vmem:[#allocation6 + $0xcac] ss:$16 sps:$4 sm:$0xff]  }
 0x440   :  { %v3597_v1 = vadd.f32 1e-05, %v3591_v44 }
 0x441   :  { %v3576_v46 = vadd.f32 %v3560_v42, %v3556_v40  ;;  %v3557_v20 = vmul.f32 %v3549_v43, %v3549_v43  ;;  %v3561_v49 = vmul.f32 %v3553_v41, %v3553_v41 }
 0x442   :  { %6434 = vrsqrt.f32 %v3597_v1 }
 0x443   :  { %v3577_v53 = vrot.slane %v3576_v46, 4  ;;  %v3583_v55 = vadd.f32 %v3561_v49, %v3557_v20  ;;  %6436 = vrsqrt.f32 %v3596_v9 }
 0x445   :  { %v3578_v58 = vadd.f32 %v3577_v53, %v3576_v46  ;;  %v3584_v59 = vrot.slane %v3583_v55, 4  ;;  %v3700_v46 = vrot.slane %v3680_v38, %v6639_v18  ;;  %v6333_v38 = vld [vmem:[#allocation6 + $0xecc] ss:$16 sps:$4 sm:$0xff]  }
 0x447   :  { %v3579_v60 = vrot.slane %v3578_v58, 2  ;;  %v3585_v29 = vadd.f32 %v3584_v59, %v3583_v55  ;;  %v3696_v55 = vrot.slane %v3676_v13, %v6639_v18  ;;  %v6331_v13 = vld [vmem:[#allocation6 + $0xec8] ss:$16 sps:$4 sm:$0xff]  }
 0x449   :  { %v3580_v45 = vadd.f32 %v3579_v60, %v3578_v58  ;;  %v3586_v61 = vrot.slane %v3585_v29, 2 }
 0x44b   :  { %v3581_v63 = vrot.slane %v3580_v45, 1  ;;  %v3587_v0 = vadd.f32 %v3586_v61, %v3585_v29 }
 0x44d   :  { %v3582_v4 = vadd.f32 %v3581_v63, %v3580_v45  ;;  %v3588_v8 = vrot.slane %v3587_v0, 1 }
 0x44f   :  { %v3592_v15 = vmul.f32 0.0625, %v3582_v4  ;;  %v3589_v54 = vadd.f32 %v3588_v8, %v3587_v0  ;;  %v6435_v25 = vpop.eup %6434 }
 0x450   :  { %v6437_v26 = vpop.eup %6436 }
 0x451   :  { %v3598_v16 = vadd.f32 1e-05, %v3592_v15  ;;  %v3593_v57 = vmul.f32 0.0625, %v3589_v54  ;;  %v3608_v30 = vcombine.low %v6437_v26, %v6435_v25 }
 0x453   :  { %v3599_v24 = vadd.f32 1e-05, %v3593_v57  ;;  %6438 = vrsqrt.f32 %v3598_v16  ;;  %v3616_v33 = vrot.slane %v3608_v30, %v6629_v7  ;;  %v6322_v30 = vld [vmem:[#allocation6 + $0xce8] ss:$16 sps:$4 sm:$0xff]  }
 0x455   :  { %6440 = vrsqrt.f32 %v3599_v24 }
 0x460   :  { %v6439_v27 = vpop.eup %6438 }
 0x462   :  { %v6441_v31 = vpop.eup %6440 }
 0x463   :  { %v3609_v32 = vcombine.low %v6439_v27, %v6441_v31 }
 0x465   :  { %v3623_v34 = vrot.slane %v3609_v32, %v6629_v7  ;;  %v6325_v32 = vld [vmem:[#allocation6 + $0xee8] ss:$16 sps:$4 sm:$0xff]  }
 0x467   :  { %v3624_v36 = vcombine.low %v3616_v33, %v3623_v34 }
 0x469   :  { %v3626_v39 = vmul.f32 %v3624_v36, %v3595_v35 }
 0x46b   :  { %v3643_v5 = vrot.slane %v3626_v39, %v6643_v21  ;;  %v3635_v6 = vrot.slane %v3626_v39, %v6645_v22  ;;  %v3631_v40 = vrot.slane %v3626_v39, %v6637_v17  ;;  %v3639_v42 = vrot.slane %v3626_v39, %v6647_v12  ;;  %v6328_v39 = vld [vmem:[#allocation6 + $0xcc8] ss:$16 sps:$4 sm:$0xff]  }
 0x46d   :  { %v3663_v20 = vrot.slane %v3643_v5, %v6637_v17  ;;  %v3655_v49 = vrot.slane %v3635_v6, %v6637_v17  ;;  %v3651_v52 = vrot.slane %v3631_v40, %v6637_v17  ;;  %v3659_v53 = vrot.slane %v3639_v42, %v6637_v17  ;;  %v6339_v5 = vld [vmem:[#allocation6 + $0xeac] ss:$16 sps:$4 sm:$0xff]   ;;  %v6334_v6 = vld [vmem:[#allocation6 + $0xca8] ss:$16 sps:$4 sm:$0xff]  }
 0x46e   :  { %v6337_v40 = vld [vmem:[#allocation6 + $0xea8] ss:$16 sps:$4 sm:$0xff]   ;;  %v6342_v42 = vld [vmem:[#allocation6 + $0xc8c] ss:$16 sps:$4 sm:$0xff]  }
 0x46f   :  { %v3667_v58 = vmul.f32 %v3663_v20, %v3549_v43  ;;  %v3671_v59 = vmul.f32 %v3663_v20, %v3553_v41  ;;  %v3665_v28 = vmul.f32 %v3655_v49, %v6737_v47  ;;  %v3669_v60 = vmul.f32 %v3655_v49, %v6739_v48  ;;  %v6343_v20 = vld [vmem:[#allocation6 + $0xe88] ss:$16 sps:$4 sm:$0xff]   ;;  %v6348_v49 = vld [vmem:[#allocation6 + $0xc6c] ss:$16 sps:$4 sm:$0xff]  }
 0x470   :  { %v3664_v29 = vmul.f32 %v3651_v52, %v6741_v50  ;;  %v3668_v44 = vmul.f32 %v3651_v52, %v6743_v51  ;;  %v3666_v45 = vmul.f32 %v3659_v53, %v6753_v2  ;;  %v3670_v61 = vmul.f32 %v3659_v53, %v6755_v3  ;;  %v6351_v52 = vld [vmem:[#allocation6 + $0xe6c] ss:$16 sps:$4 sm:$0xff]   ;;  %v6346_v53 = vld [vmem:[#allocation6 + $0xc68] ss:$16 sps:$4 sm:$0xff]  }
 0x471   :  { %v3716_v23 = vadd.f32 %v3708_v14, %v3671_v59  ;;  %v3710_v63 = vadd.f32 %v3700_v46, %v3665_v28  ;;  %v3714_v0 = vadd.f32 %v3700_v46, %v3669_v60  ;;  %v3712_v1 = vadd.f32 %v3708_v14, %v3667_v58  ;;  %v6345_v14 = vld [vmem:[#allocation6 + $0xe8c] ss:$16 sps:$4 sm:$0xff]   ;;  %v6340_v46 = vld [vmem:[#allocation6 + $0xc88] ss:$16 sps:$4 sm:$0xff]  }
 0x472   :  { %v3709_v4 = vadd.f32 %v3696_v55, %v3664_v29  ;;  %v3713_v8 = vadd.f32 %v3696_v55, %v3668_v44  ;;  %v3711_v43 = vadd.f32 %v3704_v56, %v3666_v45  ;;  %v3715_v41 = vadd.f32 %v3704_v56, %v3670_v61  ;;  %v6349_v55 = vld [vmem:[#allocation6 + $0xe68] ss:$16 sps:$4 sm:$0xff]   ;;  %v6354_v56 = vld [vmem:[#allocation6 + $0xc4c] ss:$16 sps:$4 sm:$0xff]  }
 0x473   :  { %vm3718_vm0 = vcmp.gt.f32.partialorder %v3710_v63, 0.0  ;;  %vm3722_vm1 = vcmp.gt.f32.partialorder %v3714_v0, 0.0  ;;  %v3726_v47 = vmul.f32 0.2, %v3710_v63  ;;  %v3730_v48 = vmul.f32 0.2, %v3714_v0 }
 0x474   :  { %vm3720_vm2 = vcmp.gt.f32.partialorder %v3712_v1, 0.0  ;;  %vm3724_vm3 = vcmp.gt.f32.partialorder %v3716_v23, 0.0  ;;  %v3728_v50 = vmul.f32 0.2, %v3712_v1  ;;  %v3732_v51 = vmul.f32 0.2, %v3716_v23 }
 0x475   :  { %v3734_v9 = vsel %vm3718_vm0, %v3710_v63, %v3726_v47  ;;  %v3738_v2 = vsel %vm3722_vm1, %v3714_v0, %v3730_v48  ;;  %vm3717_vm4 = vcmp.gt.f32.partialorder %v3709_v4, 0.0  ;;  %vm3721_vm5 = vcmp.gt.f32.partialorder %v3713_v8, 0.0  ;;  %v6357_v58 = vld [vmem:[#allocation6 + $0xe4c] ss:$16 sps:$4 sm:$0xff]   ;;  %v6352_v59 = vld [vmem:[#allocation6 + $0xc48] ss:$16 sps:$4 sm:$0xff]  }
 0x476   :  { %v5636_v3 = vpack.c.bf16 %v3738_v2, %v3734_v9  ;;  %v3736_v15 = vsel %vm3720_vm2, %v3712_v1, %v3728_v50  ;;  %v3740_v54 = vsel %vm3724_vm3, %v3716_v23, %v3732_v51  ;;  %v3725_v16 = vmul.f32 0.2, %v3709_v4  ;;  %v6355_v28 = vld [vmem:[#allocation6 + $0xe48] ss:$16 sps:$4 sm:$0xff]   ;;  %v6360_v60 = vld [vmem:[#allocation6 + $0xc2c] ss:$16 sps:$4 sm:$0xff]  }
 0x477   :  { %v5638_v57 = vpack.c.bf16 %v3740_v54, %v3736_v15  ;;  %v3729_v24 = vmul.f32 0.2, %v3713_v8  ;;  %vm3719_vm6 = vcmp.gt.f32.partialorder %v3711_v43, 0.0  ;;  %vm3723_vm7 = vcmp.gt.f32.partialorder %v3715_v41, 0.0  ;;  %v6363_v29 = vld [vmem:[#allocation6 + $0xe2c] ss:$16 sps:$4 sm:$0xff]  }
 0x478   :  { %4594 = vmatprep.mubr.bf16.mxu0 %v5636_v3  ;;  %v3733_v25 = vsel %vm3717_vm4, %v3709_v4, %v3725_v16  ;;  %v3727_v26 = vmul.f32 0.2, %v3711_v43  ;;  %v3731_v27 = vmul.f32 0.2, %v3715_v41  ;;  %v6358_v44 = vld [vmem:[#allocation6 + $0xc28] ss:$16 sps:$4 sm:$0xff]  }
 0x479   :  { %4637 = vmatprep.mubr.bf16.mxu1 %v5638_v57  ;;  %v3737_v31 = vsel %vm3721_vm5, %v3713_v8, %v3729_v24  ;;  %v6361_v45 = vld [vmem:[#allocation6 + $0xe28] ss:$16 sps:$4 sm:$0xff]   ;;  %v6366_v61 = vld [vmem:[#allocation6 + $0xc0c] ss:$16 sps:$4 sm:$0xff]   ;;  %vm5045_vm0 = vcmask 7168  }
 0x47a   :  { %v6785_v33 = vpack.c.bf16 %v3737_v31, %v3733_v25  ;;  %v3735_v34 = vsel %vm3719_vm6, %v3711_v43, %v3727_v26  ;;  %v3739_v35 = vsel %vm3723_vm7, %v3715_v41, %v3731_v27  ;;  %v6369_v23 = vld [vmem:[#allocation6 + $0xe0c] ss:$16 sps:$4 sm:$0xff]   ;;  %v6364_v63 = vld [vmem:[#allocation6 + $0xc08] ss:$16 sps:$4 sm:$0xff]  }
 0x47b   :  { %v6787_v36 = vpack.c.bf16 %v3739_v35, %v3735_v34  ;;  %v6367_v0 = vld [vmem:[#allocation6 + $0xe08] ss:$16 sps:$4 sm:$0xff]   ;;  %v6372_v1 = vld [vmem:[#allocation6 + $0xdec] ss:$16 sps:$4 sm:$0xff]  }
 0x47c   :  { %4595 = vmatmul.mubr.bf16.vlgmr.msra.gmra.mxu0 %v6785_v33  ;;  %v6375_v4 = vld [vmem:[#allocation6 + $0xfec] ss:$16 sps:$4 sm:$0xff]   ;;  %v6370_v8 = vld [vmem:[#allocation6 + $0xde8] ss:$16 sps:$4 sm:$0xff]  }
 0x47d   :  { %4638 = vmatmul.mubr.bf16.vlgmr.msra.gmra.mxu1 %v6787_v36  ;;  %4649 = vmatpush1.bf16.msra.mxu0 %v6322_v30  ;;  %v6373_v43 = vld [vmem:[#allocation6 + $0xfe8] ss:$16 sps:$4 sm:$0xff]   ;;  %v6378_v41 = vld [vmem:[#allocation6 + $0xdcc] ss:$16 sps:$4 sm:$0xff]  }
 0x47e   :  { %4692 = vmatpush1.bf16.msra.mxu1 %v6325_v32  ;;  %4680 = vmatprep.mubr.bf16.mxu0 %v5636_v3  ;;  %v6381_v47 = vld [vmem:[#allocation6 + $0xfcc] ss:$16 sps:$4 sm:$0xff]   ;;  %v6376_v48 = vld [vmem:[#allocation6 + $0xdc8] ss:$16 sps:$4 sm:$0xff]  }
 0x47f   :  { %4723 = vmatprep.mubr.bf16.mxu1 %v5638_v57  ;;  %4650 = vmatprep.subr.bf16.mxu0 %v6330_v37  ;;  %v6379_v50 = vld [vmem:[#allocation6 + $0xfc8] ss:$16 sps:$4 sm:$0xff]   ;;  %v6384_v51 = vld [vmem:[#allocation6 + $0xdac] ss:$16 sps:$4 sm:$0xff]  }
 0x480   :  { %4693 = vmatprep.subr.bf16.mxu1 %v6333_v38  ;;  %v6387_v9 = vld [vmem:[#allocation6 + $0xfac] ss:$16 sps:$4 sm:$0xff]   ;;  %v6382_v2 = vld [vmem:[#allocation6 + $0xda8] ss:$16 sps:$4 sm:$0xff]  }
 0x481   :  { %4651 = vmatpush1.bf16.msra.mxu0 %v6328_v39  ;;  %v6385_v3 = vld [vmem:[#allocation6 + $0xfa8] ss:$16 sps:$4 sm:$0xff]   ;;  %v6390_v15 = vld [vmem:[#allocation6 + $0xd8c] ss:$16 sps:$4 sm:$0xff]  }
 0x482   :  { %4694 = vmatpush1.bf16.msra.mxu1 %v6331_v13  ;;  %4652 = vmatprep.subr.bf16.mxu0 %v6336_v62  ;;  %v6393_v54 = vld [vmem:[#allocation6 + $0xf8c] ss:$16 sps:$4 sm:$0xff]   ;;  %v6388_v16 = vld [vmem:[#allocation6 + $0xd88] ss:$16 sps:$4 sm:$0xff]  }
 0x483   :  { %4695 = vmatprep.subr.bf16.mxu1 %v6339_v5  ;;  %v6391_v57 = vld [vmem:[#allocation6 + $0xf88] ss:$16 sps:$4 sm:$0xff]   ;;  %v6396_v24 = vld [vmem:[#allocation6 + $0xd6c] ss:$16 sps:$4 sm:$0xff]  }
 0x484   :  { %v6399_v25 = vld [vmem:[#allocation6 + $0xf6c] ss:$16 sps:$4 sm:$0xff]   ;;  %v6394_v26 = vld [vmem:[#allocation6 + $0xd68] ss:$16 sps:$4 sm:$0xff]  }
 0x485   :  { %4653 = vmatpush1.bf16.msra.mxu0 %v6334_v6  ;;  %v6397_v27 = vld [vmem:[#allocation6 + $0xf68] ss:$16 sps:$4 sm:$0xff]   ;;  %v6402_v30 = vld [vmem:[#allocation6 + $0xd4c] ss:$16 sps:$4 sm:$0xff]  }
 0x486   :  { %4696 = vmatpush1.bf16.msra.mxu1 %v6337_v40  ;;  %4654 = vmatprep.subr.bf16.mxu0 %v6342_v42  ;;  %v6405_v31 = vld [vmem:[#allocation6 + $0xf4c] ss:$16 sps:$4 sm:$0xff]   ;;  %v6400_v32 = vld [vmem:[#allocation6 + $0xd48] ss:$16 sps:$4 sm:$0xff]  }
 0x487   :  { %4697 = vmatprep.subr.bf16.mxu1 %v6345_v14  ;;  %v6403_v34 = vld [vmem:[#allocation6 + $0xf48] ss:$16 sps:$4 sm:$0xff]   ;;  %v6408_v35 = vld [vmem:[#allocation6 + $0xd2c] ss:$16 sps:$4 sm:$0xff]  }
 0x488   :  { %v6411_v37 = vld [vmem:[#allocation6 + $0xf2c] ss:$16 sps:$4 sm:$0xff]   ;;  %v6406_v38 = vld [vmem:[#allocation6 + $0xd28] ss:$16 sps:$4 sm:$0xff]  }
 0x489   :  { %4655 = vmatpush1.bf16.msra.mxu0 %v6340_v46  ;;  %v6409_v39 = vld [vmem:[#allocation6 + $0xf28] ss:$16 sps:$4 sm:$0xff]   ;;  %v6414_v13 = vld [vmem:[#allocation6 + $0xd0c] ss:$16 sps:$4 sm:$0xff]  }
 0x48a   :  { %4698 = vmatpush1.bf16.msra.mxu1 %v6343_v20  ;;  %4656 = vmatprep.subr.bf16.mxu0 %v6348_v49  ;;  %v6417_v62 = vld [vmem:[#allocation6 + $0xf0c] ss:$16 sps:$4 sm:$0xff]   ;;  %v6412_v5 = vld [vmem:[#allocation6 + $0xd08] ss:$16 sps:$4 sm:$0xff]  }
 0x48b   :  { %4699 = vmatprep.subr.bf16.mxu1 %v6351_v52  ;;  %v6415_v6 = vld [vmem:[#allocation6 + $0xf08] ss:$16 sps:$4 sm:$0xff]  }
 0x48d   :  { %4657 = vmatpush1.bf16.msra.mxu0 %v6346_v53 }
 0x48e   :  { %4700 = vmatpush1.bf16.msra.mxu1 %v6349_v55  ;;  %4658 = vmatprep.subr.bf16.mxu0 %v6354_v56 }
 0x48f   :  { %4701 = vmatprep.subr.bf16.mxu1 %v6357_v58 }
 0x491   :  { %4659 = vmatpush1.bf16.msra.mxu0 %v6352_v59 }
 0x492   :  { %4702 = vmatpush1.bf16.msra.mxu1 %v6355_v28  ;;  %4660 = vmatprep.subr.bf16.mxu0 %v6360_v60 }
 0x493   :  { %4703 = vmatprep.subr.bf16.mxu1 %v6363_v29 }
 0x495   :  { %4661 = vmatpush1.bf16.msra.mxu0 %v6358_v44 }
 0x496   :  { %4704 = vmatpush1.bf16.msra.mxu1 %v6361_v45  ;;  %4662 = vmatprep.subr.bf16.mxu0 %v6366_v61 }
 0x497   :  { %4705 = vmatprep.subr.bf16.mxu1 %v6369_v23 }
 0x499   :  { %4663 = vmatpush1.bf16.msra.mxu0 %v6364_v63 }
 0x49a   :  { %4706 = vmatpush1.bf16.msra.mxu1 %v6367_v0  ;;  %4664 = vmatprep.subr.bf16.mxu0 %v6372_v1 }
 0x49b   :  { %4707 = vmatprep.subr.bf16.mxu1 %v6375_v4 }
 0x49d   :  { %4665 = vmatpush2.bf16.msra.mxu0 %v6370_v8 }
 0x49e   :  { %4708 = vmatpush2.bf16.msra.mxu1 %v6373_v43  ;;  %4666 = vmatprep.subr.bf16.mxu0 %v6378_v41 }
 0x49f   :  { %4709 = vmatprep.subr.bf16.mxu1 %v6381_v47 }
 0x4a1   :  { %4667 = vmatpush2.bf16.msra.mxu0 %v6376_v48 }
 0x4a2   :  { %4710 = vmatpush2.bf16.msra.mxu1 %v6379_v50  ;;  %4668 = vmatprep.subr.bf16.mxu0 %v6384_v51 }
 0x4a3   :  { %4711 = vmatprep.subr.bf16.mxu1 %v6387_v9 }
 0x4a5   :  { %4669 = vmatpush2.bf16.msra.mxu0 %v6382_v2 }
 0x4a6   :  { %4712 = vmatpush2.bf16.msra.mxu1 %v6385_v3  ;;  %4670 = vmatprep.subr.bf16.mxu0 %v6390_v15 }
 0x4a7   :  { %4713 = vmatprep.subr.bf16.mxu1 %v6393_v54 }
 0x4a9   :  { %4671 = vmatpush2.bf16.msra.mxu0 %v6388_v16 }
 0x4aa   :  { %4714 = vmatpush2.bf16.msra.mxu1 %v6391_v57  ;;  %4672 = vmatprep.subr.bf16.mxu0 %v6396_v24 }
 0x4ab   :  { %4715 = vmatprep.subr.bf16.mxu1 %v6399_v25 }
 0x4ad   :  { %4673 = vmatpush2.bf16.msra.mxu0 %v6394_v26 }
 0x4ae   :  { %4716 = vmatpush2.bf16.msra.mxu1 %v6397_v27  ;;  %4674 = vmatprep.subr.bf16.mxu0 %v6402_v30 }
 0x4af   :  { %4717 = vmatprep.subr.bf16.mxu1 %v6405_v31 }
 0x4b1   :  { %4675 = vmatpush2.bf16.msra.mxu0 %v6400_v32 }
 0x4b2   :  { %4718 = vmatpush2.bf16.msra.mxu1 %v6403_v34  ;;  %4676 = vmatprep.subr.bf16.mxu0 %v6408_v35 }
 0x4b3   :  { %4719 = vmatprep.subr.bf16.mxu1 %v6411_v37 }
 0x4b5   :  { %4677 = vmatpush2.bf16.msra.mxu0 %v6406_v38 }
 0x4b6   :  { %4720 = vmatpush2.bf16.msra.mxu1 %v6409_v39  ;;  %4678 = vmatprep.subr.bf16.mxu0 %v6414_v13 }
 0x4b7   :  { %4721 = vmatprep.subr.bf16.mxu1 %v6417_v62 }
 0x4b9   :  { %4679 = vmatpush2.bf16.msra.mxu0 %v6412_v5 }
 0x4ba   :  { %4722 = vmatpush2.bf16.msra.mxu1 %v6415_v6 }
 0x4bc   :  { %4681 = vmatmul.mubr.bf16.vlgmr.msra.gmra.mxu0 %v6785_v33 }
 0x4bd   :  { %4724 = vmatmul.mubr.bf16.vlgmr.msra.gmra.mxu1 %v6787_v36 }
 0x53c   :  { %v4596_v40 = vpop.f32.mrf.mxu0 }
 0x53d   :  { %v4639_v42 = vpop.f32.mrf.mxu1 }
 0x53e   :  { %v4598_v14 = vpop.f32.mrf.mxu0  ;;  %v4640_v59 = vadd.f32 %v4639_v42, %v4596_v40 }
 0x53f   :  { %v4641_v46 = vpop.f32.mrf.mxu1 }
 0x540   :  { %v4600_v20 = vpop.f32.mrf.mxu0  ;;  %v4642_v58 = vadd.f32 %v4641_v46, %v4598_v14 }
 0x541   :  { %v4643_v49 = vpop.f32.mrf.mxu1 }
 0x542   :  { %v4602_v52 = vpop.f32.mrf.mxu0  ;;  %v4644_v56 = vadd.f32 %v4643_v49, %v4600_v20 }
 0x543   :  { %v4645_v53 = vpop.f32.mrf.mxu1 }
 0x544   :  { %v4646_v55 = vadd.f32 %v4645_v53, %v4602_v52  ;;  %v4734_v60 = vadd.f32 %v4644_v56, %v4640_v59 }
 0x546   :  { %v4741_v28 = vadd.f32 %v4646_v55, %v4642_v58  ;;  %v4735_v44 = vrot.slane %v4734_v60, 4 }
 0x548   :  { %v4742_v29 = vrot.slane %v4741_v28, 4  ;;  %v4736_v33 = vadd.f32 %v4735_v44, %v4734_v60 }
 0x54a   :  { %v4743_v45 = vadd.f32 %v4742_v29, %v4741_v28  ;;  %v4737_v36 = vrot.slane %v4736_v33, 2 }
 0x54c   :  { %v4744_v61 = vrot.slane %v4743_v45, 2  ;;  %v4738_v63 = vadd.f32 %v4737_v36, %v4736_v33 }
 0x54e   :  { %v4745_v23 = vadd.f32 %v4744_v61, %v4743_v45  ;;  %v4739_v1 = vrot.slane %v4738_v63, 1 }
 0x550   :  { %v4746_v0 = vrot.slane %v4745_v23, 1  ;;  %v4740_v8 = vadd.f32 %v4739_v1, %v4738_v63 }
 0x552   :  { %v4747_v4 = vadd.f32 %v4746_v0, %v4745_v23  ;;  %v4762_v41 = vmul.f32 0.0625, %v4740_v8 }
 0x554   :  { %v4763_v43 = vmul.f32 0.0625, %v4747_v4  ;;  %v6797_v51 = vsub.f32 %v4640_v59, %v4762_v41  ;;  %v6799_v9 = vsub.f32 %v4644_v56, %v4762_v41 }
 0x556   :  { %v6793_v47 = vsub.f32 %v4642_v58, %v4763_v43  ;;  %v6795_v48 = vsub.f32 %v4646_v55, %v4763_v43  ;;  %v4774_v24 = vmul.f32 %v6797_v51, %v6797_v51  ;;  %v4778_v25 = vmul.f32 %v6799_v9, %v6799_v9 }
 0x558   :  { %v4775_v54 = vmul.f32 %v6793_v47, %v6793_v47  ;;  %v4779_v16 = vmul.f32 %v6795_v48, %v6795_v48  ;;  %v4782_v39 = vadd.f32 %v4778_v25, %v4774_v24 }
 0x55a   :  { %v4789_v34 = vadd.f32 %v4779_v16, %v4775_v54  ;;  %v4783_v42 = vrot.slane %v4782_v39, 4 }
 0x55c   :  { %v4790_v5 = vrot.slane %v4789_v34, 4  ;;  %v4784_v53 = vadd.f32 %v4783_v42, %v4782_v39 }
 0x55e   :  { %v4791_v20 = vadd.f32 %v4790_v5, %v4789_v34  ;;  %v4785_v60 = vrot.slane %v4784_v53, 2 }
 0x560   :  { %v4792_v58 = vrot.slane %v4791_v20, 2  ;;  %v4786_v23 = vadd.f32 %v4785_v60, %v4784_v53 }
 0x562   :  { %v4793_v45 = vadd.f32 %v4792_v58, %v4791_v20  ;;  %v4815_v58 = vld [vmem:[#allocation8 + $0x18] sm:$0xff] }
 0x563   :  { %v4896_v60 = vrot.slane %v4815_v58, %v6639_v18 }
 0x564   :  { %v4794_v8 = vrot.slane %v4793_v45, 1 }
 0x566   :  { %v4795_v54 = vadd.f32 %v4794_v8, %v4793_v45  ;;  %v4904_v45 = vrot.slane %v4815_v58, %v6641_v19 }
 0x57c   :  { %v4682_v50 = vpop.f32.mrf.mxu0 }
 0x57d   :  { %v4725_v2 = vpop.f32.mrf.mxu1 }
 0x57e   :  { %v4684_v3 = vpop.f32.mrf.mxu0  ;;  %v4726_v27 = vadd.f32 %v4725_v2, %v4682_v50  ;;  %v4787_v2 = vrot.slane %v4786_v23, 1 }
 0x57f   :  { %v4727_v15 = vpop.f32.mrf.mxu1 }
 0x580   :  { %v4686_v57 = vpop.f32.mrf.mxu0  ;;  %v4728_v35 = vadd.f32 %v4727_v15, %v4684_v3  ;;  %v4788_v24 = vadd.f32 %v4787_v2, %v4786_v23  ;;  %v4924_v2 = vrot.slane %v4904_v45, %v6639_v18 }
 0x581   :  { %v4729_v26 = vpop.f32.mrf.mxu1 }
 0x582   :  { %v4730_v30 = vadd.f32 %v4729_v26, %v4686_v57  ;;  %v4688_v31 = vpop.f32.mrf.mxu0 }
 0x583   :  { %v4731_v32 = vpop.f32.mrf.mxu1 }
 0x584   :  { %v4748_v37 = vadd.f32 %v4730_v30, %v4726_v27  ;;  %v4732_v38 = vadd.f32 %v4731_v32, %v4688_v31  ;;  %v4810_v32 = vmul.f32 0.0625, %v4788_v24 }
 0x586   :  { %v4749_v13 = vrot.slane %v4748_v37, 4  ;;  %v4755_v62 = vadd.f32 %v4732_v38, %v4728_v35 }
 0x588   :  { %v4750_v6 = vadd.f32 %v4749_v13, %v4748_v37  ;;  %v4756_v40 = vrot.slane %v4755_v62, 4  ;;  %v4816_v13 = vadd.f32 1e-05, %v4810_v32 }
 0x58a   :  { %v4751_v14 = vrot.slane %v4750_v6, 2  ;;  %v4757_v46 = vadd.f32 %v4756_v40, %v4755_v62 }
 0x58c   :  { %v4752_v49 = vadd.f32 %v4751_v14, %v4750_v6  ;;  %v4758_v52 = vrot.slane %v4757_v46, 2 }
 0x58e   :  { %v4753_v55 = vrot.slane %v4752_v49, 1  ;;  %v4759_v56 = vadd.f32 %v4758_v52, %v4757_v46 }
 0x590   :  { %v4754_v59 = vadd.f32 %v4753_v55, %v4752_v49  ;;  %v4760_v28 = vrot.slane %v4759_v56, 1 }
 0x592   :  { %v4764_v29 = vmul.f32 0.0625, %v4754_v59  ;;  %v4761_v44 = vadd.f32 %v4760_v28, %v4759_v56  ;;  %v4908_v28 = vrot.slane %v4815_v58, %v6631_v10  ;;  %v4916_v10 = vrot.slane %v4896_v60, %v6639_v18 }
 0x594   :  { %v6809_v33 = vsub.f32 %v4726_v27, %v4764_v29  ;;  %v6811_v61 = vsub.f32 %v4730_v30, %v4764_v29  ;;  %v4765_v36 = vmul.f32 0.0625, %v4761_v44  ;;  %v4811_v27 = vmul.f32 0.0625, %v4795_v54 }
 0x595   :  { %v4900_v29 = vrot.slane %v4815_v58, %v6633_v11  ;;  %v4928_v8 = vrot.slane %v4908_v28, %v6639_v18 }
 0x596   :  { %v4776_v63 = vmul.f32 %v6809_v33, %v6809_v33  ;;  %v4780_v0 = vmul.f32 %v6811_v61, %v6811_v61  ;;  %v6817_v1 = vsub.f32 %v4728_v35, %v4765_v36  ;;  %v6819_v4 = vsub.f32 %v4732_v38, %v4765_v36 }
 0x597   :  { %v4817_v37 = vadd.f32 1e-05, %v4811_v27 }
 0x598   :  { %v4796_v43 = vadd.f32 %v4780_v0, %v4776_v63  ;;  %v4777_v41 = vmul.f32 %v6817_v1, %v6817_v1  ;;  %v4781_v50 = vmul.f32 %v6819_v4, %v6819_v4 }
 0x599   :  { %6442 = vrsqrt.f32 %v4817_v37 }
 0x59a   :  { %v4797_v3 = vrot.slane %v4796_v43, 4  ;;  %v4803_v15 = vadd.f32 %v4781_v50, %v4777_v41  ;;  %6444 = vrsqrt.f32 %v4816_v13 }
 0x59c   :  { %v4798_v16 = vadd.f32 %v4797_v3, %v4796_v43  ;;  %v4804_v57 = vrot.slane %v4803_v15, 4  ;;  %v4920_v43 = vrot.slane %v4900_v29, %v6639_v18 }
 0x59e   :  { %v4799_v25 = vrot.slane %v4798_v16, 2  ;;  %v4805_v26 = vadd.f32 %v4804_v57, %v4803_v15 }
 0x5a0   :  { %v4800_v30 = vadd.f32 %v4799_v25, %v4798_v16  ;;  %v4806_v31 = vrot.slane %v4805_v26, 2 }
 0x5a2   :  { %v4801_v34 = vrot.slane %v4800_v30, 1  ;;  %v4807_v35 = vadd.f32 %v4806_v31, %v4805_v26 }
 0x5a4   :  { %v4802_v38 = vadd.f32 %v4801_v34, %v4800_v30  ;;  %v4808_v39 = vrot.slane %v4807_v35, 1 }
 0x5a6   :  { %v4812_v62 = vmul.f32 0.0625, %v4802_v38  ;;  %v4809_v5 = vadd.f32 %v4808_v39, %v4807_v35  ;;  %v6443_v14 = vpop.eup %6442 }
 0x5a7   :  { %v6445_v46 = vpop.eup %6444 }
 0x5a8   :  { %v4818_v6 = vadd.f32 1e-05, %v4812_v62  ;;  %v4813_v40 = vmul.f32 0.0625, %v4809_v5  ;;  %v4828_v49 = vcombine.low %v6445_v46, %v6443_v14 }
 0x5aa   :  { %v4819_v42 = vadd.f32 1e-05, %v4813_v40  ;;  %6446 = vrsqrt.f32 %v4818_v6  ;;  %v4836_v55 = vrot.slane %v4828_v49, %v6629_v7 }
 0x5ac   :  { %6448 = vrsqrt.f32 %v4819_v42 }
 0x5b7   :  { %v6447_v20 = vpop.eup %6446 }
 0x5b9   :  { %v6449_v52 = vpop.eup %6448 }
 0x5ba   :  { %v4829_v53 = vcombine.low %v6447_v20, %v6449_v52 }
 0x5bc   :  { %v4843_v56 = vrot.slane %v4829_v53, %v6629_v7  ;;  %v5001_v7 = vld [vmem:[#allocation9] sm:$0xf] }
 0x5bd   :  { %v5006_v3 = vrot.slane %v5001_v7, %v6637_v17  ;;  %v5014_v20 = vrot.slane %v5001_v7, %v6645_v22  ;;  %v5018_v53 = vrot.slane %v5001_v7, %v6633_v11 }
 0x5be   :  { %v4844_v59 = vcombine.low %v4836_v55, %v4843_v56 }
 0x5c0   :  { %v4846_v44 = vmul.f32 %v4844_v59, %v4815_v58 }
 0x5c2   :  { %v4863_v36 = vrot.slane %v4846_v44, %v6643_v21  ;;  %v4851_v23 = vrot.slane %v4846_v44, %v6637_v17  ;;  %v4855_v63 = vrot.slane %v4846_v44, %v6645_v22  ;;  %v4859_v0 = vrot.slane %v4846_v44, %v6647_v12 }
 0x5c3   :  { %v5010_v12 = vrot.slane %v5001_v7, %v6639_v18 }
 0x5c4   :  { %v4883_v41 = vrot.slane %v4863_v36, %v6637_v17  ;;  %v4871_v50 = vrot.slane %v4851_v23, %v6637_v17  ;;  %v4875_v19 = vrot.slane %v4855_v63, %v6637_v17  ;;  %v4879_v21 = vrot.slane %v4859_v0, %v6637_v17 }
 0x5c6   :  { %v4887_v15 = vmul.f32 %v4883_v41, %v6817_v1  ;;  %v4891_v54 = vmul.f32 %v4883_v41, %v6819_v4  ;;  %v4884_v16 = vmul.f32 %v4871_v50, %v6797_v51  ;;  %v4885_v57 = vmul.f32 %v4875_v19, %v6793_v47 }
 0x5c7   :  { %v4886_v24 = vmul.f32 %v4879_v21, %v6809_v33  ;;  %v4888_v25 = vmul.f32 %v4871_v50, %v6799_v9  ;;  %v4889_v26 = vmul.f32 %v4875_v19, %v6795_v48  ;;  %v4890_v27 = vmul.f32 %v4879_v21, %v6811_v61 }
 0x5c8   :  { %v4932_v30 = vadd.f32 %v4928_v8, %v4887_v15  ;;  %v4936_v17 = vadd.f32 %v4928_v8, %v4891_v54  ;;  %v4929_v31 = vadd.f32 %v4916_v10, %v4884_v16  ;;  %v4930_v18 = vadd.f32 %v4920_v43, %v4885_v57 }
 0x5c9   :  { %v4931_v32 = vadd.f32 %v4924_v2, %v4886_v24  ;;  %v4933_v1 = vadd.f32 %v4916_v10, %v4888_v25  ;;  %v4934_v34 = vadd.f32 %v4920_v43, %v4889_v26  ;;  %v4935_v4 = vadd.f32 %v4924_v2, %v4890_v27 }
 0x5ca   :  { %v4952_v35 = vmul.f32 0.2, %v4936_v17  ;;  %vm4937_vm8 = vcmp.gt.f32.partialorder %v4929_v31, 0.0  ;;  %vm4938_vm9 = vcmp.gt.f32.partialorder %v4930_v18, 0.0  ;;  %vm4940_vm10 = vcmp.gt.f32.partialorder %v4932_v30, 0.0 }
 0x5cb   :  { %vm4939_vm11 = vcmp.gt.f32.partialorder %v4931_v32, 0.0  ;;  %v4945_v47 = vmul.f32 0.2, %v4929_v31  ;;  %v4946_v51 = vmul.f32 0.2, %v4930_v18  ;;  %vm4941_vm12 = vcmp.gt.f32.partialorder %v4933_v1, 0.0 }
 0x5cc   :  { %v4947_v9 = vmul.f32 0.2, %v4931_v32  ;;  %v4948_v48 = vmul.f32 0.2, %v4932_v30  ;;  %vm4942_vm13 = vcmp.gt.f32.partialorder %v4934_v34, 0.0  ;;  %vm4943_vm14 = vcmp.gt.f32.partialorder %v4935_v4, 0.0 }
 0x5cd   :  { %v4953_v33 = vsel %vm4937_vm8, %v4929_v31, %v4945_v47  ;;  %v4954_v61 = vsel %vm4938_vm9, %v4930_v18, %v4946_v51  ;;  %vm4944_vm15 = vcmp.gt.f32.partialorder %v4936_v17, 0.0  ;;  %v4949_v37 = vmul.f32 0.2, %v4933_v1 }
 0x5ce   :  { %v4955_v38 = vsel %vm4939_vm11, %v4931_v32, %v4947_v9  ;;  %v4956_v39 = vsel %vm4940_vm10, %v4932_v30, %v4948_v48  ;;  %v5619_v13 = vpack.c.bf16 %v4954_v61, %v4953_v33  ;;  %v4950_v62 = vmul.f32 0.2, %v4934_v34 }
 0x5cf   :  { %v5620_v5 = vpack.c.bf16 %v4956_v39, %v4955_v38  ;;  %v4951_v6 = vmul.f32 0.2, %v4935_v4  ;;  %v4957_v40 = vsel %vm4941_vm12, %v4933_v1, %v4949_v37  ;;  %v4960_v42 = vsel %vm4944_vm15, %v4936_v17, %v4952_v35 }
 0x5d0   :  { %v4993_v14 = vunpack.c.l.bf16 %v5619_v13  ;;  %v4994_v46 = vunpack.c.h.bf16 %v5619_v13  ;;  %v4958_v49 = vsel %vm4942_vm13, %v4934_v34, %v4950_v62  ;;  %v5042_v21 = vstv %s6870_s4 }
 0x5d1   :  { %v4995_v52 = vunpack.c.l.bf16 %v5620_v5  ;;  %v4959_v55 = vsel %vm4943_vm14, %v4935_v4, %v4951_v6  ;;  %v5621_v56 = vpack.c.bf16 %v4958_v49, %v4957_v40  ;;  %v4996_v58 = vunpack.c.h.bf16 %v5620_v5 }
 0x5d2   :  { %v5023_v59 = vmul.f32 %v5006_v3, %v4993_v14  ;;  %v5024_v28 = vmul.f32 %v5010_v12, %v4994_v46  ;;  %v5622_v60 = vpack.c.bf16 %v4960_v42, %v4959_v55 }
 0x5d3   :  { %v4997_v29 = vunpack.c.l.bf16 %v5621_v56  ;;  %v4998_v44 = vunpack.c.h.bf16 %v5621_v56  ;;  %v5025_v45 = vmul.f32 %v5014_v20, %v4995_v52  ;;  %v5026_v22 = vmul.f32 %v5018_v53, %v4996_v58 }
 0x5d4   :  { %v5031_v36 = vadd.f32 %v5024_v28, %v5023_v59  ;;  %v4999_v23 = vunpack.c.l.bf16 %v5622_v60  ;;  %v5000_v10 = vunpack.c.h.bf16 %v5622_v60 }
 0x5d5   :  { %v5027_v63 = vmul.f32 %v5006_v3, %v4997_v29  ;;  %v5028_v0 = vmul.f32 %v5010_v12, %v4998_v44 }
 0x5d6   :  { %v5032_v8 = vadd.f32 %v5031_v36, %v5025_v45  ;;  %v5029_v43 = vmul.f32 %v5014_v20, %v4999_v23  ;;  %v5030_v50 = vmul.f32 %v5018_v53, %v5000_v10 }
 0x5d7   :  { %v5036_v41 = vadd.f32 %v5028_v0, %v5027_v63 }
 0x5d8   :  { %v5033_v11 = vadd.f32 %v5032_v8, %v5026_v22 }
 0x5d9   :  { %v5037_v7 = vadd.f32 %v5036_v41, %v5029_v43 }
 0x5da   :  { %5034 = vadd.xlane.f32.xlu0 %v5033_v11 }
 0x5db   :  { %v5038_v19 = vadd.f32 %v5037_v7, %v5030_v50 }
 0x5de   :  { %5039 = vadd.xlane.f32.xlu0 %v5038_v19 }
 0x663   :  { %v5035_v2 = vpop.xlane.xlu0 %5034 }
 0x664   :  { %v5043_v15 = vadd.f32 %v5042_v21, %v5035_v2 }
 0x666   :  { %5046 = vst.msk [vmem:[%s6871_s5] sm:$0xff] %vm5045_vm0, %v5043_v15 }
 0x667   :  { %v5040_v3 = vpop.xlane.xlu0 %5039 }
 0x668   :  { %v5044_v12 = vadd.f32 %v5042_v21, %v5040_v3 }
 0x66a   :  { %5047 = vst.msk [vmem:[%s6871_s5 + $0x8] sm:$0xff] %vm5045_vm0, %v5044_v12 }
 0x66b   :  { %5052 = vsyncpa [#allocation5], 1 }
 0x66c   :  { %5053 = vsyncpa [#allocation7], 1 }
 0x66d   :  { %5054 = vsyncpa [#allocation10], 1 }

</bundles_post_ra>
